<compile_context>
chip_gen: v7x
topology: tpu7x:2x2x1
jax: 0.10.0
libtpu: 0.0.40
codegen_flags: <defaults>
</compile_context>

<pallas_src>
import functools

import jax
import jax.numpy as jnp
from jax.experimental import pallas as pl
from jax.experimental.pallas import tpu as pltpu

EPS = 1e-5
LANE = 128


def _round_up(v, m):
    return ((v + m - 1) // m) * m


# ------------------------------------------------------------ Pallas kernel -

def _conv_kernel(*refs, stride, ho, wo1, h_real, w_real, sc_via_matmul):
    """One grid step = one image.

    out = im2col(relu(scale*x + shift), halo re-zeroed) @ W + bias [+ shortcut]

    Output spatial layout is (ho, wo1) where wo1 is the stride-1 width; the
    wrapper decimates W for strided blocks.
    """
    if len(refs) == 7:
        xin_ref, scale_ref, shift_ref, w_ref, b_ref, sc_ref, out_ref = refs
    else:
        xin_ref, scale_ref, shift_ref, w_ref, b_ref, out_ref = refs
        sc_ref = None

    x = xin_ref[0].astype(jnp.float32)                 # (hp, wp, cp)
    hp, wp, cp = x.shape
    scale = scale_ref[...].reshape(1, 1, cp)
    shift = shift_ref[...].reshape(1, 1, cp)

    # BN (pre-folded global batch stats) + ReLU in f32 on the VPU; then re-zero
    # the 1-pixel halo (and any extra bottom pad rows): conv padding must be
    # zero AFTER bn+relu, and relu(0*scale + shift) != 0 in general.
    rr = jax.lax.broadcasted_iota(jnp.int32, (hp, wp, cp), 0)
    cc = jax.lax.broadcasted_iota(jnp.int32, (hp, wp, cp), 1)
    interior = (rr >= 1) & (rr <= h_real) & (cc >= 1) & (cc <= w_real)
    a = jnp.where(interior, jnp.maximum(x * scale + shift, 0.0), 0.0)

    m = ho * wo1
    pieces = []
    for kh in range(3):
        rows = a[kh:kh + stride * ho]                  # contiguous rows (leading dim)
        if stride > 1:
            # phase-0 decimation along H: leading-dims-only reshape, no strided slice
            rows = rows.reshape(ho, stride, wp, cp)[:, 0]
        for kw in range(3):
            pieces.append(
                rows[:, kw:kw + wo1, :].reshape(m, cp).astype(jnp.bfloat16))

    sc_flat = None
    if sc_ref is not None:
        xs = sc_ref[0].astype(jnp.float32)             # raw input (no BN) for shortcut
        hs, ws_, cps = xs.shape
        srows = xs[0:stride * ho]
        if stride > 1:
            srows = srows.reshape(ho, stride, ws_, cps)[:, 0]
        sc_flat = srows[:, :wo1, :].reshape(m, cps)
        if sc_via_matmul:
            pieces.append(sc_flat.astype(jnp.bfloat16))   # 1x1-conv shortcut K-slab

    # Single im2col matmul: bf16 operands, f32 accumulation on the MXU.
    col = jnp.concatenate(pieces, axis=-1)             # (m, K) bf16, K lane-aligned
    out = jnp.dot(col, w_ref[...], preferred_element_type=jnp.float32)
    out = out + b_ref[...]

    if sc_ref is not None and not sc_via_matmul:
        out = out + sc_flat                            # identity shortcut, exact f32

    out_ref[...] = out.reshape(1, ho, wo1, out_ref.shape[-1]).astype(out_ref.dtype)


def _conv_pass(xin, scale, shift, w_col, bias, sc, *, stride, ho, wo1,
               h_real, w_real, sc_via_matmul):
    n, hp, wp, cp = xin.shape
    k, cout_p = w_col.shape

    kernel = functools.partial(
        _conv_kernel, stride=stride, ho=ho, wo1=wo1,
        h_real=h_real, w_real=w_real, sc_via_matmul=sc_via_matmul)

    in_specs = [
        pl.BlockSpec((1, hp, wp, cp), lambda i: (i, 0, 0, 0)),   # per-image padded tile
        pl.BlockSpec((1, cp), lambda i: (0, 0)),                 # folded BN scale
        pl.BlockSpec((1, cp), lambda i: (0, 0)),                 # folded BN shift
        pl.BlockSpec((k, cout_p), lambda i: (0, 0)),             # im2col weights (bf16)
        pl.BlockSpec((1, cout_p), lambda i: (0, 0)),             # bias
    ]
    args = [xin, scale, shift, w_col, bias]
    if sc is not None:
        _, hs, ws_, cps = sc.shape
        in_specs.append(pl.BlockSpec((1, hs, ws_, cps), lambda i: (i, 0, 0, 0)))
        args.append(sc)

    flops = 2 * n * ho * wo1 * k * cout_p
    bytes_accessed = (xin.size * xin.dtype.itemsize + w_col.size * 2
                      + (sc.size * sc.dtype.itemsize if sc is not None else 0)
                      + n * ho * wo1 * cout_p * 4)

    return pl.pallas_call(
        kernel,
        grid=(n,),
        in_specs=in_specs,
        out_specs=pl.BlockSpec((1, ho, wo1, cout_p), lambda i: (i, 0, 0, 0)),
        out_shape=jax.ShapeDtypeStruct((n, ho, wo1, cout_p), jnp.float32),
        compiler_params=pltpu.CompilerParams(
            dimension_semantics=("parallel",)),       # v7x: shard batch over both TCs
        cost_estimate=pl.CostEstimate(
            flops=flops, transcendentals=0, bytes_accessed=bytes_accessed),
    )(*args)


# ------------------------------------------------------------ host wrapper --

def _pad_channels(x, cp):
    c = x.shape[-1]
    if c == cp:
        return x
    return jnp.pad(x, [(0, 0)] * (x.ndim - 1) + [(0, cp - c)])


def _bn_scale_shift(v, gamma, beta, cp):
    # Training-mode BatchNorm2d batch stats over (N, H, W), biased variance,
    # folded into per-channel scale/shift and zero-padded to 128 lanes.
    mean = jnp.mean(v, axis=(0, 1, 2))
    var = jnp.mean(jnp.square(v - mean), axis=(0, 1, 2))
    scale = gamma.reshape(-1) * jax.lax.rsqrt(var + EPS)
    shift = beta.reshape(-1) - mean * scale
    c = scale.shape[0]
    scale = jnp.pad(scale, (0, cp - c)).reshape(1, cp).astype(jnp.float32)
    shift = jnp.pad(shift, (0, cp - c)).reshape(1, cp).astype(jnp.float32)
    return scale, shift


def _pack_conv3x3_weight(w, cin_p, cout_p):
    # HWIO (3,3,Cin,Cout) -> im2col layout (9*Cin_p, Cout_p), zero-padded, bf16.
    kh, kw, cin, cout = w.shape
    wp = jnp.zeros((kh, kw, cin_p, cout_p), jnp.float32)
    wp = wp.at[:, :, :cin, :cout].set(w)
    return wp.reshape(kh * kw * cin_p, cout_p).astype(jnp.bfloat16)


def wide_basic_forward_nhwc(x, params, stride=1):
    """wide_basic forward on NHWC activations (keep NHWC across the net; the
    NCHW<->NHWC conversion belongs at the model boundary)."""
    n, h, w, in_planes = x.shape
    planes = params["w1"].shape[-1]
    conv_shortcut = (stride != 1) or (in_planes != planes)

    cin_p = _round_up(in_planes, LANE)
    cmid_p = _round_up(planes, LANE)
    cout_p = _round_up(planes, LANE)

    x = x.astype(jnp.float32)
    x_cp = _pad_channels(x, cin_p)

    # ---------------- pass A: o1 = conv1(relu(bn1(x))), stride 1 -------------
    scale1, shift1 = _bn_scale_shift(x, params["gamma1"], params["beta1"], cin_p)
    xa = jnp.pad(x_cp, ((0, 0), (1, 1), (1, 1), (0, 0)))
    w1c = _pack_conv3x3_weight(params["w1"], cin_p, cmid_p)
    b1p = _pad_channels(params["b1"].reshape(1, -1), cmid_p).astype(jnp.float32)
    o1 = _conv_pass(xa, scale1, shift1, w1c, b1p, None,
                    stride=1, ho=h, wo1=w, h_real=h, w_real=w,
                    sc_via_matmul=False)                        # (n, h, w, cmid_p)

    # ------- pass B: out = conv2(relu(bn2(o1))) + shortcut(x), stride s ------
    ho = (h - 1) // stride + 1
    scale2, shift2 = _bn_scale_shift(o1[..., :planes], params["gamma2"],
                                     params["beta2"], cmid_p)
    hp_b = max(h + 2, 2 + stride * ho)
    o1p = jnp.pad(o1, ((0, 0), (1, hp_b - h - 1), (1, 1), (0, 0)))
    w2c = _pack_conv3x3_weight(params["w2"], cmid_p, cout_p)
    b2p = _pad_channels(params["b2"].reshape(1, -1), cout_p).astype(jnp.float32)

    if conv_shortcut:
        # Fold the strided 1x1-conv shortcut into the same matmul as a 10th
        # lane-aligned K-slab (weights appended below the 9 conv2 taps).
        ws_p = jnp.zeros((cin_p, cout_p), jnp.float32)
        ws_p = ws_p.at[:in_planes, :planes].set(params["ws"])
        wb = jnp.concatenate([w2c, ws_p.astype(jnp.bfloat16)], axis=0)
        bb = b2p + _pad_channels(params["bs"].reshape(1, -1),
                                 cout_p).astype(jnp.float32)
        sc_via_matmul = True
    else:
        wb, bb, sc_via_matmul = w2c, b2p, False    # identity shortcut: plain f32 add

    hs = max(h, stride * ho)
    x_sc = jnp.pad(x_cp, ((0, 0), (0, hs - h), (0, 0), (0, 0)))
    out_full = _conv_pass(o1p, scale2, shift2, wb, bb, x_sc,
                          stride=stride, ho=ho, wo1=w, h_real=h, w_real=w,
                          sc_via_matmul=sc_via_matmul)          # (n, ho, w, cout_p)

    # W decimation (strided blocks only) + drop channel padding on the small
    # HBM output; the in-kernel store stays lane-dense (128 lanes).
    return out_full[:, :, ::stride, :planes]


@functools.partial(jax.jit, static_argnames=("stride",))
def wide_basic_forward(x_nchw, params, stride=1):
    # NCHW (PyTorch) boundary wrapper around the NHWC implementation.
    x = jnp.transpose(x_nchw, (0, 2, 3, 1))
    out = wide_basic_forward_nhwc(x, params, stride=stride)
    return jnp.transpose(out, (0, 3, 1, 2))


# --------------------------------------------------- params & JAX reference -

def init_params(key, in_planes, planes):
    ks = jax.random.split(key, 10)
    return {
        "gamma1": 1.0 + 0.1 * jax.random.normal(ks[0], (1, in_planes), jnp.float32),
        "beta1": 0.1 * jax.random.normal(ks[1], (1, in_planes), jnp.float32),
        "w1": 0.1 * jax.random.normal(ks[2], (3, 3, in_planes, planes), jnp.float32),
        "b1": 0.1 * jax.random.normal(ks[3], (1, planes), jnp.float32),
        "gamma2": 1.0 + 0.1 * jax.random.normal(ks[4], (1, planes), jnp.float32),
        "beta2": 0.1 * jax.random.normal(ks[5], (1, planes), jnp.float32),
        "w2": 0.1 * jax.random.normal(ks[6], (3, 3, planes, planes), jnp.float32),
        "b2": 0.1 * jax.random.normal(ks[7], (1, planes), jnp.float32),
        "ws": 0.1 * jax.random.normal(ks[8], (in_planes, planes), jnp.float32),
        "bs": 0.1 * jax.random.normal(ks[9], (1, planes), jnp.float32),
    }


def reference(x_nchw, params, stride=1):
    x = jnp.transpose(x_nchw, (0, 2, 3, 1)).astype(jnp.float32)
    in_planes, planes = x.shape[-1], params["w1"].shape[-1]

    def bn_relu(v, g, b):
        m = v.mean(axis=(0, 1, 2), keepdims=True)
        var = jnp.square(v - m).mean(axis=(0, 1, 2), keepdims=True)
        y = (v - m) / jnp.sqrt(var + EPS)
        return jnp.maximum(y * g.reshape(1, 1, 1, -1) + b.reshape(1, 1, 1, -1), 0.0)

    def conv(v, w, b, s, pad):
        y = jax.lax.conv_general_dilated(
            v, w, (s, s), ((pad, pad), (pad, pad)),
            dimension_numbers=("NHWC", "HWIO", "NHWC"),
            precision=jax.lax.Precision.HIGHEST)
        return y + b.reshape(1, 1, 1, -1)

    a1 = bn_relu(x, params["gamma1"], params["beta1"])
    o1 = conv(a1, params["w1"], params["b1"], 1, 1)
    a2 = bn_relu(o1, params["gamma2"], params["beta2"])
    o2 = conv(a2, params["w2"], params["b2"], stride, 1)
    if stride != 1 or in_planes != planes:
        ws = params["ws"].reshape(1, 1, in_planes, planes)
        sc = conv(x, ws, params["bs"], stride, 0)
    else:
        sc = x
    return jnp.transpose(o2 + sc, (0, 3, 1, 2))


# ------------------------------------------------------------------- main ---

if __name__ == "__main__":
    key = jax.random.PRNGKey(0)
    configs = [
        # (N, in_planes, planes, H, W, stride)
        (2, 4, 8, 16, 16, 1),   # channel expansion -> 1x1 conv shortcut
        (2, 8, 8, 16, 16, 1),   # identity shortcut
        (2, 4, 8, 16, 16, 2),   # strided block -> strided conv2 + strided shortcut
    ]
    for n, cin, cout, h, w, s in configs:
        key, kx, kp = jax.random.split(key, 3)
        x = jax.random.normal(kx, (n, cin, h, w), jnp.float32)  # NCHW, like PyTorch
        params = init_params(kp, cin, cout)

        out = jax.block_until_ready(wide_basic_forward(x, params, stride=s))
        ref = reference(x, params, stride=s)

        ho, wo = (h - 1) // s + 1, (w - 1) // s + 1
        assert out.shape == (n, cout, ho, wo), (out.shape, (n, cout, ho, wo))
        err = float(jnp.max(jnp.abs(out - ref)))
        # bf16 MXU operands (f32 accumulation) -> ~1e-2-level agreement expected.
        assert bool(jnp.allclose(out, ref, atol=5e-2, rtol=5e-2)), (
            f"mismatch vs reference (stride={s}, cin={cin}): max abs err {err}")

    print("KERNEL_OK")
</pallas_src>

<mosaic_0001>
module attributes {stable_mosaic.version = 11 : i64} {
  func.func @_conv_kernel(%arg0: i32, %arg1: memref<1x18x18x128xf32, #tpu.memory_space<vmem>>, %arg2: memref<1x128xf32, #tpu.memory_space<vmem>>, %arg3: memref<1x128xf32, #tpu.memory_space<vmem>>, %arg4: memref<1152x128xbf16, #tpu.memory_space<vmem>>, %arg5: memref<1x128xf32, #tpu.memory_space<vmem>>, %arg6: memref<1x16x16x128xf32, #tpu.memory_space<vmem>>) attributes {dimension_semantics = [#tpu.dimension_semantics<parallel>], iteration_bounds = array<i64: 2>, scalar_prefetch = 0 : i64, scratch_operands = 0 : i64, tpu.core_type = #tpu.core_type<tc>, window_params = [{transform_indices = @transform_0, window_bounds = array<i64: 1, 18, 18, 128>}, {pipeline_mode = #tpu.pipeline_mode<synchronous>, transform_indices = @transform_1, window_bounds = array<i64: 1, 128>}, {pipeline_mode = #tpu.pipeline_mode<synchronous>, transform_indices = @transform_2, window_bounds = array<i64: 1, 128>}, {pipeline_mode = #tpu.pipeline_mode<synchronous>, transform_indices = @transform_3, window_bounds = array<i64: 1152, 128>}, {pipeline_mode = #tpu.pipeline_mode<synchronous>, transform_indices = @transform_4, window_bounds = array<i64: 1, 128>}, {transform_indices = @transform_5, window_bounds = array<i64: 1, 16, 16, 128>}]} {
    %c0 = arith.constant 0 : index
    %c0_0 = arith.constant 0 : index
    %c0_1 = arith.constant 0 : index
    %c0_2 = arith.constant 0 : index
    %0 = vector.load %arg1[%c0, %c0_0, %c0_1, %c0_2] : memref<1x18x18x128xf32, #tpu.memory_space<vmem>>, vector<1x18x18x128xf32>
    %1 = vector.shape_cast %0 : vector<1x18x18x128xf32> to vector<18x18x128xf32>
    %c0_3 = arith.constant 0 : index
    %c0_4 = arith.constant 0 : index
    %2 = vector.load %arg2[%c0_3, %c0_4] : memref<1x128xf32, #tpu.memory_space<vmem>>, vector<1x128xf32>
    %3 = vector.shape_cast %2 : vector<1x128xf32> to vector<1x1x128xf32>
    %c0_5 = arith.constant 0 : index
    %c0_6 = arith.constant 0 : index
    %4 = vector.load %arg3[%c0_5, %c0_6] : memref<1x128xf32, #tpu.memory_space<vmem>>, vector<1x128xf32>
    %5 = vector.shape_cast %4 : vector<1x128xf32> to vector<1x1x128xf32>
    %6 = tpu.iota {dimensions = array<i32: 0>} : vector<18x18x128xi32>
    %7 = tpu.iota {dimensions = array<i32: 1>} : vector<18x18x128xi32>
    %c1_i32 = arith.constant 1 : i32
    %8 = vector.broadcast %c1_i32 : i32 to vector<18x18x128xi32>
    %9 = arith.cmpi sge, %6, %8 : vector<18x18x128xi32>
    %c16_i32 = arith.constant 16 : i32
    %10 = vector.broadcast %c16_i32 : i32 to vector<18x18x128xi32>
    %11 = arith.cmpi sle, %6, %10 : vector<18x18x128xi32>
    %12 = arith.andi %9, %11 : vector<18x18x128xi1>
    %c1_i32_7 = arith.constant 1 : i32
    %13 = vector.broadcast %c1_i32_7 : i32 to vector<18x18x128xi32>
    %14 = arith.cmpi sge, %7, %13 : vector<18x18x128xi32>
    %15 = arith.andi %12, %14 : vector<18x18x128xi1>
    %c16_i32_8 = arith.constant 16 : i32
    %16 = vector.broadcast %c16_i32_8 : i32 to vector<18x18x128xi32>
    %17 = arith.cmpi sle, %7, %16 : vector<18x18x128xi32>
    %18 = arith.andi %15, %17 : vector<18x18x128xi1>
    %19 = vector.broadcast %3 : vector<1x1x128xf32> to vector<18x18x128xf32>
    %20 = arith.mulf %1, %19 : vector<18x18x128xf32>
    %21 = vector.broadcast %5 : vector<1x1x128xf32> to vector<18x18x128xf32>
    %22 = arith.addf %20, %21 : vector<18x18x128xf32>
    %cst = arith.constant 0.000000e+00 : f32
    %23 = vector.broadcast %cst : f32 to vector<18x18x128xf32>
    %24 = arith.maximumf %22, %23 : vector<18x18x128xf32>
    %cst_9 = arith.constant 0.000000e+00 : f32
    %25 = vector.broadcast %cst_9 : f32 to vector<18x18x128xf32>
    %26 = arith.select %18, %24, %25 : vector<18x18x128xi1>, vector<18x18x128xf32>
    %27 = vector.extract_strided_slice %26 {offsets = [0, 0, 0], sizes = [16, 18, 128], strides = [1, 1, 1]} : vector<18x18x128xf32> to vector<16x18x128xf32>
    %28 = vector.extract_strided_slice %27 {offsets = [0, 0, 0], sizes = [16, 16, 128], strides = [1, 1, 1]} : vector<16x18x128xf32> to vector<16x16x128xf32>
    %29 = vector.shape_cast %28 : vector<16x16x128xf32> to vector<256x128xf32>
    %30 = arith.truncf %29 : vector<256x128xf32> to vector<256x128xbf16>
    %31 = vector.extract_strided_slice %27 {offsets = [0, 1, 0], sizes = [16, 16, 128], strides = [1, 1, 1]} : vector<16x18x128xf32> to vector<16x16x128xf32>
    %32 = vector.shape_cast %31 : vector<16x16x128xf32> to vector<256x128xf32>
    %33 = arith.truncf %32 : vector<256x128xf32> to vector<256x128xbf16>
    %34 = vector.extract_strided_slice %27 {offsets = [0, 2, 0], sizes = [16, 16, 128], strides = [1, 1, 1]} : vector<16x18x128xf32> to vector<16x16x128xf32>
    %35 = vector.shape_cast %34 : vector<16x16x128xf32> to vector<256x128xf32>
    %36 = arith.truncf %35 : vector<256x128xf32> to vector<256x128xbf16>
    %37 = vector.extract_strided_slice %26 {offsets = [1, 0, 0], sizes = [16, 18, 128], strides = [1, 1, 1]} : vector<18x18x128xf32> to vector<16x18x128xf32>
    %38 = vector.extract_strided_slice %37 {offsets = [0, 0, 0], sizes = [16, 16, 128], strides = [1, 1, 1]} : vector<16x18x128xf32> to vector<16x16x128xf32>
    %39 = vector.shape_cast %38 : vector<16x16x128xf32> to vector<256x128xf32>
    %40 = arith.truncf %39 : vector<256x128xf32> to vector<256x128xbf16>
    %41 = vector.extract_strided_slice %37 {offsets = [0, 1, 0], sizes = [16, 16, 128], strides = [1, 1, 1]} : vector<16x18x128xf32> to vector<16x16x128xf32>
    %42 = vector.shape_cast %41 : vector<16x16x128xf32> to vector<256x128xf32>
    %43 = arith.truncf %42 : vector<256x128xf32> to vector<256x128xbf16>
    %44 = vector.extract_strided_slice %37 {offsets = [0, 2, 0], sizes = [16, 16, 128], strides = [1, 1, 1]} : vector<16x18x128xf32> to vector<16x16x128xf32>
    %45 = vector.shape_cast %44 : vector<16x16x128xf32> to vector<256x128xf32>
    %46 = arith.truncf %45 : vector<256x128xf32> to vector<256x128xbf16>
    %47 = vector.extract_strided_slice %26 {offsets = [2, 0, 0], sizes = [16, 18, 128], strides = [1, 1, 1]} : vector<18x18x128xf32> to vector<16x18x128xf32>
    %48 = vector.extract_strided_slice %47 {offsets = [0, 0, 0], sizes = [16, 16, 128], strides = [1, 1, 1]} : vector<16x18x128xf32> to vector<16x16x128xf32>
    %49 = vector.shape_cast %48 : vector<16x16x128xf32> to vector<256x128xf32>
    %50 = arith.truncf %49 : vector<256x128xf32> to vector<256x128xbf16>
    %51 = vector.extract_strided_slice %47 {offsets = [0, 1, 0], sizes = [16, 16, 128], strides = [1, 1, 1]} : vector<16x18x128xf32> to vector<16x16x128xf32>
    %52 = vector.shape_cast %51 : vector<16x16x128xf32> to vector<256x128xf32>
    %53 = arith.truncf %52 : vector<256x128xf32> to vector<256x128xbf16>
    %54 = vector.extract_strided_slice %47 {offsets = [0, 2, 0], sizes = [16, 16, 128], strides = [1, 1, 1]} : vector<16x18x128xf32> to vector<16x16x128xf32>
    %55 = vector.shape_cast %54 : vector<16x16x128xf32> to vector<256x128xf32>
    %56 = arith.truncf %55 : vector<256x128xf32> to vector<256x128xbf16>
    %57 = tpu.concatenate %30, %33, %36, %40, %43, %46, %50, %53, %56 in 1 : vector<256x128xbf16>, vector<256x128xbf16>, vector<256x128xbf16>, vector<256x128xbf16>, vector<256x128xbf16>, vector<256x128xbf16>, vector<256x128xbf16>, vector<256x128xbf16>, vector<256x128xbf16> -> vector<256x1152xbf16>
    %c0_10 = arith.constant 0 : index
    %c0_11 = arith.constant 0 : index
    %58 = vector.load %arg4[%c0_10, %c0_11] : memref<1152x128xbf16, #tpu.memory_space<vmem>>, vector<1152x128xbf16>
    %cst_12 = arith.constant dense<0.000000e+00> : vector<256x128xf32>
    %59 = tpu.matmul %57, %58, %cst_12 {dimension_numbers = #tpu.dot_dimension_numbers<[1], [0], [0], [1], [0, 0, 1, 1], [], []>} : vector<256x1152xbf16>, vector<1152x128xbf16>, vector<256x128xf32> -> vector<256x128xf32>
    %c0_13 = arith.constant 0 : index
    %c0_14 = arith.constant 0 : index
    %60 = vector.load %arg5[%c0_13, %c0_14] : memref<1x128xf32, #tpu.memory_space<vmem>>, vector<1x128xf32>
    %61 = vector.broadcast %60 : vector<1x128xf32> to vector<256x128xf32>
    %62 = arith.addf %59, %61 : vector<256x128xf32>
    %63 = vector.shape_cast %62 : vector<256x128xf32> to vector<1x16x16x128xf32>
    %c0_15 = arith.constant 0 : index
    %c0_16 = arith.constant 0 : index
    %c0_17 = arith.constant 0 : index
    %c0_18 = arith.constant 0 : index
    %64 = vector.load %arg6[%c0_15, %c0_16, %c0_17, %c0_18] : memref<1x16x16x128xf32, #tpu.memory_space<vmem>>, vector<1x16x16x128xf32>
    tpu.vector_store %arg6[%c0_15, %c0_16, %c0_17, %c0_18], %63 {strides = array<i32>} : memref<1x16x16x128xf32, #tpu.memory_space<vmem>>, vector<1x16x16x128xf32>,
    return
  }
  func.func @transform_0(%arg0: i32) -> (i32, i32, i32, i32) {
    %c0_i32 = arith.constant 0 : i32
    %c0_i32_0 = arith.constant 0 : i32
    %c0_i32_1 = arith.constant 0 : i32
    %c0_i32_2 = arith.constant 0 : i32
    return %arg0, %c0_i32, %c0_i32_0, %c0_i32_1 : i32, i32, i32, i32
  }
  func.func @transform_1(%arg0: i32) -> (i32, i32) {
    %c0_i32 = arith.constant 0 : i32
    %c0_i32_0 = arith.constant 0 : i32
    %c0_i32_1 = arith.constant 0 : i32
    return %c0_i32, %c0_i32_0 : i32, i32
  }
  func.func @transform_2(%arg0: i32) -> (i32, i32) {
    %c0_i32 = arith.constant 0 : i32
    %c0_i32_0 = arith.constant 0 : i32
    %c0_i32_1 = arith.constant 0 : i32
    return %c0_i32, %c0_i32_0 : i32, i32
  }
  func.func @transform_3(%arg0: i32) -> (i32, i32) {
    %c0_i32 = arith.constant 0 : i32
    %c0_i32_0 = arith.constant 0 : i32
    %c0_i32_1 = arith.constant 0 : i32
    return %c0_i32, %c0_i32_0 : i32, i32
  }
  func.func @transform_4(%arg0: i32) -> (i32, i32) {
    %c0_i32 = arith.constant 0 : i32
    %c0_i32_0 = arith.constant 0 : i32
    %c0_i32_1 = arith.constant 0 : i32
    return %c0_i32, %c0_i32_0 : i32, i32
  }
  func.func @transform_5(%arg0: i32) -> (i32, i32, i32, i32) {
    %c0_i32 = arith.constant 0 : i32
    %c0_i32_0 = arith.constant 0 : i32
    %c0_i32_1 = arith.constant 0 : i32
    %c0_i32_2 = arith.constant 0 : i32
    return %arg0, %c0_i32, %c0_i32_0, %c0_i32_1 : i32, i32, i32, i32
  }
}

module attributes {stable_mosaic.version = 11 : i64} {
  func.func @_conv_kernel(%arg0: i32, %arg1: memref<1x18x18x128xf32, #tpu.memory_space<vmem>>, %arg2: memref<1x128xf32, #tpu.memory_space<vmem>>, %arg3: memref<1x128xf32, #tpu.memory_space<vmem>>, %arg4: memref<1280x128xbf16, #tpu.memory_space<vmem>>, %arg5: memref<1x128xf32, #tpu.memory_space<vmem>>, %arg6: memref<1x16x16x128xf32, #tpu.memory_space<vmem>>, %arg7: memref<1x16x16x128xf32, #tpu.memory_space<vmem>>) attributes {dimension_semantics = [#tpu.dimension_semantics<parallel>], iteration_bounds = array<i64: 2>, scalar_prefetch = 0 : i64, scratch_operands = 0 : i64, tpu.core_type = #tpu.core_type<tc>, window_params = [{transform_indices = @transform_0, window_bounds = array<i64: 1, 18, 18, 128>}, {pipeline_mode = #tpu.pipeline_mode<synchronous>, transform_indices = @transform_1, window_bounds = array<i64: 1, 128>}, {pipeline_mode = #tpu.pipeline_mode<synchronous>, transform_indices = @transform_2, window_bounds = array<i64: 1, 128>}, {pipeline_mode = #tpu.pipeline_mode<synchronous>, transform_indices = @transform_3, window_bounds = array<i64: 1280, 128>}, {pipeline_mode = #tpu.pipeline_mode<synchronous>, transform_indices = @transform_4, window_bounds = array<i64: 1, 128>}, {transform_indices = @transform_5, window_bounds = array<i64: 1, 16, 16, 128>}, {transform_indices = @transform_6, window_bounds = array<i64: 1, 16, 16, 128>}]} {
    %c0 = arith.constant 0 : index
    %c0_0 = arith.constant 0 : index
    %c0_1 = arith.constant 0 : index
    %c0_2 = arith.constant 0 : index
    %0 = vector.load %arg1[%c0, %c0_0, %c0_1, %c0_2] : memref<1x18x18x128xf32, #tpu.memory_space<vmem>>, vector<1x18x18x128xf32>
    %1 = vector.shape_cast %0 : vector<1x18x18x128xf32> to vector<18x18x128xf32>
    %c0_3 = arith.constant 0 : index
    %c0_4 = arith.constant 0 : index
    %2 = vector.load %arg2[%c0_3, %c0_4] : memref<1x128xf32, #tpu.memory_space<vmem>>, vector<1x128xf32>
    %3 = vector.shape_cast %2 : vector<1x128xf32> to vector<1x1x128xf32>
    %c0_5 = arith.constant 0 : index
    %c0_6 = arith.constant 0 : index
    %4 = vector.load %arg3[%c0_5, %c0_6] : memref<1x128xf32, #tpu.memory_space<vmem>>, vector<1x128xf32>
    %5 = vector.shape_cast %4 : vector<1x128xf32> to vector<1x1x128xf32>
    %6 = tpu.iota {dimensions = array<i32: 0>} : vector<18x18x128xi32>
    %7 = tpu.iota {dimensions = array<i32: 1>} : vector<18x18x128xi32>
    %c1_i32 = arith.constant 1 : i32
    %8 = vector.broadcast %c1_i32 : i32 to vector<18x18x128xi32>
    %9 = arith.cmpi sge, %6, %8 : vector<18x18x128xi32>
    %c16_i32 = arith.constant 16 : i32
    %10 = vector.broadcast %c16_i32 : i32 to vector<18x18x128xi32>
    %11 = arith.cmpi sle, %6, %10 : vector<18x18x128xi32>
    %12 = arith.andi %9, %11 : vector<18x18x128xi1>
    %c1_i32_7 = arith.constant 1 : i32
    %13 = vector.broadcast %c1_i32_7 : i32 to vector<18x18x128xi32>
    %14 = arith.cmpi sge, %7, %13 : vector<18x18x128xi32>
    %15 = arith.andi %12, %14 : vector<18x18x128xi1>
    %c16_i32_8 = arith.constant 16 : i32
    %16 = vector.broadcast %c16_i32_8 : i32 to vector<18x18x128xi32>
    %17 = arith.cmpi sle, %7, %16 : vector<18x18x128xi32>
    %18 = arith.andi %15, %17 : vector<18x18x128xi1>
    %19 = vector.broadcast %3 : vector<1x1x128xf32> to vector<18x18x128xf32>
    %20 = arith.mulf %1, %19 : vector<18x18x128xf32>
    %21 = vector.broadcast %5 : vector<1x1x128xf32> to vector<18x18x128xf32>
    %22 = arith.addf %20, %21 : vector<18x18x128xf32>
    %cst = arith.constant 0.000000e+00 : f32
    %23 = vector.broadcast %cst : f32 to vector<18x18x128xf32>
    %24 = arith.maximumf %22, %23 : vector<18x18x128xf32>
    %cst_9 = arith.constant 0.000000e+00 : f32
    %25 = vector.broadcast %cst_9 : f32 to vector<18x18x128xf32>
    %26 = arith.select %18, %24, %25 : vector<18x18x128xi1>, vector<18x18x128xf32>
    %27 = vector.extract_strided_slice %26 {offsets = [0, 0, 0], sizes = [16, 18, 128], strides = [1, 1, 1]} : vector<18x18x128xf32> to vector<16x18x128xf32>
    %28 = vector.extract_strided_slice %27 {offsets = [0, 0, 0], sizes = [16, 16, 128], strides = [1, 1, 1]} : vector<16x18x128xf32> to vector<16x16x128xf32>
    %29 = vector.shape_cast %28 : vector<16x16x128xf32> to vector<256x128xf32>
    %30 = arith.truncf %29 : vector<256x128xf32> to vector<256x128xbf16>
    %31 = vector.extract_strided_slice %27 {offsets = [0, 1, 0], sizes = [16, 16, 128], strides = [1, 1, 1]} : vector<16x18x128xf32> to vector<16x16x128xf32>
    %32 = vector.shape_cast %31 : vector<16x16x128xf32> to vector<256x128xf32>
    %33 = arith.truncf %32 : vector<256x128xf32> to vector<256x128xbf16>
    %34 = vector.extract_strided_slice %27 {offsets = [0, 2, 0], sizes = [16, 16, 128], strides = [1, 1, 1]} : vector<16x18x128xf32> to vector<16x16x128xf32>
    %35 = vector.shape_cast %34 : vector<16x16x128xf32> to vector<256x128xf32>
    %36 = arith.truncf %35 : vector<256x128xf32> to vector<256x128xbf16>
    %37 = vector.extract_strided_slice %26 {offsets = [1, 0, 0], sizes = [16, 18, 128], strides = [1, 1, 1]} : vector<18x18x128xf32> to vector<16x18x128xf32>
    %38 = vector.extract_strided_slice %37 {offsets = [0, 0, 0], sizes = [16, 16, 128], strides = [1, 1, 1]} : vector<16x18x128xf32> to vector<16x16x128xf32>
    %39 = vector.shape_cast %38 : vector<16x16x128xf32> to vector<256x128xf32>
    %40 = arith.truncf %39 : vector<256x128xf32> to vector<256x128xbf16>
    %41 = vector.extract_strided_slice %37 {offsets = [0, 1, 0], sizes = [16, 16, 128], strides = [1, 1, 1]} : vector<16x18x128xf32> to vector<16x16x128xf32>
    %42 = vector.shape_cast %41 : vector<16x16x128xf32> to vector<256x128xf32>
    %43 = arith.truncf %42 : vector<256x128xf32> to vector<256x128xbf16>
    %44 = vector.extract_strided_slice %37 {offsets = [0, 2, 0], sizes = [16, 16, 128], strides = [1, 1, 1]} : vector<16x18x128xf32> to vector<16x16x128xf32>
    %45 = vector.shape_cast %44 : vector<16x16x128xf32> to vector<256x128xf32>
    %46 = arith.truncf %45 : vector<256x128xf32> to vector<256x128xbf16>
    %47 = vector.extract_strided_slice %26 {offsets = [2, 0, 0], sizes = [16, 18, 128], strides = [1, 1, 1]} : vector<18x18x128xf32> to vector<16x18x128xf32>
    %48 = vector.extract_strided_slice %47 {offsets = [0, 0, 0], sizes = [16, 16, 128], strides = [1, 1, 1]} : vector<16x18x128xf32> to vector<16x16x128xf32>
    %49 = vector.shape_cast %48 : vector<16x16x128xf32> to vector<256x128xf32>
    %50 = arith.truncf %49 : vector<256x128xf32> to vector<256x128xbf16>
    %51 = vector.extract_strided_slice %47 {offsets = [0, 1, 0], sizes = [16, 16, 128], strides = [1, 1, 1]} : vector<16x18x128xf32> to vector<16x16x128xf32>
    %52 = vector.shape_cast %51 : vector<16x16x128xf32> to vector<256x128xf32>
    %53 = arith.truncf %52 : vector<256x128xf32> to vector<256x128xbf16>
    %54 = vector.extract_strided_slice %47 {offsets = [0, 2, 0], sizes = [16, 16, 128], strides = [1, 1, 1]} : vector<16x18x128xf32> to vector<16x16x128xf32>
    %55 = vector.shape_cast %54 : vector<16x16x128xf32> to vector<256x128xf32>
    %56 = arith.truncf %55 : vector<256x128xf32> to vector<256x128xbf16>
    %c0_10 = arith.constant 0 : index
    %c0_11 = arith.constant 0 : index
    %c0_12 = arith.constant 0 : index
    %c0_13 = arith.constant 0 : index
    %57 = vector.load %arg6[%c0_10, %c0_11, %c0_12, %c0_13] : memref<1x16x16x128xf32, #tpu.memory_space<vmem>>, vector<1x16x16x128xf32>
    %58 = vector.shape_cast %57 : vector<1x16x16x128xf32> to vector<16x16x128xf32>
    %59 = vector.shape_cast %58 : vector<16x16x128xf32> to vector<256x128xf32>
    %60 = arith.truncf %59 : vector<256x128xf32> to vector<256x128xbf16>
    %61 = tpu.concatenate %30, %33, %36, %40, %43, %46, %50, %53, %56, %60 in 1 : vector<256x128xbf16>, vector<256x128xbf16>, vector<256x128xbf16>, vector<256x128xbf16>, vector<256x128xbf16>, vector<256x128xbf16>, vector<256x128xbf16>, vector<256x128xbf16>, vector<256x128xbf16>, vector<256x128xbf16> -> vector<256x1280xbf16>
    %c0_14 = arith.constant 0 : index
    %c0_15 = arith.constant 0 : index
    %62 = vector.load %arg4[%c0_14, %c0_15] : memref<1280x128xbf16, #tpu.memory_space<vmem>>, vector<1280x128xbf16>
    %cst_16 = arith.constant dense<0.000000e+00> : vector<256x128xf32>
    %63 = tpu.matmul %61, %62, %cst_16 {dimension_numbers = #tpu.dot_dimension_numbers<[1], [0], [0], [1], [0, 0, 1, 1], [], []>} : vector<256x1280xbf16>, vector<1280x128xbf16>, vector<256x128xf32> -> vector<256x128xf32>
    %c0_17 = arith.constant 0 : index
    %c0_18 = arith.constant 0 : index
    %64 = vector.load %arg5[%c0_17, %c0_18] : memref<1x128xf32, #tpu.memory_space<vmem>>, vector<1x128xf32>
    %65 = vector.broadcast %64 : vector<1x128xf32> to vector<256x128xf32>
    %66 = arith.addf %63, %65 : vector<256x128xf32>
    %67 = vector.shape_cast %66 : vector<256x128xf32> to vector<1x16x16x128xf32>
    %c0_19 = arith.constant 0 : index
    %c0_20 = arith.constant 0 : index
    %c0_21 = arith.constant 0 : index
    %c0_22 = arith.constant 0 : index
    %68 = vector.load %arg7[%c0_19, %c0_20, %c0_21, %c0_22] : memref<1x16x16x128xf32, #tpu.memory_space<vmem>>, vector<1x16x16x128xf32>
    tpu.vector_store %arg7[%c0_19, %c0_20, %c0_21, %c0_22], %67 {strides = array<i32>} : memref<1x16x16x128xf32, #tpu.memory_space<vmem>>, vector<1x16x16x128xf32>,
    return
  }
  func.func @transform_0(%arg0: i32) -> (i32, i32, i32, i32) {
    %c0_i32 = arith.constant 0 : i32
    %c0_i32_0 = arith.constant 0 : i32
    %c0_i32_1 = arith.constant 0 : i32
    %c0_i32_2 = arith.constant 0 : i32
    return %arg0, %c0_i32, %c0_i32_0, %c0_i32_1 : i32, i32, i32, i32
  }
  func.func @transform_1(%arg0: i32) -> (i32, i32) {
    %c0_i32 = arith.constant 0 : i32
    %c0_i32_0 = arith.constant 0 : i32
    %c0_i32_1 = arith.constant 0 : i32
    return %c0_i32, %c0_i32_0 : i32, i32
  }
  func.func @transform_2(%arg0: i32) -> (i32, i32) {
    %c0_i32 = arith.constant 0 : i32
    %c0_i32_0 = arith.constant 0 : i32
    %c0_i32_1 = arith.constant 0 : i32
    return %c0_i32, %c0_i32_0 : i32, i32
  }
  func.func @transform_3(%arg0: i32) -> (i32, i32) {
    %c0_i32 = arith.constant 0 : i32
    %c0_i32_0 = arith.constant 0 : i32
    %c0_i32_1 = arith.constant 0 : i32
    return %c0_i32, %c0_i32_0 : i32, i32
  }
  func.func @transform_4(%arg0: i32) -> (i32, i32) {
    %c0_i32 = arith.constant 0 : i32
    %c0_i32_0 = arith.constant 0 : i32
    %c0_i32_1 = arith.constant 0 : i32
    return %c0_i32, %c0_i32_0 : i32, i32
  }
  func.func @transform_5(%arg0: i32) -> (i32, i32, i32, i32) {
    %c0_i32 = arith.constant 0 : i32
    %c0_i32_0 = arith.constant 0 : i32
    %c0_i32_1 = arith.constant 0 : i32
    %c0_i32_2 = arith.constant 0 : i32
    return %arg0, %c0_i32, %c0_i32_0, %c0_i32_1 : i32, i32, i32, i32
  }
  func.func @transform_6(%arg0: i32) -> (i32, i32, i32, i32) {
    %c0_i32 = arith.constant 0 : i32
    %c0_i32_0 = arith.constant 0 : i32
    %c0_i32_1 = arith.constant 0 : i32
    %c0_i32_2 = arith.constant 0 : i32
    return %arg0, %c0_i32, %c0_i32_0, %c0_i32_1 : i32, i32, i32, i32
  }
}

</mosaic_0001>

<bundles_post_ra>
// kernel: wide_basic_forward.2
= control target key start
LH: loop header
LB: loop body
LE: loop exit
PB: predicated region body
PF: predicated region fallthrough
CT: control target
= control target key end

     0   :  { %s3256_s18 = smov 0   ;;  %s4799_s0 = inlined_call_operand.vmem [shape: f32[2,18,18,128], index: 0, kind: input, shape index: {}]   ;;  %s4800_s1 = inlined_call_operand.vmem [shape: f32[1,128], index: 1, kind: input, shape index: {}]   ;;  %s4801_s2 = inlined_call_operand.vmem [shape: f32[1,128], index: 2, kind: input, shape index: {}]   ;;  %s4802_s3 = inlined_call_operand.vmem [shape: bf16[1152,128], index: 3, kind: input, shape index: {}]   ;;  %s4803_s4 = inlined_call_operand.vmem [shape: f32[1,128], index: 4, kind: input, shape index: {}]   ;;  %s4804_s5 = inlined_call_operand.vmem [shape: f32[2,16,16,128], index: 5, kind: output, shape index: {}]  }
   0x1 LB: > { %s2369_s19 = sadd.s32 4294967295, %s3221_s18   ;;  %p2373_p0 = scmp.ge.s32.totalorder %s3221_s18, 1  ;;  %s3221_s18 = sphi %s3256_s18, %s15_s18  }
   0x2   : > { %p187_p1 = scmp.lt.s32.totalorder %s3221_s18, 3 }
   0x4   : > { %p188_p2 = pnand %p2373_p0, %p187_p1 }
   0x6   : > { %191 = sbr.rel (%p188_p2) target bundleno = 548 (0x224), region = 40 }
   0xd   : > { %v3141_v0 = vld [vmem:[%s4802_s3 + $0x40] sm:$0xff]   ;;  %v3223_v2 = vmov 0.0   ;;  %v3143_v4 = vld [vmem:[%s4802_s3 + $0x48] sm:$0xff]   ;;  %p215_p3 = scmp.lt.s32.totalorder %s2369_s19, 1  ;;  %v3145_v7 = vld [vmem:[%s4802_s3 + $0x50] sm:$0xff]   ;;  %v282_v10 = vlaneseq  ;;  %vm596_vm2 = vcmask 1046528  }
   0xe   : > { %v3142_v1 = vld [vmem:[%s4802_s3] sm:$0xff]   ;;  %v597_v3 = vrot.slane %v3223_v2, 1  ;;  %2593 = vmatprep.subr.bf16.mxu0 %v3141_v0  ;;  %3113 = vmatprep.subr.bf16.mxu1 %v3141_v0  ;;  %v3144_v5 = vld [vmem:[%s4802_s3 + $0x8] sm:$0xff]   ;;  %v3146_v8 = vld [vmem:[%s4802_s3 + $0x10] sm:$0xff]   ;;  %vm3224_vm3 = vmmov 1   ;;  %vm725_vm5 = vcmask 1045504  }
   0xf   : > { %2594 = vmatpush3.bf16.msra.mxu0 %v3142_v1  ;;  %3121 = vmatpush3.bf16.msra.mxu1 %v3142_v1  ;;  %s4893_s19 = smov (!%p215_p3, %s2369_s19), 1  ;;  %v3147_v9 = vld [vmem:[%s4802_s3 + $0x58] sm:$0xff]   ;;  %v3149_v12 = vld [vmem:[%s4802_s3 + $0x60] sm:$0xff]   ;;  %v3303_v13 = vshrl.u32 %v282_v10, 7  ;;  %v3151_v15 = vld [vmem:[%s4802_s3 + $0x68] sm:$0xff]  }
  0x10   : > { %v3277_v6 = vpack.c.bf16 %v597_v3, %v597_v3  ;;  %2595 = vmatprep.subr.bf16.mxu0 %v3143_v4  ;;  %3114 = vmatprep.subr.bf16.mxu1 %v3143_v4  ;;  %s3129_s9 = smul.u32 432, %s4893_s19  ;;  %v3148_v11 = vld [vmem:[%s4802_s3 + $0x18] sm:$0xff]   ;;  %v3150_v14 = vld [vmem:[%s4802_s3 + $0x20] sm:$0xff]   ;;  %v3152_v25 = vld [vmem:[%s4802_s3 + $0x28] sm:$0xff]   ;;  %s2592_s22 = sshll.u32 %s4893_s19, 8 }
  0x11   : > { %v3317_v19 = vld [vmem:[%s4800_s1] ss:$0 sm:$0xff]  ;;  %v3325_v21 = vadd.s32 16, %v3303_v13  ;;  %v3153_v26 = vld [vmem:[%s4802_s3 + $0x70] sm:$0xff]   ;;  %vm286_vm0 = vcmp.ge.s32.totalorder %v3303_v13, 1  ;;  %v3155_v34 = vld [vmem:[%s4802_s3 + $0x78] sm:$0xff]   ;;  %s4724_s25 = scalar_lea.vmem %s4804_s5, %s2592_s22 }
  0x12   : > { %4841 = vst [vmem:[#allocation2_spill] sm:$0xff] %v3277_v6  ;;  %1509 = vmatprep.mubr.bf16.mxu0 %v3277_v6  ;;  %s3301_s16 = scalar_lea.vmem %s4799_s0, %s3129_s9  ;;  %v3322_v20 = vld [vmem:[%s4801_s2] ss:$0 sm:$0xff]  ;;  %v3154_v30 = vld [vmem:[%s4802_s3 + $0x30] sm:$0xff]   ;;  %v3156_v40 = vld [vmem:[%s4802_s3 + $0x38] sm:$0xff]  }
  0x13   : > { %2596 = vmatpush3.bf16.msra.mxu0 %v3144_v5  ;;  %3122 = vmatpush3.bf16.msra.mxu1 %v3144_v5  ;;  %v262_v16 = vld [vmem:[%s3301_s16 + $0x120] sm:$0xff]  ;;  %v263_v17 = vld [vmem:[%s3301_s16 + $0x128] sm:$0xff]  ;;  %v264_v18 = vld [vmem:[%s3301_s16 + $0x130] sm:$0x3]  ;;  %vm297_vm1 = vcmp.le.s32.totalorder %v3325_v21, 16 }
  0x14   : > { %2597 = vmatprep.subr.bf16.mxu0 %v3145_v7  ;;  %3115 = vmatprep.subr.bf16.mxu1 %v3145_v7  ;;  %v346_v22 = vmul.f32 %v3317_v19, %v262_v16  ;;  %v347_v23 = vmul.f32 %v3317_v19, %v263_v17  ;;  %v348_v24 = vmul.f32 %v3317_v19, %v264_v18  ;;  %v229_v38 = vld [vmem:[%s3301_s16 + $0x18] sm:$0xff]  ;;  %v230_v39 = vld [vmem:[%s3301_s16 + $0x20] sm:$0xff]  ;;  %v231_v43 = vld [vmem:[%s3301_s16 + $0x28] sm:$0x3] }
  0x15   : > { %v313_v44 = vmul.f32 %v3317_v19, %v229_v38  ;;  %v314_v45 = vmul.f32 %v3317_v19, %v230_v39  ;;  %v265_v46 = vld [vmem:[%s3301_s16 + $0x138] sm:$0xff]  ;;  %v266_v47 = vld [vmem:[%s3301_s16 + $0x140] sm:$0xff]  ;;  %v315_v48 = vmul.f32 %v3317_v19, %v231_v43  ;;  %v267_v49 = vld [vmem:[%s3301_s16 + $0x148] sm:$0x3] }
  0x16   : > { %v406_v27 = vadd.f32 %v3322_v20, %v346_v22  ;;  %v407_v28 = vadd.f32 %v3322_v20, %v347_v23  ;;  %v408_v29 = vadd.f32 %v3322_v20, %v348_v24  ;;  %v349_v50 = vmul.f32 %v3317_v19, %v265_v46  ;;  %v3157_v54 = vld [vmem:[%s4802_s3 + $0xc0] sm:$0xff]   ;;  %vm3392_vm4 = vmpackc.low %vm3224_vm3, %vm286_vm0  ;;  %v3159_v4 = vld [vmem:[%s4802_s3 + $0xc8] sm:$0xff]  }
  0x17   : > { %2598 = vmatpush3.bf16.msra.mxu0 %v3146_v8  ;;  %3123 = vmatpush3.bf16.msra.mxu1 %v3146_v8  ;;  %v350_v51 = vmul.f32 %v3317_v19, %v266_v47  ;;  %v373_v55 = vadd.f32 %v3322_v20, %v313_v44  ;;  %v3160_v57 = vld [vmem:[%s4802_s3 + $0x140] sm:$0xff]   ;;  %v374_v58 = vadd.f32 %v3322_v20, %v314_v45  ;;  %v268_v23 = vld [vmem:[%s3301_s16 + $0x150] sm:$0xff]  ;;  %v3161_v24 = vld [vmem:[%s4802_s3 + $0x88] sm:$0xff]  }
  0x18   : > { %2599 = vmatprep.subr.bf16.mxu0 %v3147_v9  ;;  %3116 = vmatprep.subr.bf16.mxu1 %v3147_v9  ;;  %v460_v31 = vmax.f32 %v406_v27, 0.0  ;;  %v3344_v32 = vmax.f32 %v407_v28, 0.0  ;;  %v462_v33 = vmax.f32 %v408_v29, 0.0  ;;  %v375_v59 = vadd.f32 %v3322_v20, %v315_v48  ;;  %v3158_v3 = vld [vmem:[%s4802_s3 + $0x80] sm:$0xff]   ;;  %v269_v38 = vld [vmem:[%s3301_s16 + $0x158] sm:$0xff]  ;;  %v3168_v43 = vld [vmem:[%s4802_s3 + $0x148] sm:$0xff]  }
  0x19   : > { %v427_v60 = vmax.f32 %v373_v55, 0.0  ;;  %v351_v61 = vmul.f32 %v3317_v19, %v267_v49  ;;  %v409_v62 = vadd.f32 %v3322_v20, %v349_v50  ;;  %v410_v63 = vadd.f32 %v3322_v20, %v350_v51  ;;  %v3162_v8 = vld [vmem:[%s4802_s3 + $0x100] sm:$0xff]   ;;  %v3163_v47 = vld [vmem:[%s4802_s3 + $0xd0] sm:$0xff]  }
  0x1a   : > { %v3351_v35 = vsel %vm286_vm0, %v460_v31, 0.0  ;;  %v3355_v36 = vsel %vm297_vm1, %v462_v33, 0.0  ;;  %v658_v37 = vrot.slane %v3344_v32, 1  ;;  %v3398_v1 = vpack.c.bf16 %v3344_v32, %v460_v31  ;;  %v234_v22 = vld [vmem:[%s3301_s16 + $0x40] sm:$0x3] }
  0x1b   : > { %2600 = vmatpush3.bf16.msra.mxu0 %v3148_v11  ;;  %3124 = vmatpush3.bf16.msra.mxu1 %v3148_v11  ;;  %v657_v41 = vrot.slane %v3351_v35, 1  ;;  %v660_v42 = vrot.slane %v3355_v36, 1  ;;  %v3406_v5 = vmax.f32 %v374_v58, 0.0  ;;  %v429_v7 = vmax.f32 %v375_v59, 0.0  ;;  %v270_v29 = vld [vmem:[%s3301_s16 + $0x160] sm:$0x3] }
  0x1c   : > { %2601 = vmatprep.subr.bf16.mxu0 %v3149_v12  ;;  %3117 = vmatprep.subr.bf16.mxu1 %v3149_v12  ;;  %v3413_v9 = vsel %vm286_vm0, %v427_v60, 0.0  ;;  %v411_v10 = vadd.f32 %v3322_v20, %v351_v61  ;;  %v463_v11 = vmax.f32 %v409_v62, 0.0  ;;  %v3416_v12 = vmax.f32 %v410_v63, 0.0  ;;  %v3180_v6 = vld [vmem:[%s4802_s3 + $0x180] sm:$0xff]  }
  0x1d   : > { %v659_v52 = vsel %vm596_vm2, %v657_v41, %v658_v37  ;;  %v661_v53 = vsel %vm596_vm2, %v658_v37, %v660_v42  ;;  %v3422_v16 = vsel %vm297_vm1, %v429_v7, 0.0  ;;  %v602_v17 = vrot.slane %v3413_v9, 1 }
  0x1e   : > { %v3380_v56 = vpack.c.bf16 %v661_v53, %v659_v52  ;;  %4845 = vst [vmem:[#allocation4_spill] sm:$0xff] %v3416_v12  ;;  %v603_v18 = vrot.slane %v3406_v5, 1  ;;  %v3434_v27 = vsel %vm286_vm0, %v463_v11, 0.0  ;;  %v663_v28 = vrot.slane %v3416_v12, 1  ;;  %v3170_v53 = vld [vmem:[%s4802_s3 + $0x108] sm:$0xff]  }
  0x1f   : > { %2602 = vmatpush3.bf16.msra.mxu0 %v3150_v14  ;;  %3125 = vmatpush3.bf16.msra.mxu1 %v3150_v14  ;;  %v232_v14 = vld [vmem:[%s3301_s16 + $0x30] sm:$0xff]  ;;  %4846 = vst [vmem:[#allocation5_spill] sm:$0xff] %v3434_v27  ;;  %v662_v33 = vrot.slane %v3434_v27, 1  ;;  %v318_v42 = vmul.f32 %v3317_v19, %v234_v22  ;;  %v352_v51 = vmul.f32 %v3317_v19, %v268_v23 }
  0x20   : > { %2603 = vmatprep.subr.bf16.mxu0 %v3151_v15  ;;  %3118 = vmatprep.subr.bf16.mxu1 %v3151_v15  ;;  %4842 = vst [vmem:[#allocation3_spill] sm:$0xff] %v3380_v56  ;;  %v233_v15 = vld [vmem:[%s3301_s16 + $0x38] sm:$0xff]  ;;  %v604_v31 = vsel %vm596_vm2, %v602_v17, %v603_v18  ;;  %v316_v37 = vmul.f32 %v3317_v19, %v232_v14 }
  0x21   : > { %1605 = vmatprep.mubr.bf16.mxu1 %v3380_v56  ;;  %v317_v41 = vmul.f32 %v3317_v19, %v233_v15  ;;  %v664_v45 = vsel %vm596_vm2, %v662_v33, %v663_v28  ;;  %v378_v50 = vadd.f32 %v3322_v20, %v318_v42  ;;  %v353_v52 = vmul.f32 %v3317_v19, %v269_v38  ;;  %v237_v14 = vld [vmem:[%s3301_s16 + $0x58] sm:$0x3]  ;;  %v271_v33 = vld [vmem:[%s3301_s16 + $0x168] sm:$0xff] }
  0x22   : > { %v376_v48 = vadd.f32 %v3322_v20, %v316_v37  ;;  %v3477_v55 = vpack.c.bf16 %v3416_v12, %v463_v11  ;;  %v354_v58 = vmul.f32 %v3317_v19, %v270_v29  ;;  %v412_v63 = vadd.f32 %v3322_v20, %v352_v51  ;;  %v236_v11 = vld [vmem:[%s3301_s16 + $0x50] sm:$0xff]  ;;  %v3166_v17 = vld [vmem:[%s4802_s3 + $0x98] sm:$0xff]  }
  0x23   : > { %2604 = vmatpush3.bf16.msra.mxu0 %v3152_v25  ;;  %3126 = vmatpush3.bf16.msra.mxu1 %v3152_v25  ;;  %v605_v25 = vrot.slane %v3422_v16, 1  ;;  %v377_v49 = vadd.f32 %v3322_v20, %v317_v41  ;;  %v432_v62 = vmax.f32 %v378_v50, 0.0  ;;  %v273_v37 = vld [vmem:[%s3301_s16 + $0x178] sm:$0x3]  ;;  %v320_v41 = vmul.f32 %v3317_v19, %v236_v11  ;;  %v3178_v11 = vld [vmem:[%s4802_s3 + $0x110] sm:$0xff]  }
  0x24   : > { %2605 = vmatprep.subr.bf16.mxu0 %v3153_v26  ;;  %3119 = vmatprep.subr.bf16.mxu1 %v3153_v26  ;;  %v465_v26 = vmax.f32 %v411_v10, 0.0  ;;  %4848 = vst [vmem:[#allocation7_spill] sm:$0xff] %v3477_v55  ;;  %v414_v10 = vadd.f32 %v3322_v20, %v354_v58  ;;  %v321_v42 = vmul.f32 %v3317_v19, %v237_v14 }
  0x25   : > { %v606_v39 = vsel %vm596_vm2, %v603_v18, %v605_v25  ;;  %v3485_v61 = vmax.f32 %v377_v49, 0.0  ;;  %v3507_v18 = vsel %vm297_vm1, %v432_v62, 0.0  ;;  %v3176_v49 = vld [vmem:[%s4802_s3 + $0x150] sm:$0xff]   ;;  %v380_v58 = vadd.f32 %v3322_v20, %v320_v41 }
  0x26   : > { %v3459_v44 = vpack.c.bf16 %v606_v39, %v604_v31  ;;  %v610_v25 = vrot.slane %v3507_v18, 1  ;;  %v3167_v31 = vld [vmem:[%s4802_s3 + $0xe0] sm:$0xff]   ;;  %v355_v62 = vmul.f32 %v3317_v19, %v271_v33 }
  0x27   : > { %2606 = vmatpush3.bf16.msra.mxu0 %v3154_v30  ;;  %3127 = vmatpush3.bf16.msra.mxu1 %v3154_v30  ;;  %v4805_v30 = vmov 0.0|0.0   ;;  %v608_v23 = vrot.slane %v3485_v61, 1  ;;  %v238_v33 = vld [vmem:[%s3301_s16 + $0x60] sm:$0xff] }
  0x28   : > { %2607 = vmatprep.subr.bf16.mxu0 %v3155_v34  ;;  %3120 = vmatprep.subr.bf16.mxu1 %v3155_v34  ;;  %v3445_v34 = vpack.c.bf16 %v3406_v5, %v427_v60  ;;  %v3164_v60 = vld [vmem:[%s4802_s3 + $0x90] sm:$0xff]  }
  0x2b   : > { %2608 = vmatpush3.bf16.msra.mxu0 %v3156_v40  ;;  %3128 = vmatpush3.bf16.msra.mxu1 %v3156_v40  ;;  %v3452_v40 = vsel %vm297_vm1, %v465_v26, 0.0 }
  0x2c   : > { %2705 = vmatprep.subr.bf16.mxu1 %v3157_v54  ;;  %2817 = vmatprep.subr.bf16.mxu0 %v3160_v57  ;;  %4847 = vst [vmem:[#allocation6_spill] sm:$0xff] %v3452_v40  ;;  %v665_v46 = vrot.slane %v3452_v40, 1  ;;  %v430_v57 = vmax.f32 %v376_v48, 0.0 }
  0x2e   : > { %1510 = vmatmul.mubr.bf16.vlgmr.msra.gmra.mrb[0].mxu0 %v4805_v30  ;;  %2487 = vmatmul.mubr.msk.bf16.vlgmr.msra.gmra.mrb[0].mxu1 %vm3392_vm4, %v3398_v1  ;;  %v666_v54 = vsel %vm596_vm2, %v663_v28, %v665_v46  ;;  %v3494_v7 = vsel %vm286_vm0, %v430_v57, 0.0  ;;  %v468_v28 = vmax.f32 %v414_v10, 0.0  ;;  %v3521_v29 = vpack.c.bf16 %v3485_v61, %v430_v57  ;;  %v3169_v57 = vld [vmem:[%s4802_s3 + $0xa0] sm:$0xff]  }
  0x2f   : > { %2706 = vmatpush3.bf16.msra.mxu1 %v3158_v3  ;;  %2818 = vmatpush3.bf16.msra.mxu0 %v3162_v8  ;;  %v3480_v59 = vpack.c.bf16 %v666_v54, %v664_v45  ;;  %v235_v3 = vld [vmem:[%s3301_s16 + $0x48] sm:$0xff]  ;;  %v413_v8 = vadd.f32 %v3322_v20, %v353_v52  ;;  %v607_v22 = vrot.slane %v3494_v7, 1  ;;  %v611_v45 = vsel %vm596_vm2, %v608_v23, %v610_v25 }
  0x30   : > { %2707 = vmatprep.subr.bf16.mxu1 %v3159_v4  ;;  %2819 = vmatprep.subr.bf16.mxu0 %v3168_v43  ;;  %v3165_v4 = vld [vmem:[%s4802_s3 + $0xd8] sm:$0xff]   ;;  %v319_v15 = vmul.f32 %v3317_v19, %v235_v3  ;;  %4850 = vst [vmem:[#allocation9_spill] sm:$0xff] %v3521_v29  ;;  %v272_v43 = vld [vmem:[%s3301_s16 + $0x170] sm:$0xff]  ;;  %v3539_v46 = vsel %vm297_vm1, %v468_v28, 0.0  ;;  %v3171_v3 = vld [vmem:[%s4802_s3 + $0xe8] sm:$0xff]   ;;  %v357_v10 = vmul.f32 %v3317_v19, %v273_v37 }
  0x31   : > { %1517 = vmatprep.mubr.bf16.mxu0 %v3459_v44  ;;  %4849 = vst [vmem:[#allocation8_spill] sm:$0xff] %v3480_v59  ;;  %1613 = vmatprep.mubr.bf16.mxu1 %v3480_v59  ;;  %v3518_v26 = vmax.f32 %v413_v8, 0.0  ;;  %v609_v38 = vsel %vm596_vm2, %v607_v22, %v608_v23  ;;  %v670_v51 = vrot.slane %v3539_v46, 1  ;;  %v356_v8 = vmul.f32 %v3317_v19, %v272_v43  ;;  %v239_v37 = vld [vmem:[%s3301_s16 + $0x68] sm:$0xff] }
  0x32   : > { %v3546_v50 = vpack.c.bf16 %v611_v45, %v609_v38  ;;  %v415_v22 = vadd.f32 %v3322_v20, %v355_v62  ;;  %v3576_v23 = vrot.slane %v3223_v2, 2  ;;  %v417_v28 = vadd.f32 %v3322_v20, %v357_v10  ;;  %v3172_v43 = vld [vmem:[%s4802_s3 + $0xa8] sm:$0xff]   ;;  %v242_v10 = vld [vmem:[%s3301_s16 + $0x80] sm:$0xff] }
  0x33   : > { %2708 = vmatpush3.bf16.msra.mxu1 %v3161_v24  ;;  %2820 = vmatpush3.bf16.msra.mxu0 %v3170_v53  ;;  %v466_v24 = vmax.f32 %v412_v63, 0.0  ;;  %v668_v48 = vrot.slane %v3518_v26, 1  ;;  %v379_v53 = vadd.f32 %v3322_v20, %v319_v15  ;;  %v3572_v15 = vmax.f32 %v380_v58, 0.0 }
  0x34   : > { %2709 = vmatprep.subr.bf16.mxu1 %v3163_v47  ;;  %2821 = vmatprep.subr.bf16.mxu0 %v3176_v49  ;;  %v416_v25 = vadd.f32 %v3322_v20, %v356_v8  ;;  %v322_v58 = vmul.f32 %v3317_v19, %v238_v33  ;;  %v241_v8 = vld [vmem:[%s3301_s16 + $0x78] sm:$0xff] }
  0x35   : > { %v3531_v39 = vsel %vm286_vm0, %v466_v24, 0.0  ;;  %v3550_v52 = vpack.c.bf16 %v3518_v26, %v466_v24  ;;  %v671_v63 = vsel %vm596_vm2, %v668_v48, %v670_v51  ;;  %v613_v41 = vrot.slane %v3572_v15, 1  ;;  %v3182_v33 = vld [vmem:[%s4802_s3 + $0x118] sm:$0xff]  }
  0x36   : > { %2454 = vmatmul.mubr.msk.bf16.gmra.mrb[4].mxu0 %vm3392_vm4, %v3445_v34  ;;  %2490 = vmatmul.mubr.msk.bf16.gmra.mrb[4].mxu1 %vm3392_vm4, %v3477_v55  ;;  %v667_v47 = vrot.slane %v3531_v39, 1 }
  0x37   : > { %2710 = vmatpush3.bf16.msra.mxu1 %v3164_v60  ;;  %4851 = vst [vmem:[#allocation10_spill] sm:$0xff] %v3550_v52  ;;  %v381_v60 = vadd.f32 %v3322_v20, %v321_v42  ;;  %1525 = vmatprep.mubr.bf16.mxu0 %v3546_v50  ;;  %v469_v42 = vmax.f32 %v415_v22, 0.0 }
  0x38   : > { %2711 = vmatprep.subr.bf16.mxu1 %v3165_v4  ;;  %v669_v54 = vsel %vm596_vm2, %v667_v47, %v668_v48  ;;  %v433_v4 = vmax.f32 %v379_v53, 0.0  ;;  %2822 = vmatpush3.bf16.msra.mxu0 %v3178_v11  ;;  %v3604_v47 = vmax.f32 %v416_v25, 0.0  ;;  %v471_v48 = vmax.f32 %v417_v28, 0.0  ;;  %v3181_v11 = vld [vmem:[%s4802_s3 + $0x158] sm:$0xff]   ;;  %v243_v28 = vld [vmem:[%s3301_s16 + $0x88] sm:$0x3] }
  0x39   : > { %v3570_v14 = vpack.c.bf16 %v671_v63, %v669_v54  ;;  %v3612_v53 = vsel %vm286_vm0, %v469_v42, 0.0  ;;  %v3173_v54 = vld [vmem:[%s4802_s3 + $0xf0] sm:$0xff]   ;;  %2823 = vmatprep.subr.bf16.mxu0 %v3181_v11 }
  0x3a   : > { %v3580_v24 = vsel %vm286_vm0, %v433_v4, 0.0  ;;  %v3607_v49 = vpack.c.bf16 %v3572_v15, %v433_v4  ;;  %v672_v63 = vrot.slane %v3612_v53, 1  ;;  %v673_v4 = vrot.slane %v3604_v47, 1 }
  0x3b   : > { %2712 = vmatpush3.bf16.msra.mxu1 %v3166_v17  ;;  %4852 = vst [vmem:[#allocation11_spill] sm:$0xff] %v3570_v14  ;;  %v435_v17 = vmax.f32 %v381_v60, 0.0  ;;  %1621 = vmatprep.mubr.bf16.mxu1 %v3570_v14  ;;  %v612_v38 = vrot.slane %v3580_v24, 1  ;;  %v323_v60 = vmul.f32 %v3317_v19, %v239_v37  ;;  %v3635_v22 = vpack.c.bf16 %v3604_v47, %v469_v42  ;;  %v3174_v42 = vld [vmem:[%s4802_s3 + $0xb0] sm:$0xff]  }
  0x3c   : > { %2713 = vmatprep.subr.bf16.mxu1 %v3167_v31  ;;  %v240_v31 = vld [vmem:[%s3301_s16 + $0x70] sm:$0x3]  ;;  %4853 = vst [vmem:[#allocation12_spill] sm:$0xff] %v3607_v49  ;;  %v674_v37 = vsel %vm596_vm2, %v672_v63, %v673_v4  ;;  %2824 = vmatpush3.bf16.msra.mxu0 %v3182_v33  ;;  %v732_v33 = vrot.slane %v3406_v5, 2 }
  0x3d   : > { %v3593_v2 = vsel %vm297_vm1, %v435_v17, 0.0  ;;  %v614_v51 = vsel %vm596_vm2, %v612_v38, %v613_v41  ;;  %4854 = vst [vmem:[#allocation13_spill] sm:$0xff] %v3635_v22  ;;  %v324_v25 = vmul.f32 %v3317_v19, %v240_v31  ;;  %v382_v38 = vadd.f32 %v3322_v20, %v322_v58 }
  0x3e   : > { %2457 = vmatmul.mubr.msk.bf16.gmra.mrb[8].mxu0 %vm3392_vm4, %v3521_v29  ;;  %2493 = vmatmul.mubr.msk.bf16.gmra.mrb[8].mxu1 %vm3392_vm4, %v3550_v52  ;;  %v615_v45 = vrot.slane %v3593_v2, 1  ;;  %v326_v58 = vmul.f32 %v3317_v19, %v242_v10  ;;  %v244_v10 = vld [vmem:[%s3301_s16 + $0x90] sm:$0xff] }
  0x3f   : > { %2714 = vmatpush3.bf16.msra.mxu1 %v3169_v57  ;;  %v3622_v57 = vsel %vm297_vm1, %v471_v48, 0.0  ;;  %v3175_v48 = vld [vmem:[%s4802_s3 + $0xf8] sm:$0xff]   ;;  %v328_v30 = vmul.f32 %v3317_v19, %v244_v10 }
  0x40   : > { %2715 = vmatprep.subr.bf16.mxu1 %v3171_v3  ;;  %v616_v62 = vsel %vm596_vm2, %v613_v41, %v615_v45  ;;  %v675_v3 = vrot.slane %v3622_v57, 1  ;;  %v383_v41 = vadd.f32 %v3322_v20, %v323_v60  ;;  %v325_v45 = vmul.f32 %v3317_v19, %v241_v8 }
  0x41   : > { %v3631_v17 = vpack.c.bf16 %v616_v62, %v614_v51  ;;  %v384_v51 = vadd.f32 %v3322_v20, %v324_v25  ;;  %v731_v60 = vrot.slane %v3413_v9, 2  ;;  %v436_v62 = vmax.f32 %v382_v38, 0.0 }
  0x42   : > { %v676_v31 = vsel %vm596_vm2, %v673_v4, %v675_v3  ;;  %v3659_v63 = vmax.f32 %v383_v41, 0.0  ;;  %v327_v4 = vmul.f32 %v3317_v19, %v243_v28  ;;  %v3666_v11 = vadd.f32 %v3322_v20, %v325_v45 }
  0x43   : > { %2716 = vmatpush3.bf16.msra.mxu1 %v3172_v43  ;;  %1533 = vmatprep.mubr.bf16.mxu0 %v3631_v17  ;;  %v3657_v43 = vpack.c.bf16 %v676_v31, %v674_v37  ;;  %v438_v8 = vmax.f32 %v384_v51, 0.0  ;;  %v386_v9 = vadd.f32 %v3322_v20, %v326_v58  ;;  %v3676_v3 = vsel %vm286_vm0, %v436_v62, 0.0  ;;  %v3185_v37 = vld [vmem:[%s4802_s3 + $0x160] sm:$0xff]  }
  0x44   : > { %2717 = vmatprep.subr.bf16.mxu1 %v3173_v54  ;;  %v3177_v54 = vld [vmem:[%s4802_s3 + $0xb8] sm:$0xff]   ;;  %v618_v25 = vrot.slane %v3659_v63, 1  ;;  %v387_v28 = vadd.f32 %v3322_v20, %v327_v4  ;;  %v617_v41 = vrot.slane %v3676_v3, 1  ;;  %v4809_v45 = vmax.f32 %v3666_v11, 0.0  ;;  %v246_v51 = vld [vmem:[%s3301_s16 + $0xa0] sm:$0x3]  ;;  %2825 = vmatprep.subr.bf16.mxu0 %v3185_v37 }
  0x45   : > { %4855 = vst [vmem:[#allocation14_spill] sm:$0xff] %v3657_v43  ;;  %1629 = vmatprep.mubr.bf16.mxu1 %v3657_v43  ;;  %v3689_v38 = vsel %vm297_vm1, %v438_v8, 0.0  ;;  %v3693_v31 = vmax.f32 %v386_v9, 0.0  ;;  %v245_v4 = vld [vmem:[%s3301_s16 + $0x98] sm:$0xff]  ;;  %v3186_v8 = vld [vmem:[%s4802_s3 + $0x120] sm:$0xff]   ;;  %v3748_v14 = vadd.f32 %v3322_v20, %v328_v30 }
  0x46   : > { %2460 = vmatmul.mubr.msk.bf16.gmra.mrb[12].mxu0 %vm3392_vm4, %v3607_v49  ;;  %2496 = vmatmul.mubr.msk.bf16.gmra.mrb[12].mxu1 %vm3392_vm4, %v3635_v22  ;;  %v620_v5 = vrot.slane %v3689_v38, 1  ;;  %v441_v58 = vmax.f32 %v387_v28, 0.0  ;;  %v619_v9 = vsel %vm596_vm2, %v617_v41, %v618_v25  ;;  %v734_v28 = vrot.slane %v3422_v16, 2 }
  0x47   : > { %2718 = vmatpush3.bf16.msra.mxu1 %v3174_v42  ;;  %2499 = vmatprep.mubr.msk.bf16.mxu1 %vm3392_vm4, %v3445_v34  ;;  %v3179_v42 = vld [vmem:[%s4802_s3 + $0x1c0] sm:$0xff]   ;;  %v3713_v34 = vsel %vm286_vm0, %v4809_v45, 0.0  ;;  %v623_v10 = vrot.slane %v3693_v31, 1  ;;  %v3719_v41 = vpack.c.bf16 %v3659_v63, %v436_v62  ;;  %v3731_v16 = vpack.c.bf16 %v3576_v23, %v3576_v23 }
  0x48   : > { %2719 = vmatprep.subr.bf16.mxu1 %v3175_v48  ;;  %v621_v48 = vsel %vm596_vm2, %v618_v25, %v620_v5  ;;  %v3726_v43 = vsel %vm297_vm1, %v441_v58, 0.0  ;;  %v622_v45 = vrot.slane %v3713_v34, 1  ;;  %2826 = vmatpush3.bf16.msra.mxu0 %v3186_v8  ;;  %v329_v37 = vmul.f32 %v3317_v19, %v245_v4  ;;  %v3183_v5 = vld [vmem:[%s4802_s3 + $0x1c8] sm:$0xff]   ;;  %v248_v4 = vld [vmem:[%s3301_s16 + $0xb0] sm:$0xff] }
  0x49   : > { %4856 = vst [vmem:[#allocation15_spill] sm:$0xff] %v3719_v41  ;;  %4857 = vst [vmem:[#allocation16_spill] sm:$0xff] %v3731_v16  ;;  %v3733_v25 = vpack.c.bf16 %v621_v48, %v619_v9  ;;  %v625_v62 = vrot.slane %v3726_v43, 1  ;;  %v247_v58 = vld [vmem:[%s3301_s16 + $0xa8] sm:$0xff]  ;;  %v733_v9 = vsel %vm725_vm5, %v731_v60, %v732_v33  ;;  %v330_v48 = vmul.f32 %v3317_v19, %v246_v51 }
  0x4a   : > { %v3187_v8 = vld [vmem:[%s4802_s3 + $0x168] sm:$0xff]   ;;  %v624_v23 = vsel %vm596_vm2, %v622_v45, %v623_v10  ;;  %v735_v56 = vsel %vm725_vm5, %v732_v33, %v734_v28  ;;  %v389_v22 = vadd.f32 %v3322_v20, %v329_v37  ;;  %v4818_v45 = vmax.f32 %v3748_v14, 0.0 }
  0x4b   : > { %4858 = vst [vmem:[#allocation17_spill] sm:$0xff] %v3733_v25  ;;  %2720 = vmatpush3.bf16.msra.mxu1 %v3177_v54  ;;  %1541 = vmatprep.mubr.bf16.mxu0 %v3733_v25  ;;  %v626_v59 = vsel %vm596_vm2, %v623_v10, %v625_v62  ;;  %v249_v54 = vld [vmem:[%s3301_s16 + $0xb8] sm:$0x3]  ;;  %v390_v30 = vadd.f32 %v3322_v20, %v330_v48  ;;  %v3189_v33 = vld [vmem:[%s4802_s3 + $0x128] sm:$0xff]   ;;  %v736_v10 = vrot.slane %v3494_v7, 2  ;;  %v739_v7 = vrot.slane %v3507_v18, 2 }
  0x4c   : > { %2929 = vmatprep.subr.bf16.mxu1 %v3179_v42  ;;  %v3759_v60 = vpack.c.bf16 %v626_v59, %v624_v23  ;;  %v331_v51 = vmul.f32 %v3317_v19, %v247_v58  ;;  %2827 = vmatprep.subr.bf16.mxu0 %v3187_v8  ;;  %v3768_v42 = vmax.f32 %v389_v22, 0.0  ;;  %v737_v59 = vrot.slane %v3485_v61, 2  ;;  %v3184_v28 = vld [vmem:[%s4802_s3 + $0x188] sm:$0xff]   ;;  %v250_v58 = vld [vmem:[%s3301_s16 + $0xc0] sm:$0xff]  ;;  %v3188_v8 = vld [vmem:[%s4802_s3 + $0x1d0] sm:$0xff]  }
  0x4d   : > { %v332_v62 = vmul.f32 %v3317_v19, %v248_v4  ;;  %v444_v37 = vmax.f32 %v390_v30, 0.0  ;;  %v3781_v22 = vsel %vm286_vm0, %v4818_v45, 0.0  ;;  %v333_v61 = vmul.f32 %v3317_v19, %v249_v54  ;;  %2828 = vmatpush3.bf16.msra.mxu0 %v3189_v33 }
  0x4e   : > { %2463 = vmatmul.mubr.msk.bf16.gmra.mrb[16].mxu0 %vm3392_vm4, %v3719_v41  ;;  %4859 = vst [vmem:[#allocation18_spill] sm:$0xff] %v3759_v60  ;;  %1671 = vmatmul.mubr.bf16.vlgmr.msra.gmra.mrb[16].mxu1 %v3731_v16  ;;  %v627_v23 = vrot.slane %v3781_v22, 1  ;;  %v628_v48 = vrot.slane %v3768_v42, 1  ;;  %v3798_v18 = vadd.f32 %v3322_v20, %v331_v51  ;;  %v4860_v4 = vmax.f32 %v3666_v11, 0.0 }
  0x4f   : > { %2930 = vmatpush3.bf16.msra.mxu1 %v3180_v6  ;;  %1549 = vmatprep.mubr.bf16.mxu0 %v3759_v60  ;;  %v3191_v6 = vld [vmem:[%s4802_s3 + $0x170] sm:$0xff]   ;;  %v3807_v30 = vsel %vm297_vm1, %v444_v37, 0.0  ;;  %v392_v45 = vadd.f32 %v3322_v20, %v332_v62  ;;  %v393_v16 = vadd.f32 %v3322_v20, %v333_v61  ;;  %v738_v62 = vsel %vm725_vm5, %v736_v10, %v737_v59  ;;  %v253_v10 = vld [vmem:[%s3301_s16 + $0xd8] sm:$0xff] }
  0x50   : > { %2502 = vmatprep.mubr.msk.bf16.mxu1 %vm3392_vm4, %v3521_v29  ;;  %2931 = vmatprep.subr.bf16.mxu1 %v3183_v5  ;;  %v3803_v54 = vpack.c.bf16 %v3693_v31, %v4860_v4  ;;  %v251_v29 = vld [vmem:[%s3301_s16 + $0xc8] sm:$0xff]  ;;  %v3812_v5 = vpack.c.bf16 %v735_v56, %v733_v9  ;;  %v629_v51 = vsel %vm596_vm2, %v627_v23, %v628_v48  ;;  %v630_v11 = vrot.slane %v3807_v30, 1  ;;  %v3192_v37 = vld [vmem:[%s4802_s3 + $0x130] sm:$0xff]  }
  0x51   : > { %2829 = vmatprep.subr.bf16.mxu0 %v3191_v6  ;;  %v3821_v61 = vmax.f32 %v392_v45, 0.0  ;;  %v447_v56 = vmax.f32 %v393_v16, 0.0  ;;  %v252_v9 = vld [vmem:[%s3301_s16 + $0xd0] sm:$0x3]  ;;  %v334_v33 = vmul.f32 %v3317_v19, %v250_v58  ;;  %v740_v4 = vsel %vm725_vm5, %v737_v59, %v739_v7 }
  0x52   : > { %4861 = vst [vmem:[#allocation19_spill] sm:$0xff] %v3803_v54  ;;  %v3190_v23 = vld [vmem:[%s4802_s3 + $0x190] sm:$0xff]   ;;  %v631_v6 = vsel %vm596_vm2, %v628_v48, %v630_v11  ;;  %v4862_v52 = vmax.f32 %v3798_v18, 0.0  ;;  %v335_v16 = vmul.f32 %v3317_v19, %v251_v29  ;;  %v3193_v29 = vld [vmem:[%s4802_s3 + $0x1d8] sm:$0xff]   ;;  %v336_v48 = vmul.f32 %v3317_v19, %v252_v9  ;;  %2830 = vmatpush3.bf16.msra.mxu0 %v3192_v37 }
  0x53   : > { %2932 = vmatpush3.bf16.msra.mxu1 %v3184_v28  ;;  %v3841_v28 = vpack.c.bf16 %v631_v6, %v629_v51  ;;  %v3845_v58 = vsel %vm297_vm1, %v447_v56, 0.0  ;;  %v633_v7 = vrot.slane %v3821_v61, 1  ;;  %v255_v51 = vld [vmem:[%s3301_s16 + $0xe8] sm:$0x3]  ;;  %v3194_v11 = vld [vmem:[%s4802_s3 + $0x198] sm:$0xff]   ;;  %v3864_v56 = vpack.c.bf16 %v740_v4, %v738_v62 }
  0x54   : > { %v3834_v45 = vsel %vm286_vm0, %v4862_v52, 0.0  ;;  %2933 = vmatprep.subr.bf16.mxu1 %v3188_v8  ;;  %v254_v52 = vld [vmem:[%s3301_s16 + $0xe0] sm:$0xff]  ;;  %v635_v8 = vrot.slane %v3845_v58, 1  ;;  %v741_v60 = vrot.slane %v3580_v24, 2  ;;  %v3869_v9 = vadd.f32 %v3322_v20, %v334_v33  ;;  %v3195_v37 = vld [vmem:[%s4802_s3 + $0x178] sm:$0xff]  }
  0x55   : > { %4863 = vst [vmem:[#allocation20_spill] sm:$0xff] %v3841_v28  ;;  %v632_v59 = vrot.slane %v3834_v45, 1  ;;  %v395_v12 = vadd.f32 %v3322_v20, %v335_v16  ;;  %v396_v4 = vadd.f32 %v3322_v20, %v336_v48  ;;  %v3196_v24 = vld [vmem:[%s4802_s3 + $0x138] sm:$0xff]   ;;  %v4864_v62 = vmax.f32 %v3748_v14, 0.0  ;;  %2831 = vmatprep.subr.bf16.mxu0 %v3195_v37  ;;  %v3197_v14 = vld [vmem:[%s4802_s3 + $0x1e0] sm:$0xff]  }
  0x56   : > { %2466 = vmatmul.mubr.msk.bf16.gmra.mrb[20].mxu0 %vm3392_vm4, %v3803_v54  ;;  %1679 = vmatmul.mubr.bf16.gmra.mrb[20].mxu1 %v3812_v5  ;;  %v636_v40 = vsel %vm596_vm2, %v633_v7, %v635_v8  ;;  %v338_v48 = vmul.f32 %v3317_v19, %v254_v52  ;;  %v3911_v52 = vld [vmem:[%s4802_s3 + $0x200] sm:$0xff]  }
  0x57   : > { %1557 = vmatprep.mubr.bf16.mxu0 %v3841_v28  ;;  %2505 = vmatprep.mubr.msk.bf16.mxu1 %vm3392_vm4, %v3607_v49  ;;  %v634_v6 = vsel %vm596_vm2, %v632_v59, %v633_v7  ;;  %v742_v28 = vrot.slane %v3572_v15, 2  ;;  %v3884_v33 = vpack.c.bf16 %v3768_v42, %v4864_v62  ;;  %v744_v59 = vrot.slane %v3593_v2, 2 }
  0x58   : > { %2934 = vmatpush3.bf16.msra.mxu1 %v3190_v23  ;;  %v4829_v7 = vmax.f32 %v3869_v9, 0.0  ;;  %v337_v15 = vmul.f32 %v3317_v19, %v253_v10  ;;  %v3889_v16 = vpack.c.bf16 %v636_v40, %v634_v6  ;;  %v3891_v23 = vmax.f32 %v395_v12, 0.0  ;;  %2832 = vmatpush3.bf16.msra.mxu0 %v3196_v24  ;;  %v256_v12 = vld [vmem:[%s3301_s16 + $0xf0] sm:$0xff] }
  0x59   : > { %2935 = vmatprep.subr.bf16.mxu1 %v3193_v29  ;;  %v450_v8 = vmax.f32 %v396_v4, 0.0  ;;  %v339_v10 = vmul.f32 %v3317_v19, %v255_v51  ;;  %v743_v29 = vsel %vm725_vm5, %v741_v60, %v742_v28  ;;  %v3198_v51 = vld [vmem:[%s4802_s3 + $0x1a0] sm:$0xff]   ;;  %v745_v60 = vsel %vm725_vm5, %v742_v28, %v744_v59  ;;  %3065 = vmatprep.subr.bf16.mxu0 %v3911_v52 }
  0x5a   : > { %4865 = vst [vmem:[#allocation21_spill] sm:$0xff] %v3889_v16  ;;  %v3901_v2 = vsel %vm286_vm0, %v4829_v7, 0.0  ;;  %v3905_v40 = vadd.f32 %v3322_v20, %v337_v15  ;;  %v638_v19 = vrot.slane %v3891_v23, 1  ;;  %v398_v24 = vadd.f32 %v3322_v20, %v338_v48  ;;  %v257_v7 = vld [vmem:[%s3301_s16 + $0xf8] sm:$0xff] }
  0x5b   : > { %v3916_v6 = vsel %vm297_vm1, %v450_v8, 0.0  ;;  %v637_v37 = vrot.slane %v3901_v2, 1  ;;  %v399_v62 = vadd.f32 %v3322_v20, %v339_v10  ;;  %v746_v28 = vrot.slane %v3676_v3, 2  ;;  %v258_v8 = vld [vmem:[%s3301_s16 + $0x100] sm:$0x3] }
  0x5c   : > { %2936 = vmatpush3.bf16.msra.mxu1 %v3194_v11  ;;  %v640_v4 = vrot.slane %v3916_v6, 1  ;;  %v3200_v11 = vld [vmem:[%s4802_s3 + $0x1e8] sm:$0xff]   ;;  %v747_v48 = vrot.slane %v3659_v63, 2  ;;  %v4866_v3 = vmax.f32 %v3798_v18, 0.0  ;;  %v3953_v59 = vpack.c.bf16 %v745_v60, %v743_v29  ;;  %v3964_v63 = vld [vmem:[%s4800_s1] ss:$0 sm:$0xff] }
  0x5d   : > { %2937 = vmatprep.subr.bf16.mxu1 %v3197_v14  ;;  %v639_v15 = vsel %vm596_vm2, %v637_v37, %v638_v19  ;;  %v3944_v14 = vmax.f32 %v398_v24, 0.0  ;;  %v453_v10 = vmax.f32 %v399_v62, 0.0  ;;  %v259_v24 = vld [vmem:[%s3301_s16 + $0x108] sm:$0xff]  ;;  %v749_v60 = vrot.slane %v3689_v38, 2 }
  0x5e   : > { %2469 = vmatmul.mubr.msk.bf16.gmra.mrb[24].mxu0 %vm3392_vm4, %v3884_v33  ;;  %1687 = vmatmul.mubr.bf16.gmra.mrb[24].mxu1 %v3864_v56  ;;  %v641_v20 = vsel %vm596_vm2, %v638_v19, %v640_v4  ;;  %v3951_v37 = vpack.c.bf16 %v3821_v61, %v4866_v3  ;;  %v340_v4 = vmul.f32 %v3964_v63, %v256_v12  ;;  %v3201_v18 = vld [vmem:[%s4802_s3 + $0x1a8] sm:$0xff]   ;;  %v260_v3 = vld [vmem:[%s3301_s16 + $0x110] sm:$0xff] }
  0x5f   : > { %1565 = vmatprep.mubr.bf16.mxu0 %v3889_v16  ;;  %2508 = vmatprep.mubr.msk.bf16.mxu1 %vm3392_vm4, %v3719_v41  ;;  %v4867_v41 = vmax.f32 %v3905_v40, 0.0  ;;  %v3971_v29 = vpack.c.bf16 %v641_v20, %v639_v15  ;;  %v3203_v12 = vld [vmem:[%s4802_s3 + $0x1f0] sm:$0xff]   ;;  %v341_v15 = vmul.f32 %v3964_v63, %v257_v7  ;;  %v342_v38 = vmul.f32 %v3964_v63, %v258_v8  ;;  %v3990_v20 = vld [vmem:[%s4801_s2] ss:$0 sm:$0xff] }
  0x60   : > { %2938 = vmatpush3.bf16.msra.mxu1 %v3198_v51  ;;  %v643_v51 = vrot.slane %v3944_v14, 1  ;;  %v3204_v7 = vld [vmem:[%s4802_s3 + $0x1b0] sm:$0xff]   ;;  %v748_v8 = vsel %vm725_vm5, %v746_v28, %v747_v48  ;;  %v750_v55 = vsel %vm725_vm5, %v747_v48, %v749_v60  ;;  %v343_v25 = vmul.f32 %v3964_v63, %v259_v24 }
  0x61   : > { %v3959_v19 = vsel %vm286_vm0, %v4867_v41, 0.0  ;;  %v3976_v41 = vsel %vm297_vm1, %v453_v10, 0.0  ;;  %2939 = vmatprep.subr.bf16.mxu1 %v3200_v11  ;;  %v3993_v10 = vadd.f32 %v3990_v20, %v340_v4  ;;  %v261_v11 = vld [vmem:[%s3301_s16 + $0x118] sm:$0x3]  ;;  %v401_v16 = vadd.f32 %v3990_v20, %v341_v15 }
  0x62   : > { %v642_v62 = vrot.slane %v3959_v19, 1  ;;  %v645_v49 = vrot.slane %v3976_v41, 1  ;;  %v402_v27 = vadd.f32 %v3990_v20, %v342_v38  ;;  %v344_v48 = vmul.f32 %v3964_v63, %v260_v3  ;;  %v3207_v3 = vld [vmem:[%s4802_s3 + $0x1b8] sm:$0xff]  }
  0x63   : > { %v4839_v4 = vmax.f32 %v3993_v10, 0.0  ;;  %v4019_v24 = vmax.f32 %v401_v16, 0.0 }
  0x64   : > { %2940 = vmatpush3.bf16.msra.mxu1 %v3201_v18  ;;  %v3206_v18 = vld [vmem:[%s4802_s3 + $0x1f8] sm:$0xff]   ;;  %v644_v15 = vsel %vm596_vm2, %v642_v62, %v643_v51  ;;  %v646_v38 = vsel %vm596_vm2, %v643_v51, %v645_v49  ;;  %v456_v28 = vmax.f32 %v402_v27, 0.0  ;;  %v4029_v62 = vadd.f32 %v3990_v20, %v343_v25 }
  0x65   : > { %2941 = vmatprep.subr.bf16.mxu1 %v3203_v12  ;;  %v4025_v60 = vsel %vm286_vm0, %v4839_v4, 0.0  ;;  %v345_v12 = vmul.f32 %v3964_v63, %v261_v11  ;;  %v4868_v27 = vmax.f32 %v3869_v9, 0.0  ;;  %v4043_v51 = vpack.c.bf16 %v750_v55, %v748_v8 }
  0x66   : > { %2472 = vmatmul.mubr.msk.bf16.gmra.mrb[28].mxu0 %vm3392_vm4, %v3951_v37  ;;  %1695 = vmatmul.mubr.bf16.gmra.mrb[28].mxu1 %v3953_v59  ;;  %v4038_v16 = vsel %vm297_vm1, %v456_v28, 0.0  ;;  %v751_v11 = vrot.slane %v3713_v34, 2  ;;  %v752_v25 = vrot.slane %v3693_v31, 2  ;;  %v754_v4 = vrot.slane %v3726_v43, 2 }
  0x67   : > { %1573 = vmatprep.mubr.bf16.mxu0 %v3971_v29  ;;  %2511 = vmatprep.mubr.msk.bf16.mxu1 %vm3392_vm4, %v3803_v54  ;;  %v4034_v49 = vpack.c.bf16 %v3891_v23, %v4868_v27  ;;  %v405_v9 = vadd.f32 %v3990_v20, %v345_v12  ;;  %v4048_v27 = vpack.c.bf16 %v646_v38, %v644_v15  ;;  %v647_v28 = vrot.slane %v4025_v60, 1 }
  0x68   : > { %2942 = vmatpush3.bf16.msra.mxu1 %v3204_v7  ;;  %v404_v7 = vadd.f32 %v3990_v20, %v344_v48  ;;  %v648_v54 = vrot.slane %v4019_v24, 1  ;;  %v650_v55 = vrot.slane %v4038_v16, 1  ;;  %v457_v8 = vmax.f32 %v4029_v62, 0.0 }
  0x69   : > { %2943 = vmatprep.subr.bf16.mxu1 %v3206_v18  ;;  %v459_v34 = vmax.f32 %v405_v9, 0.0  ;;  %v753_v43 = vsel %vm725_vm5, %v751_v11, %v752_v25  ;;  %v755_v31 = vsel %vm725_vm5, %v752_v25, %v754_v4  ;;  %v4869_v4 = vmax.f32 %v3905_v40, 0.0 }
  0x6a   : > { %v4063_v18 = vmax.f32 %v404_v7, 0.0  ;;  %v649_v15 = vsel %vm596_vm2, %v647_v28, %v648_v54  ;;  %v651_v38 = vsel %vm596_vm2, %v648_v54, %v650_v55  ;;  %v4072_v48 = vsel %vm286_vm0, %v457_v8, 0.0 }
  0x6b   : > { %v4076_v12 = vsel %vm297_vm1, %v459_v34, 0.0  ;;  %v4081_v62 = vpack.c.bf16 %v3944_v14, %v4869_v4  ;;  %v4084_v11 = vpack.c.bf16 %v755_v31, %v753_v43  ;;  %v756_v25 = vrot.slane %v3781_v22, 2 }
  0x6c   : > { %2944 = vmatpush3.bf16.msra.mxu1 %v3207_v3  ;;  %v786_v3 = vrot.slane %v3351_v35, 2  ;;  %v757_v54 = vrot.slane %v3768_v42, 2  ;;  %v759_v9 = vrot.slane %v3807_v30, 2  ;;  %v4089_v28 = vpack.c.bf16 %v651_v38, %v649_v15 }
  0x6d   : > { %v652_v7 = vrot.slane %v4072_v48, 1  ;;  %v653_v55 = vrot.slane %v4063_v18, 1  ;;  %v655_v40 = vrot.slane %v4076_v12, 1  ;;  %v787_v34 = vrot.slane %v3344_v32, 2 }
  0x6e   : > { %2475 = vmatmul.mubr.msk.bf16.gmra.mrb[32].mxu0 %vm3392_vm4, %v4034_v49  ;;  %1703 = vmatmul.mubr.bf16.gmra.mrb[32].mxu1 %v4043_v51  ;;  %v789_v35 = vrot.slane %v3355_v36, 2  ;;  %v758_v42 = vsel %vm725_vm5, %v756_v25, %v757_v54  ;;  %v760_v22 = vsel %vm725_vm5, %v757_v54, %v759_v9  ;;  %v796_v15 = vrot.slane %v3531_v39, 2 }
  0x6f   : > { %1581 = vmatprep.mubr.bf16.mxu0 %v4048_v27  ;;  %2514 = vmatprep.mubr.msk.bf16.mxu1 %vm3392_vm4, %v3884_v33  ;;  %v788_v30 = vsel %vm725_vm5, %v786_v3, %v787_v34  ;;  %v654_v43 = vsel %vm596_vm2, %v652_v7, %v653_v55  ;;  %v656_v32 = vsel %vm596_vm2, %v653_v55, %v655_v40  ;;  %v797_v38 = vrot.slane %v3518_v26, 2 }
  0x70   : > { %v790_v36 = vsel %vm725_vm5, %v787_v34, %v789_v35  ;;  %v799_v4 = vrot.slane %v3539_v46, 2  ;;  %v4870_v3 = vmax.f32 %v3993_v10, 0.0  ;;  %v801_v7 = vrot.slane %v3612_v53, 2 }
  0x71   : > { %v4110_v31 = vpack.c.bf16 %v790_v36, %v788_v30  ;;  %v798_v54 = vsel %vm725_vm5, %v796_v15, %v797_v38  ;;  %v4123_v55 = vpack.c.bf16 %v760_v22, %v758_v42  ;;  %v4125_v40 = vpack.c.bf16 %v656_v32, %v654_v43 }
  0x72   : > { %v4118_v25 = vpack.c.bf16 %v4019_v24, %v4870_v3  ;;  %v800_v9 = vsel %vm725_vm5, %v797_v38, %v799_v4  ;;  %v802_v26 = vrot.slane %v3604_v47, 2  ;;  %v761_v46 = vrot.slane %v3834_v45, 2  ;;  %v3208_v4 = vld [vmem:[%s4802_s3 + $0x218] sm:$0xff]  }
  0x73   : > { %v4127_v39 = vpack.c.bf16 %v800_v9, %v798_v54  ;;  %v762_v10 = vrot.slane %v3821_v61, 2  ;;  %v764_v34 = vrot.slane %v3845_v58, 2  ;;  %v804_v35 = vrot.slane %v3622_v57, 2 }
  0x74   : > { %v803_v30 = vsel %vm725_vm5, %v801_v7, %v802_v26  ;;  %v4149_v45 = vpack.c.bf16 %v4063_v18, %v457_v8  ;;  %v766_v42 = vrot.slane %v3901_v2, 2  ;;  %v767_v22 = vrot.slane %v3891_v23, 2 }
  0x75   : > { %v805_v53 = vsel %vm725_vm5, %v802_v26, %v804_v35  ;;  %v763_v57 = vsel %vm725_vm5, %v761_v46, %v762_v10  ;;  %v765_v61 = vsel %vm725_vm5, %v762_v10, %v764_v34  ;;  %v769_v43 = vrot.slane %v3916_v6, 2  ;;  %v3210_v26 = vld [vmem:[%s4802_s3 + $0x228] sm:$0xff]   ;;  %v3212_v10 = vld [vmem:[%s4802_s3 + $0x238] sm:$0xff]  }
  0x76   : > { %2478 = vmatmul.mubr.msk.bf16.gmra.mrb[36].mxu0 %vm3392_vm4, %v4081_v62  ;;  %1711 = vmatmul.mubr.bf16.gmra.mrb[36].mxu1 %v4084_v11  ;;  %v4141_v47 = vpack.c.bf16 %v805_v53, %v803_v30  ;;  %v4151_v58 = vpack.c.bf16 %v765_v61, %v763_v57  ;;  %v768_v8 = vsel %vm725_vm5, %v766_v42, %v767_v22  ;;  %v771_v23 = vrot.slane %v3959_v19, 2  ;;  %v4871_v34 = vld [vmem:[#allocation17_spill] sm:$0xff]  ;;  %v4872_v35 = vld [vmem:[#allocation7_spill] sm:$0xff]  ;;  %v4874_v57 = vld [vmem:[#allocation4_spill] sm:$0xff] }
  0x77   : > { %1589 = vmatprep.mubr.bf16.mxu0 %v4089_v28  ;;  %2517 = vmatprep.mubr.msk.bf16.mxu1 %vm3392_vm4, %v3951_v37  ;;  %v770_v2 = vsel %vm725_vm5, %v767_v22, %v769_v43  ;;  %v772_v6 = vrot.slane %v3944_v14, 2  ;;  %v774_v36 = vrot.slane %v3976_v41, 2  ;;  %v3205_v41 = vld [vmem:[%s4802_s3 + $0x210] sm:$0xff]   ;;  %v777_v15 = vrot.slane %v4019_v24, 2  ;;  %v4873_v30 = vld [vmem:[#allocation5_spill] sm:$0xff]  ;;  %v4875_v42 = vld [vmem:[#allocation6_spill] sm:$0xff] }
  0x78   : > { %v4166_v32 = vpack.c.bf16 %v770_v2, %v768_v8  ;;  %v779_v38 = vrot.slane %v4038_v16, 2  ;;  %v3209_v16 = vld [vmem:[%s4802_s3 + $0x220] sm:$0xff]   ;;  %v781_v54 = vrot.slane %v4072_v48, 2  ;;  %v782_v9 = vrot.slane %v4063_v18, 2  ;;  %v275_v8 = vld [vmem:[%s3301_s16 + $0x188] sm:$0xff] }
  0x79   : > { %v773_v14 = vsel %vm725_vm5, %v771_v23, %v772_v6  ;;  %v775_v19 = vsel %vm725_vm5, %v772_v6, %v774_v36  ;;  %v784_v7 = vrot.slane %v4076_v12, 2  ;;  %v3211_v12 = vld [vmem:[%s4802_s3 + $0x230] sm:$0xff]   ;;  %v791_v53 = vrot.slane %v4873_v30, 2  ;;  %v274_v43 = vld [vmem:[%s3301_s16 + $0x180] sm:$0xff] }
  0x7a   : > { %v780_v24 = vsel %vm725_vm5, %v777_v15, %v779_v38  ;;  %v783_v18 = vsel %vm725_vm5, %v781_v54, %v782_v9  ;;  %v792_v61 = vrot.slane %v4874_v57, 2  ;;  %v794_v22 = vrot.slane %v4875_v42, 2  ;;  %v4876_v2 = vld [vmem:[#allocation18_spill] sm:$0xff]  ;;  %v4879_v38 = vld [vmem:[#allocation13_spill] sm:$0xff]  ;;  %v4887_v57 = vld [vmem:[#allocation11_spill] sm:$0xff] }
  0x7b   : > { %v785_v48 = vsel %vm725_vm5, %v782_v9, %v784_v7  ;;  %v4877_v23 = vld [vmem:[#allocation10_spill] sm:$0xff]  ;;  %v4881_v54 = vld [vmem:[#allocation9_spill] sm:$0xff]  ;;  %v4882_v9 = vld [vmem:[#allocation12_spill] sm:$0xff] }
  0x7c   : > { %v4224_v46 = vpack.c.bf16 %v785_v48, %v783_v18  ;;  %v793_v6 = vsel %vm725_vm5, %v791_v53, %v792_v61  ;;  %v795_v36 = vsel %vm725_vm5, %v792_v61, %v794_v22  ;;  %v4885_v18 = vld [vmem:[#allocation19_spill] sm:$0xff] }
  0x7e   : > { %2481 = vmatmul.mubr.msk.bf16.gmra.mrb[40].mxu0 %vm3392_vm4, %v4118_v25  ;;  %1719 = vmatmul.mubr.bf16.gmra.mrb[40].mxu1 %v4123_v55 }
  0x7f   : > { %1597 = vmatprep.mubr.bf16.mxu0 %v4125_v40  ;;  %2520 = vmatprep.mubr.msk.bf16.mxu1 %vm3392_vm4, %v4034_v49 }
  0x86   : > { %2484 = vmatmul.mubr.msk.bf16.gmra.mrb[44].mxu0 %vm3392_vm4, %v4149_v45  ;;  %1727 = vmatmul.mubr.bf16.gmra.mrb[44].mxu1 %v4151_v58 }
  0x87   : > { %1831 = vmatprep.mubr.bf16.mxu0 %v3812_v5  ;;  %2523 = vmatprep.mubr.msk.bf16.mxu1 %vm3392_vm4, %v4081_v62  ;;  %v3202_v5 = vld [vmem:[%s4802_s3 + $0x208] sm:$0xff]  }
  0x8e   : > { %1832 = vmatmul.mubr.bf16.vlgmr.msra.gmra.mrb[48].mxu0 %v3459_v44  ;;  %1735 = vmatmul.mubr.bf16.gmra.mrb[48].mxu1 %v4166_v32  ;;  %v4186_v44 = vpack.c.bf16 %v775_v19, %v773_v14  ;;  %v359_v14 = vmul.f32 %v3964_v63, %v275_v8  ;;  %v4250_v19 = vpack.c.bf16 %v795_v36, %v793_v6 }
  0x8f   : > { %3066 = vmatpush3.bf16.msra.mxu0 %v3911_v52  ;;  %2526 = vmatprep.mubr.msk.bf16.mxu1 %vm3392_vm4, %v4118_v25  ;;  %v776_v52 = vrot.slane %v4025_v60, 2 }
  0x90   : > { %1839 = vmatprep.mubr.bf16.mxu0 %v3864_v56  ;;  %3067 = vmatprep.subr.bf16.mxu0 %v3202_v5 }
  0x91   : > { %v778_v60 = vsel %vm725_vm5, %v776_v52, %v777_v15  ;;  %v419_v52 = vadd.f32 %v3990_v20, %v359_v14  ;;  %v4878_v15 = vld [vmem:[#allocation20_spill] sm:$0xff] }
  0x92   : > { %v4205_v3 = vpack.c.bf16 %v780_v24, %v778_v60 }
  0x93   : > { %3068 = vmatpush3.bf16.msra.mxu0 %v3202_v5  ;;  %v358_v5 = vmul.f32 %v3964_v63, %v274_v43  ;;  %v473_v60 = vmax.f32 %v419_v52, 0.0  ;;  %v4888_v43 = vld [vmem:[#allocation14_spill] sm:$0xff] }
  0x94   : > { %3069 = vmatprep.subr.bf16.mxu0 %v3205_v41 }
  0x95   : > { %v867_v53 = vrot.slane %v473_v60, 2  ;;  %v859_v42 = vrot.slane %v473_v60, 1 }
  0x96   : > { %1840 = vmatmul.mubr.bf16.gmra.mrb[52].mxu0 %v3546_v50  ;;  %1743 = vmatmul.mubr.bf16.gmra.mrb[52].mxu1 %v4186_v44 }
  0x97   : > { %1847 = vmatprep.mubr.bf16.mxu0 %v3953_v59  ;;  %2529 = vmatprep.mubr.msk.bf16.mxu1 %vm3392_vm4, %v4149_v45 }
  0x98   : > { %3070 = vmatpush3.bf16.msra.mxu0 %v3205_v41  ;;  %v418_v41 = vadd.f32 %v3990_v20, %v358_v5 }
  0x99   : > { %3071 = vmatprep.subr.bf16.mxu0 %v3208_v4 }
  0x9c   : > { %3072 = vmatpush3.bf16.msra.mxu0 %v3208_v4  ;;  %v472_v4 = vmax.f32 %v418_v41, 0.0 }
  0x9d   : > { %3073 = vmatprep.subr.bf16.mxu0 %v3209_v16 }
  0x9e   : > { %1848 = vmatmul.mubr.bf16.gmra.mrb[56].mxu0 %v3631_v17  ;;  %1751 = vmatmul.mubr.bf16.gmra.mrb[56].mxu1 %v4205_v3  ;;  %v4260_v24 = vpack.c.bf16 %v473_v60, %v472_v4 }
  0x9f   : > { %1855 = vmatprep.mubr.bf16.mxu0 %v4043_v51  ;;  %2532 = vmatprep.mubr.msk.bf16.mxu1 %vm3392_vm4, %v3398_v1 }
  0xa0   : > { %3074 = vmatpush3.bf16.msra.mxu0 %v3209_v16  ;;  %v4880_v16 = vld [vmem:[#allocation21_spill] sm:$0xff] }
  0xa1   : > { %3075 = vmatprep.subr.bf16.mxu0 %v3210_v26 }
  0xa4   : > { %3076 = vmatpush3.bf16.msra.mxu0 %v3210_v26  ;;  %v4884_v26 = vld [vmem:[#allocation3_spill] sm:$0xff] }
  0xa5   : > { %3077 = vmatprep.subr.bf16.mxu0 %v3211_v12 }
  0xa6   : > { %1856 = vmatmul.mubr.bf16.gmra.mrb[60].mxu0 %v4871_v34  ;;  %1759 = vmatmul.mubr.bf16.gmra.mrb[60].mxu1 %v4224_v46 }
  0xa7   : > { %1863 = vmatprep.mubr.bf16.mxu0 %v4084_v11  ;;  %2535 = vmatprep.mubr.msk.bf16.mxu1 %vm3392_vm4, %v4872_v35 }
  0xa8   : > { %3078 = vmatpush3.bf16.msra.mxu0 %v3211_v12 }
  0xa9   : > { %3079 = vmatprep.subr.bf16.mxu0 %v3212_v10 }
  0xac   : > { %3080 = vmatpush3.bf16.msra.mxu0 %v3212_v10  ;;  %v4886_v10 = vld [vmem:[#allocation8_spill] sm:$0xff] }
  0xae   : > { %1864 = vmatmul.mubr.bf16.gmra.mrb[64].mxu0 %v4876_v2  ;;  %1767 = vmatmul.mubr.bf16.gmra.mrb[64].mxu1 %v4110_v31 }
  0xaf   : > { %1871 = vmatprep.mubr.bf16.mxu0 %v4123_v55  ;;  %2538 = vmatprep.mubr.msk.bf16.mxu1 %vm3392_vm4, %v4877_v23 }
  0xb6   : > { %1872 = vmatmul.mubr.bf16.gmra.mrb[68].mxu0 %v4878_v15  ;;  %1775 = vmatmul.mubr.bf16.gmra.mrb[68].mxu1 %v4250_v19 }
  0xb7   : > { %1879 = vmatprep.mubr.bf16.mxu0 %v4151_v58  ;;  %2541 = vmatprep.mubr.msk.bf16.mxu1 %vm3392_vm4, %v4879_v38 }
  0xbe   : > { %1880 = vmatmul.mubr.bf16.gmra.mrb[72].mxu0 %v4880_v16  ;;  %1783 = vmatmul.mubr.bf16.gmra.mrb[72].mxu1 %v4127_v39 }
  0xbf   : > { %1887 = vmatprep.mubr.bf16.mxu0 %v4166_v32  ;;  %2544 = vmatprep.mubr.msk.bf16.mxu1 %vm3392_vm4, %v4260_v24 }
  0xc6   : > { %1888 = vmatmul.mubr.bf16.gmra.mrb[76].mxu0 %v3971_v29  ;;  %1791 = vmatmul.mubr.bf16.gmra.mrb[76].mxu1 %v4141_v47 }
  0xc7   : > { %1895 = vmatprep.mubr.bf16.mxu0 %v4186_v44  ;;  %1992 = vmatprep.mubr.bf16.mxu1 %v3546_v50  ;;  %v4883_v50 = vld [vmem:[#allocation15_spill] sm:$0xff] }
  0xce   : > { %1896 = vmatmul.mubr.bf16.gmra.mrb[80].mxu0 %v4048_v27  ;;  %2547 = vmatmul.mubr.msk.bf16.vlgmr.msra.gmra.mrb[80].mxu1 %vm3392_vm4, %v4881_v54 }
  0xcf   : > { %1903 = vmatprep.mubr.bf16.mxu0 %v4205_v3  ;;  %2000 = vmatprep.mubr.bf16.mxu1 %v3631_v17  ;;  %v276_v17 = vld [vmem:[%s3301_s16 + $0x190] sm:$0x3] }
  0xd0   : > { %v360_v7 = vmul.f32 %v3964_v63, %v276_v17  ;;  %v526_v63 = vsel %vm286_vm0, %v472_v4, 0.0 }
  0xd1   : > { %v866_v30 = vrot.slane %v526_v63, 2  ;;  %v858_v21 = vrot.slane %v526_v63, 1 }
  0xd2   : > { %v420_v48 = vadd.f32 %v3990_v20, %v360_v7 }
  0xd4   : > { %v474_v12 = vmax.f32 %v420_v48, 0.0 }
  0xd6   : > { %1904 = vmatmul.mubr.bf16.gmra.mrb[84].mxu0 %v4089_v28  ;;  %2550 = vmatmul.mubr.msk.bf16.gmra.mrb[84].mxu1 %vm3392_vm4, %v4882_v9 }
  0xd7   : > { %1911 = vmatprep.mubr.bf16.mxu0 %v4224_v46  ;;  %2008 = vmatprep.mubr.bf16.mxu1 %v4871_v34  ;;  %v528_v34 = vsel %vm297_vm1, %v474_v12, 0.0 }
  0xd8   : > { %v869_v20 = vrot.slane %v528_v34, 2  ;;  %v861_v22 = vrot.slane %v528_v34, 1 }
  0xda   : > { %v870_v13 = vsel %vm725_vm5, %v867_v53, %v869_v20 }
  0xde   : > { %1912 = vmatmul.mubr.bf16.gmra.mrb[88].mxu0 %v4125_v40  ;;  %2553 = vmatmul.mubr.msk.bf16.gmra.mrb[88].mxu1 %vm3392_vm4, %v4883_v50 }
  0xdf   : > { %1919 = vmatprep.mubr.bf16.mxu0 %v4110_v31  ;;  %2016 = vmatprep.mubr.bf16.mxu1 %v4876_v2 }
  0xe6   : > { %1920 = vmatmul.mubr.bf16.gmra.mrb[92].mxu0 %v4884_v26  ;;  %2556 = vmatmul.mubr.msk.bf16.gmra.mrb[92].mxu1 %vm3392_vm4, %v4885_v18 }
  0xe7   : > { %1927 = vmatprep.mubr.bf16.mxu0 %v4250_v19  ;;  %2024 = vmatprep.mubr.bf16.mxu1 %v4878_v15 }
  0xee   : > { %1928 = vmatmul.mubr.bf16.gmra.mrb[96].mxu0 %v4886_v10  ;;  %2559 = vmatmul.mubr.msk.bf16.gmra.mrb[96].mxu1 %vm3392_vm4, %v3884_v33  ;;  %v868_v33 = vsel %vm725_vm5, %v866_v30, %v867_v53 }
  0xef   : > { %1935 = vmatprep.mubr.bf16.mxu0 %v4127_v39  ;;  %2032 = vmatprep.mubr.bf16.mxu1 %v4880_v16  ;;  %v4317_v61 = vpack.c.bf16 %v870_v13, %v868_v33 }
  0xf6   : > { %1936 = vmatmul.mubr.bf16.gmra.mrb[100].mxu0 %v4887_v57  ;;  %2562 = vmatmul.mubr.msk.bf16.gmra.mrb[100].mxu1 %vm3392_vm4, %v3951_v37  ;;  %v860_v37 = vsel %vm596_vm2, %v858_v21, %v859_v42 }
  0xf7   : > { %1943 = vmatprep.mubr.bf16.mxu0 %v4141_v47  ;;  %2040 = vmatprep.mubr.bf16.mxu1 %v3971_v29  ;;  %v862_v29 = vsel %vm596_vm2, %v859_v42, %v861_v22 }
  0xf8   : > { %v4331_v15 = vpack.c.bf16 %v862_v29, %v860_v37 }
  0xfe   : > { %1944 = vmatmul.mubr.bf16.gmra.mrb[104].mxu0 %v4888_v43  ;;  %2565 = vmatmul.mubr.msk.bf16.gmra.mrb[104].mxu1 %vm3392_vm4, %v4034_v49 }
  0xff   : > { %1951 = vmatprep.mubr.bf16.mxu0 %v4317_v61  ;;  %2048 = vmatprep.mubr.bf16.mxu1 %v4048_v27 }
 0x101   : > { %v2681_v8 = vpop.f32.mrb[0].mxu1  ;;  %v2609_v2 = vpop.f32.mrb[0].mxu0 }
 0x102   : > { %v2682_v6 = vpop.f32.mrb[1].mxu1  ;;  %v2610_v36 = vpop.f32.mrb[1].mxu0 }
 0x103   : > { %v4327_v5 = vadd.f32 %v2682_v6, %v2681_v8  ;;  %v2684_v14 = vpop.f32.mrb[2].mxu1  ;;  %v4329_v41 = vadd.f32 %v2610_v36, %v2609_v2  ;;  %v2612_v52 = vpop.f32.mrb[2].mxu0 }
 0x104   : > { %v2685_v49 = vpop.f32.mrb[3].mxu1  ;;  %v2613_v4 = vpop.f32.mrb[3].mxu0 }
 0x105   : > { %v4333_v60 = vadd.f32 %v2685_v49, %v2684_v14  ;;  %v4335_v16 = vadd.f32 %v2613_v4, %v2612_v52 }
 0x106   : > { %1952 = vmatmul.mubr.bf16.gmra.mrb[108].mxu0 %v4331_v15  ;;  %2568 = vmatmul.mubr.msk.bf16.gmra.mrb[108].mxu1 %vm3392_vm4, %v4081_v62 }
 0x107   : > { %3081 = vmatprep.mubr.bf16.mxu0 %v3864_v56  ;;  %2056 = vmatprep.mubr.bf16.mxu1 %v4089_v28 }
 0x109   : > { %v2687_v27 = vpop.f32.mrb[4].mxu1  ;;  %v2615_v54 = vpop.f32.mrb[4].mxu0 }
 0x10a   : > { %v2688_v9 = vpop.f32.mrb[5].mxu1  ;;  %v2616_v50 = vpop.f32.mrb[5].mxu0 }
 0x10b   : > { %v4343_v17 = vadd.f32 %v2688_v9, %v2687_v27  ;;  %v2690_v7 = vpop.f32.mrb[6].mxu1  ;;  %v4345_v18 = vadd.f32 %v2616_v50, %v2615_v54  ;;  %v2618_v48 = vpop.f32.mrb[6].mxu0 }
 0x10c   : > { %v2691_v12 = vpop.f32.mrb[7].mxu1  ;;  %v2619_v63 = vpop.f32.mrb[7].mxu0 }
 0x10d   : > { %v4347_v34 = vadd.f32 %v2691_v12, %v2690_v7  ;;  %v4349_v30 = vadd.f32 %v2619_v63, %v2618_v48 }
 0x10e   : > { %3082 = vmatmul.mubr.bf16.vlgmr.msra.gmra.mrb[112].mxu0 %v3953_v59  ;;  %2571 = vmatmul.mubr.msk.bf16.gmra.mrb[112].mxu1 %vm3392_vm4, %v4118_v25 }
 0x10f   : > { %3085 = vmatprep.mubr.bf16.mxu0 %v4043_v51  ;;  %2064 = vmatprep.mubr.bf16.mxu1 %v4125_v40 }
 0x111   : > { %v2621_v56 = vpop.f32.mrb[8].mxu0  ;;  %v2693_v62 = vpop.f32.mrb[8].mxu1 }
 0x112   : > { %v2622_v28 = vpop.f32.mrb[9].mxu0  ;;  %v2694_v53 = vpop.f32.mrb[9].mxu1 }
 0x113   : > { %v4357_v20 = vadd.f32 %v2622_v28, %v2621_v56  ;;  %v2624_v33 = vpop.f32.mrb[10].mxu0  ;;  %v4359_v13 = vadd.f32 %v2694_v53, %v2693_v62  ;;  %v2696_v21 = vpop.f32.mrb[10].mxu1 }
 0x114   : > { %v2625_v42 = vpop.f32.mrb[11].mxu0  ;;  %v2697_v59 = vpop.f32.mrb[11].mxu1 }
 0x115   : > { %v4361_v22 = vadd.f32 %v2625_v42, %v2624_v33  ;;  %v4363_v37 = vadd.f32 %v2697_v59, %v2696_v21 }
 0x116   : > { %3086 = vmatmul.mubr.bf16.gmra.mrb[116].mxu0 %v4084_v11  ;;  %2574 = vmatmul.mubr.msk.bf16.gmra.mrb[116].mxu1 %vm3392_vm4, %v4149_v45 }
 0x117   : > { %3089 = vmatprep.mubr.bf16.mxu0 %v4123_v55  ;;  %2072 = vmatprep.mubr.bf16.mxu1 %v4884_v26  ;;  %v4381_v55 = vld [vmem:[%s4803_s4] ss:$0 sm:$0xff] }
 0x118   : > { %v1512_v50 = vadd.f32 %v4329_v41, %v4381_v55  ;;  %v1515_v63 = vadd.f32 %v4335_v16, %v4381_v55 }
 0x119   : > { %v2627_v51 = vpop.f32.mrb[12].mxu0  ;;  %v2699_v40 = vpop.f32.mrb[12].mxu1 }
 0x11a   : > { %v2628_v25 = vpop.f32.mrb[13].mxu0  ;;  %v2700_v2 = vpop.f32.mrb[13].mxu1 }
 0x11b   : > { %v4371_v29 = vadd.f32 %v2628_v25, %v2627_v51  ;;  %v2630_v8 = vpop.f32.mrb[14].mxu0  ;;  %v4373_v36 = vadd.f32 %v2700_v2, %v2699_v40  ;;  %v2702_v14 = vpop.f32.mrb[14].mxu1 }
 0x11c   : > { %v2631_v6 = vpop.f32.mrb[15].mxu0  ;;  %v2703_v52 = vpop.f32.mrb[15].mxu1 }
 0x11d   : > { %v4375_v11 = vadd.f32 %v2631_v6, %v2630_v8  ;;  %v2704_v49 = vadd.f32 %v2703_v52, %v2702_v14 }
 0x11e   : > { %3090 = vmatmul.mubr.bf16.gmra.mrb[120].mxu0 %v4151_v58  ;;  %2577 = vmatmul.mubr.msk.bf16.gmra.mrb[120].mxu1 %vm3392_vm4, %v3398_v1 }
 0x11f   : > { %3093 = vmatprep.mubr.bf16.mxu0 %v4166_v32  ;;  %v4388_v45 = vadd.f32 %v2704_v49, %v4381_v55  ;;  %2080 = vmatprep.mubr.bf16.mxu1 %v4886_v10 }
 0x121   : > { %v2633_v26 = vpop.f32.mrb[16].mxu0  ;;  %v2721_v4 = vpop.f32.mrb[16].mxu1 }
 0x122   : > { %v2634_v27 = vpop.f32.mrb[17].mxu0  ;;  %v2722_v58 = vpop.f32.mrb[17].mxu1 }
 0x123   : > { %v4391_v54 = vadd.f32 %v2634_v27, %v2633_v26  ;;  %v2636_v9 = vpop.f32.mrb[18].mxu0  ;;  %v2723_v7 = vadd.f32 %v2722_v58, %v2721_v4  ;;  %v2724_v48 = vpop.f32.mrb[18].mxu1 }
 0x124   : > { %v2637_v1 = vpop.f32.mrb[19].mxu0  ;;  %v2725_v12 = vpop.f32.mrb[19].mxu1 }
 0x125   : > { %v4395_v32 = vadd.f32 %v2637_v1, %v2636_v9  ;;  %v4399_v10 = vadd.f32 %v2723_v7, %v1512_v50  ;;  %v2726_v56 = vadd.f32 %v2725_v12, %v2724_v48 }
 0x126   : > { %3094 = vmatmul.mubr.bf16.gmra.mrb[124].mxu0 %v4186_v44  ;;  %2580 = vmatmul.mubr.msk.bf16.gmra.mrb[124].mxu1 %vm3392_vm4, %v4872_v35  ;;  %v1520_v44 = vadd.f32 %v4345_v18, %v4381_v55 }
 0x127   : > { %3097 = vmatprep.mubr.bf16.mxu0 %v4205_v3  ;;  %v4406_v41 = vadd.f32 %v2726_v56, %v1515_v63  ;;  %2088 = vmatprep.mubr.bf16.mxu1 %v4887_v57  ;;  %v1523_v3 = vadd.f32 %v4349_v30, %v4381_v55 }
 0x129   : > { %v2639_v62 = vpop.f32.mrb[20].mxu0  ;;  %v2727_v28 = vpop.f32.mrb[20].mxu1 }
 0x12a   : > { %v2640_v53 = vpop.f32.mrb[21].mxu0  ;;  %v2728_v33 = vpop.f32.mrb[21].mxu1 }
 0x12b   : > { %v4409_v16 = vadd.f32 %v2640_v53, %v2639_v62  ;;  %v2642_v21 = vpop.f32.mrb[22].mxu0  ;;  %v2729_v42 = vadd.f32 %v2728_v33, %v2727_v28  ;;  %v2730_v59 = vpop.f32.mrb[22].mxu1  ;;  %v4889_v53 = vld [vmem:[#allocation2_spill] sm:$0xff] }
 0x12c   : > { %v2643_v51 = vpop.f32.mrb[23].mxu0  ;;  %v2731_v35 = vpop.f32.mrb[23].mxu1 }
 0x12d   : > { %v4413_v25 = vadd.f32 %v2643_v51, %v2642_v21  ;;  %v4417_v57 = vadd.f32 %v2729_v42, %v1520_v44  ;;  %v2732_v40 = vadd.f32 %v2731_v35, %v2730_v59 }
 0x12e   : > { %3098 = vmatmul.mubr.bf16.gmra.mrb[128].mxu0 %v4224_v46  ;;  %2583 = vmatmul.mubr.msk.bf16.gmra.mrb[128].mxu1 %vm3392_vm4, %v4877_v23  ;;  %v1528_v46 = vadd.f32 %v4357_v20, %v4381_v55 }
 0x12f   : > { %3101 = vmatprep.mubr.bf16.mxu0 %v4110_v31  ;;  %v4424_v18 = vadd.f32 %v2732_v40, %v1523_v3  ;;  %2096 = vmatprep.mubr.bf16.mxu1 %v4888_v43  ;;  %v1531_v31 = vadd.f32 %v4361_v22, %v4381_v55 }
 0x131   : > { %v2645_v8 = vpop.f32.mrb[24].mxu0  ;;  %v2733_v2 = vpop.f32.mrb[24].mxu1 }
 0x132   : > { %v2646_v6 = vpop.f32.mrb[25].mxu0  ;;  %v2734_v14 = vpop.f32.mrb[25].mxu1 }
 0x133   : > { %v4427_v30 = vadd.f32 %v2646_v6, %v2645_v8  ;;  %v2648_v52 = vpop.f32.mrb[26].mxu0  ;;  %v2735_v49 = vadd.f32 %v2734_v14, %v2733_v2  ;;  %v2736_v26 = vpop.f32.mrb[26].mxu1  ;;  %v4890_v2 = vld [vmem:[#allocation16_spill] sm:$0xff]  ;;  %v4891_v6 = vmov 0.0|0.0  }
 0x134   : > { %v2649_v4 = vpop.f32.mrb[27].mxu0  ;;  %v2737_v23 = vpop.f32.mrb[27].mxu1 }
 0x135   : > { %v4431_v27 = vadd.f32 %v2649_v4, %v2648_v52  ;;  %v4435_v43 = vadd.f32 %v2735_v49, %v1528_v46  ;;  %v2738_v58 = vadd.f32 %v2737_v23, %v2736_v26  ;;  %v1552_v23 = vadd.f32 %v4409_v16, %v4381_v55 }
 0x136   : > { %3102 = vmatmul.mubr.bf16.gmra.mrb[132].mxu0 %v4250_v19  ;;  %2586 = vmatmul.mubr.msk.bf16.gmra.mrb[132].mxu1 %vm3392_vm4, %v4879_v38  ;;  %v1536_v19 = vadd.f32 %v4371_v29, %v4381_v55 }
 0x137   : > { %3105 = vmatprep.mubr.bf16.mxu0 %v4127_v39  ;;  %v4442_v20 = vadd.f32 %v2738_v58, %v1531_v31  ;;  %2104 = vmatprep.mubr.bf16.mxu1 %v4331_v15  ;;  %v1539_v39 = vadd.f32 %v4375_v11, %v4381_v55 }
 0x139   : > { %v2651_v9 = vpop.f32.mrb[28].mxu0  ;;  %v2739_v50 = vpop.f32.mrb[28].mxu1 }
 0x13a   : > { %v2652_v7 = vpop.f32.mrb[29].mxu0  ;;  %v2740_v48 = vpop.f32.mrb[29].mxu1 }
 0x13b   : > { %v4445_v22 = vadd.f32 %v2652_v7, %v2651_v9  ;;  %v2654_v1 = vpop.f32.mrb[30].mxu0  ;;  %v2741_v12 = vadd.f32 %v2740_v48, %v2739_v50  ;;  %v2742_v63 = vpop.f32.mrb[30].mxu1  ;;  %v1555_v7 = vadd.f32 %v4413_v25, %v4381_v55 }
 0x13c   : > { %v2655_v56 = vpop.f32.mrb[31].mxu0  ;;  %v2743_v38 = vpop.f32.mrb[31].mxu1 }
 0x13d   : > { %v4449_v62 = vadd.f32 %v2655_v56, %v2654_v1  ;;  %v4453_v15 = vadd.f32 %v2741_v12, %v1536_v19  ;;  %v2744_v28 = vadd.f32 %v2743_v38, %v2742_v63 }
 0x13e   : > { %3106 = vmatmul.mubr.bf16.gmra.mrb[136].mxu0 %v4141_v47  ;;  %2589 = vmatmul.mubr.msk.bf16.gmra.mrb[136].mxu1 %vm3392_vm4, %v4260_v24  ;;  %v1544_v47 = vadd.f32 %v4391_v54, %v4381_v55 }
 0x13f   : > { %3109 = vmatprep.mubr.bf16.mxu0 %v4317_v61  ;;  %v4460_v29 = vadd.f32 %v2744_v28, %v1539_v39  ;;  %2112 = vmatprep.mubr.bf16.mxu1 %v4889_v53  ;;  %v1547_v61 = vadd.f32 %v4395_v32, %v4381_v55  ;;  %v1560_v28 = vadd.f32 %v4427_v30, %v4381_v55 }
 0x141   : > { %v2657_v33 = vpop.f32.mrb[32].mxu0  ;;  %v2745_v21 = vpop.f32.mrb[32].mxu1 }
 0x142   : > { %v2658_v44 = vpop.f32.mrb[33].mxu0  ;;  %v2746_v42 = vpop.f32.mrb[33].mxu1 }
 0x143   : > { %v4463_v11 = vadd.f32 %v2658_v44, %v2657_v33  ;;  %v2660_v59 = vpop.f32.mrb[34].mxu0  ;;  %v2747_v51 = vadd.f32 %v2746_v42, %v2745_v21  ;;  %v2748_v35 = vpop.f32.mrb[34].mxu1  ;;  %v1563_v42 = vadd.f32 %v4431_v27, %v4381_v55 }
 0x144   : > { %v2661_v0 = vpop.f32.mrb[35].mxu0  ;;  %v2749_v24 = vpop.f32.mrb[35].mxu1 }
 0x145   : > { %v4467_v3 = vadd.f32 %v2661_v0, %v2660_v59  ;;  %v4471_v40 = vadd.f32 %v2747_v51, %v1544_v47  ;;  %v2750_v8 = vadd.f32 %v2749_v24, %v2748_v35 }
 0x146   : > { %3110 = vmatmul.mubr.bf16.gmra.mrb[140].mxu0 %v4890_v2  ;;  %2113 = vmatmul.mubr.bf16.gmra.mrb[140].mxu1 %v4891_v6  ;;  %v1568_v2 = vadd.f32 %v4445_v22, %v4381_v55 }
 0x147   : > { %v4475_v14 = vadd.f32 %v2750_v8, %v1547_v61 }
 0x149   : > { %v2663_v52 = vpop.f32.mrb[36].mxu0  ;;  %v2751_v54 = vpop.f32.mrb[36].mxu1 }
 0x14a   : > { %v2664_v46 = vpop.f32.mrb[37].mxu0  ;;  %v2752_v49 = vpop.f32.mrb[37].mxu1 }
 0x14b   : > { %v4477_v26 = vadd.f32 %v2664_v46, %v2663_v52  ;;  %v2666_v4 = vpop.f32.mrb[38].mxu0  ;;  %v2753_v32 = vadd.f32 %v2752_v49, %v2751_v54  ;;  %v2754_v31 = vpop.f32.mrb[38].mxu1  ;;  %v1571_v49 = vadd.f32 %v4449_v62, %v4381_v55 }
 0x14c   : > { %v2667_v58 = vpop.f32.mrb[39].mxu0  ;;  %v2755_v9 = vpop.f32.mrb[39].mxu1 }
 0x14d   : > { %v4481_v50 = vadd.f32 %v2667_v58, %v2666_v4  ;;  %v4485_v48 = vadd.f32 %v2753_v32, %v1552_v23  ;;  %v2756_v1 = vadd.f32 %v2755_v9, %v2754_v31 }
 0x14f   : > { %v4487_v19 = vadd.f32 %v2756_v1, %v1555_v7 }
 0x151   : > { %v2669_v12 = vpop.f32.mrb[40].mxu0  ;;  %v2757_v63 = vpop.f32.mrb[40].mxu1 }
 0x152   : > { %v2670_v56 = vpop.f32.mrb[41].mxu0  ;;  %v2758_v38 = vpop.f32.mrb[41].mxu1 }
 0x153   : > { %v4489_v39 = vadd.f32 %v2670_v56, %v2669_v12  ;;  %v2672_v16 = vpop.f32.mrb[42].mxu0  ;;  %v2759_v53 = vadd.f32 %v2758_v38, %v2757_v63  ;;  %v2760_v33 = vpop.f32.mrb[42].mxu1  ;;  %v1576_v12 = vadd.f32 %v4463_v11, %v4381_v55 }
 0x154   : > { %v2673_v21 = vpop.f32.mrb[43].mxu0  ;;  %v2761_v44 = vpop.f32.mrb[43].mxu1 }
 0x155   : > { %v4493_v25 = vadd.f32 %v2673_v21, %v2672_v16  ;;  %v4497_v59 = vadd.f32 %v2759_v53, %v1560_v28  ;;  %v2762_v47 = vadd.f32 %v2761_v44, %v2760_v33  ;;  %v1579_v53 = vadd.f32 %v4467_v3, %v4381_v55 }
 0x157   : > { %v4499_v51 = vadd.f32 %v2762_v47, %v1563_v42 }
 0x159   : > { %v2675_v35 = vpop.f32.mrb[44].mxu0  ;;  %v2763_v0 = vpop.f32.mrb[44].mxu1 }
 0x15a   : > { %v2676_v24 = vpop.f32.mrb[45].mxu0  ;;  %v2764_v61 = vpop.f32.mrb[45].mxu1 }
 0x15b   : > { %v4501_v8 = vadd.f32 %v2676_v24, %v2675_v35  ;;  %v2678_v30 = vpop.f32.mrb[46].mxu0  ;;  %v2765_v6 = vadd.f32 %v2764_v61, %v2763_v0  ;;  %v2766_v52 = vpop.f32.mrb[46].mxu1  ;;  %v1584_v61 = vadd.f32 %v4477_v26, %v4381_v55 }
 0x15c   : > { %v2679_v54 = vpop.f32.mrb[47].mxu0  ;;  %v2767_v46 = vpop.f32.mrb[47].mxu1 }
 0x15d   : > { %v4505_v27 = vadd.f32 %v2679_v54, %v2678_v30  ;;  %v4509_v4 = vadd.f32 %v2765_v6, %v1568_v2  ;;  %v2768_v23 = vadd.f32 %v2767_v46, %v2766_v52  ;;  %v1587_v54 = vadd.f32 %v4481_v50, %v4381_v55 }
 0x15f   : > { %v4511_v32 = vadd.f32 %v2768_v23, %v1571_v49 }
 0x161   : > { %v2833_v31 = vpop.f32.mrb[48].mxu0  ;;  %v2769_v58 = vpop.f32.mrb[48].mxu1 }
 0x162   : > { %v2834_v9 = vpop.f32.mrb[49].mxu0  ;;  %v2770_v7 = vpop.f32.mrb[49].mxu1 }
 0x163   : > { %v2835_v1 = vadd.f32 %v2834_v9, %v2833_v31  ;;  %v2836_v22 = vpop.f32.mrb[50].mxu0  ;;  %v2771_v63 = vadd.f32 %v2770_v7, %v2769_v58  ;;  %v2772_v56 = vpop.f32.mrb[50].mxu1 }
 0x164   : > { %v2837_v38 = vpop.f32.mrb[51].mxu0  ;;  %v2773_v62 = vpop.f32.mrb[51].mxu1 }
 0x165   : > { %v4516_v16 = vadd.f32 %v2835_v1, %v4399_v10  ;;  %v2838_v28 = vadd.f32 %v2837_v38, %v2836_v22  ;;  %v4520_v33 = vadd.f32 %v2771_v63, %v1576_v12  ;;  %v2774_v21 = vadd.f32 %v2773_v62, %v2772_v56 }
 0x166   : > { %v1592_v22 = vadd.f32 %v4489_v39, %v4381_v55  ;;  %v1595_v62 = vadd.f32 %v4493_v25, %v4381_v55 }
 0x167   : > { %v4523_v44 = vadd.f32 %v2838_v28, %v4406_v41  ;;  %v4525_v42 = vadd.f32 %v2774_v21, %v1579_v53 }
 0x169   : > { %v2839_v11 = vpop.f32.mrb[52].mxu0  ;;  %v2775_v47 = vpop.f32.mrb[52].mxu1 }
 0x16a   : > { %v2840_v35 = vpop.f32.mrb[53].mxu0  ;;  %v2776_v0 = vpop.f32.mrb[53].mxu1 }
 0x16b   : > { %v2841_v24 = vadd.f32 %v2840_v35, %v2839_v11  ;;  %v2842_v10 = vpop.f32.mrb[54].mxu0  ;;  %v2777_v30 = vadd.f32 %v2776_v0, %v2775_v47  ;;  %v2778_v2 = vpop.f32.mrb[54].mxu1 }
 0x16c   : > { %v2843_v3 = vpop.f32.mrb[55].mxu0  ;;  %v2779_v52 = vpop.f32.mrb[55].mxu1 }
 0x16d   : > { %v4530_v6 = vadd.f32 %v2841_v24, %v4417_v57  ;;  %v2844_v41 = vadd.f32 %v2843_v3, %v2842_v10  ;;  %v4534_v46 = vadd.f32 %v2777_v30, %v1584_v61  ;;  %v2780_v49 = vadd.f32 %v2779_v52, %v2778_v2 }
 0x16e   : > { %v1600_v10 = vadd.f32 %v4501_v8, %v4381_v55  ;;  %v1603_v52 = vadd.f32 %v4505_v27, %v4381_v55 }
 0x16f   : > { %v4537_v23 = vadd.f32 %v2844_v41, %v4424_v18  ;;  %v4539_v31 = vadd.f32 %v2780_v49, %v1587_v54 }
 0x171   : > { %v2845_v26 = vpop.f32.mrb[56].mxu0  ;;  %v2781_v58 = vpop.f32.mrb[56].mxu1 }
 0x172   : > { %v2846_v9 = vpop.f32.mrb[57].mxu0  ;;  %v2782_v7 = vpop.f32.mrb[57].mxu1 }
 0x173   : > { %v2847_v1 = vadd.f32 %v2846_v9, %v2845_v26  ;;  %v2848_v57 = vpop.f32.mrb[58].mxu0  ;;  %v2783_v12 = vadd.f32 %v2782_v7, %v2781_v58  ;;  %v2784_v63 = vpop.f32.mrb[58].mxu1 }
 0x174   : > { %v2849_v50 = vpop.f32.mrb[59].mxu0  ;;  %v2785_v38 = vpop.f32.mrb[59].mxu1 }
 0x175   : > { %v4544_v56 = vadd.f32 %v2847_v1, %v4435_v43  ;;  %v2850_v18 = vadd.f32 %v2849_v50, %v2848_v57  ;;  %v4548_v28 = vadd.f32 %v2783_v12, %v1592_v22  ;;  %v2786_v53 = vadd.f32 %v2785_v38, %v2784_v63 }
 0x176   : > { %v1608_v57 = vadd.f32 %v4327_v5, %v4381_v55  ;;  %v1611_v38 = vadd.f32 %v4333_v60, %v4381_v55 }
 0x177   : > { %v4551_v21 = vadd.f32 %v2850_v18, %v4442_v20  ;;  %v4553_v11 = vadd.f32 %v2786_v53, %v1595_v62 }
 0x179   : > { %v2851_v39 = vpop.f32.mrb[60].mxu0  ;;  %v2787_v47 = vpop.f32.mrb[60].mxu1 }
 0x17a   : > { %v2852_v35 = vpop.f32.mrb[61].mxu0  ;;  %v2788_v0 = vpop.f32.mrb[61].mxu1 }
 0x17b   : > { %v2853_v24 = vadd.f32 %v2852_v35, %v2851_v39  ;;  %v2854_v43 = vpop.f32.mrb[62].mxu0  ;;  %v2789_v61 = vadd.f32 %v2788_v0, %v2787_v47  ;;  %v2790_v30 = vpop.f32.mrb[62].mxu1 }
 0x17c   : > { %v2855_v25 = vpop.f32.mrb[63].mxu0  ;;  %v2791_v3 = vpop.f32.mrb[63].mxu1 }
 0x17d   : > { %v4558_v2 = vadd.f32 %v2853_v24, %v4453_v15  ;;  %v2856_v20 = vadd.f32 %v2855_v25, %v2854_v43  ;;  %v4562_v41 = vadd.f32 %v2789_v61, %v1600_v10  ;;  %v2792_v54 = vadd.f32 %v2791_v3, %v2790_v30 }
 0x17e   : > { %v1616_v43 = vadd.f32 %v4343_v17, %v4381_v55  ;;  %v1619_v3 = vadd.f32 %v4347_v34, %v4381_v55 }
 0x17f   : > { %v4565_v49 = vadd.f32 %v2856_v20, %v4460_v29  ;;  %v4567_v26 = vadd.f32 %v2792_v54, %v1603_v52 }
 0x181   : > { %v2857_v8 = vpop.f32.mrb[64].mxu0  ;;  %v2793_v58 = vpop.f32.mrb[64].mxu1 }
 0x182   : > { %v2858_v9 = vpop.f32.mrb[65].mxu0  ;;  %v2794_v7 = vpop.f32.mrb[65].mxu1 }
 0x183   : > { %v2859_v1 = vadd.f32 %v2858_v9, %v2857_v8  ;;  %v2860_v15 = vpop.f32.mrb[66].mxu0  ;;  %v2795_v22 = vadd.f32 %v2794_v7, %v2793_v58  ;;  %v2796_v12 = vpop.f32.mrb[66].mxu1 }
 0x184   : > { %v2861_v27 = vpop.f32.mrb[67].mxu0  ;;  %v2797_v50 = vpop.f32.mrb[67].mxu1 }
 0x185   : > { %v4572_v63 = vadd.f32 %v2859_v1, %v4471_v40  ;;  %v2862_v29 = vadd.f32 %v2861_v27, %v2860_v15  ;;  %v4576_v18 = vadd.f32 %v2795_v22, %v1608_v57  ;;  %v2798_v62 = vadd.f32 %v2797_v50, %v2796_v12 }
 0x186   : > { %v1624_v15 = vadd.f32 %v4359_v13, %v4381_v55  ;;  %v1627_v50 = vadd.f32 %v4363_v37, %v4381_v55 }
 0x187   : > { %v4579_v53 = vadd.f32 %v2862_v29, %v4475_v14  ;;  %v4581_v39 = vadd.f32 %v2798_v62, %v1611_v38 }
 0x189   : > { %v2863_v5 = vpop.f32.mrb[68].mxu0  ;;  %v2799_v47 = vpop.f32.mrb[68].mxu1 }
 0x18a   : > { %v2864_v35 = vpop.f32.mrb[69].mxu0  ;;  %v2800_v0 = vpop.f32.mrb[69].mxu1 }
 0x18b   : > { %v2865_v24 = vadd.f32 %v2864_v35, %v2863_v5  ;;  %v2866_v40 = vpop.f32.mrb[70].mxu0  ;;  %v2801_v10 = vadd.f32 %v2800_v0, %v2799_v47  ;;  %v2802_v61 = vpop.f32.mrb[70].mxu1 }
 0x18c   : > { %v2867_v60 = vpop.f32.mrb[71].mxu0  ;;  %v2803_v25 = vpop.f32.mrb[71].mxu1 }
 0x18d   : > { %v4586_v30 = vadd.f32 %v2865_v24, %v4485_v48  ;;  %v2868_v14 = vadd.f32 %v2867_v60, %v2866_v40  ;;  %v4590_v20 = vadd.f32 %v2801_v10, %v1616_v43  ;;  %v2804_v52 = vadd.f32 %v2803_v25, %v2802_v61 }
 0x18e   : > { %v1632_v40 = vadd.f32 %v4373_v36, %v4381_v55 }
 0x18f   : > { %v4593_v54 = vadd.f32 %v2868_v14, %v4487_v19  ;;  %v4595_v8 = vadd.f32 %v2804_v52, %v1619_v3 }
 0x191   : > { %v2869_v17 = vpop.f32.mrb[72].mxu0  ;;  %v2805_v58 = vpop.f32.mrb[72].mxu1 }
 0x192   : > { %v2870_v9 = vpop.f32.mrb[73].mxu0  ;;  %v2806_v7 = vpop.f32.mrb[73].mxu1 }
 0x193   : > { %v2871_v1 = vadd.f32 %v2870_v9, %v2869_v17  ;;  %v2872_v48 = vpop.f32.mrb[74].mxu0  ;;  %v2807_v57 = vadd.f32 %v2806_v7, %v2805_v58  ;;  %v2808_v22 = vpop.f32.mrb[74].mxu1 }
 0x194   : > { %v2873_v34 = vpop.f32.mrb[75].mxu0  ;;  %v2809_v27 = vpop.f32.mrb[75].mxu1 }
 0x195   : > { %v4600_v12 = vadd.f32 %v2871_v1, %v4497_v59  ;;  %v2874_v19 = vadd.f32 %v2873_v34, %v2872_v48  ;;  %v4604_v29 = vadd.f32 %v2807_v57, %v1624_v15  ;;  %v2810_v38 = vadd.f32 %v2809_v27, %v2808_v22 }
 0x197   : > { %v4607_v62 = vadd.f32 %v2874_v19, %v4499_v51  ;;  %v4609_v5 = vadd.f32 %v2810_v38, %v1627_v50 }
 0x199   : > { %v2875_v13 = vpop.f32.mrb[76].mxu0  ;;  %v2811_v47 = vpop.f32.mrb[76].mxu1 }
 0x19a   : > { %v2876_v35 = vpop.f32.mrb[77].mxu0  ;;  %v2812_v0 = vpop.f32.mrb[77].mxu1 }
 0x19b   : > { %v2877_v24 = vadd.f32 %v2876_v35, %v2875_v13  ;;  %v2878_v59 = vpop.f32.mrb[78].mxu0  ;;  %v2813_v43 = vadd.f32 %v2812_v0, %v2811_v47  ;;  %v2814_v10 = vpop.f32.mrb[78].mxu1 }
 0x19c   : > { %v2879_v37 = vpop.f32.mrb[79].mxu0  ;;  %v2815_v60 = vpop.f32.mrb[79].mxu1 }
 0x19d   : > { %v4614_v61 = vadd.f32 %v2877_v24, %v4509_v4  ;;  %v2880_v51 = vadd.f32 %v2879_v37, %v2878_v59  ;;  %v4616_v25 = vadd.f32 %v2813_v43, %v1632_v40  ;;  %v2816_v14 = vadd.f32 %v2815_v60, %v2814_v10 }
 0x19f   : > { %v4619_v3 = vadd.f32 %v2880_v51, %v4511_v32  ;;  %v4622_v52 = vadd.f32 %v2816_v14, %v4388_v45 }
 0x1a1   : > { %v2881_v17 = vpop.f32.mrb[80].mxu0  ;;  %v2945_v58 = vpop.f32.mrb[80].mxu1 }
 0x1a2   : > { %v2882_v36 = vpop.f32.mrb[81].mxu0  ;;  %v2946_v9 = vpop.f32.mrb[81].mxu1 }
 0x1a3   : > { %v2883_v55 = vadd.f32 %v2882_v36, %v2881_v17  ;;  %v2884_v7 = vpop.f32.mrb[82].mxu0  ;;  %v2947_v1 = vadd.f32 %v2946_v9, %v2945_v58  ;;  %v2948_v4 = vpop.f32.mrb[82].mxu1 }
 0x1a4   : > { %v2885_v48 = vpop.f32.mrb[83].mxu0  ;;  %v2949_v22 = vpop.f32.mrb[83].mxu1 }
 0x1a5   : > { %v4625_v15 = vadd.f32 %v2883_v55, %v4520_v33  ;;  %v2886_v57 = vadd.f32 %v2885_v48, %v2884_v7  ;;  %v2950_v34 = vadd.f32 %v2949_v22, %v2948_v4  ;;  %v4628_v32 = vadd.f32 %v2947_v1, %v4516_v16 }
 0x1a7   : > { %v4631_v45 = vadd.f32 %v2886_v57, %v4525_v42  ;;  %v4634_v27 = vadd.f32 %v2950_v34, %v4523_v44 }
 0x1a9   : > { %v2887_v19 = vpop.f32.mrb[84].mxu0  ;;  %v2951_v50 = vpop.f32.mrb[84].mxu1 }
 0x1aa   : > { %v2888_v38 = vpop.f32.mrb[85].mxu0  ;;  %v2952_v47 = vpop.f32.mrb[85].mxu1 }
 0x1ab   : > { %v2889_v13 = vadd.f32 %v2888_v38, %v2887_v19  ;;  %v2890_v35 = vpop.f32.mrb[86].mxu0  ;;  %v2953_v33 = vadd.f32 %v2952_v47, %v2951_v50  ;;  %v2954_v0 = vpop.f32.mrb[86].mxu1 }
 0x1ac   : > { %v2891_v24 = vpop.f32.mrb[87].mxu0  ;;  %v2955_v40 = vpop.f32.mrb[87].mxu1 }
 0x1ad   : > { %v4637_v59 = vadd.f32 %v2889_v13, %v4534_v46  ;;  %v2892_v16 = vadd.f32 %v2891_v24, %v2890_v35  ;;  %v2956_v43 = vadd.f32 %v2955_v40, %v2954_v0  ;;  %v4640_v42 = vadd.f32 %v2953_v33, %v4530_v6 }
 0x1af   : > { %v4643_v44 = vadd.f32 %v2892_v16, %v4539_v31  ;;  %v4646_v10 = vadd.f32 %v2956_v43, %v4537_v23 }
 0x1b1   : > { %v2893_v37 = vpop.f32.mrb[88].mxu0  ;;  %v2957_v60 = vpop.f32.mrb[88].mxu1 }
 0x1b2   : > { %v2894_v51 = vpop.f32.mrb[89].mxu0  ;;  %v2958_v17 = vpop.f32.mrb[89].mxu1 }
 0x1b3   : > { %v2895_v14 = vadd.f32 %v2894_v51, %v2893_v37  ;;  %v2896_v58 = vpop.f32.mrb[90].mxu0  ;;  %v2959_v46 = vadd.f32 %v2958_v17, %v2957_v60  ;;  %v2960_v36 = vpop.f32.mrb[90].mxu1 }
 0x1b4   : > { %v2897_v55 = vpop.f32.mrb[91].mxu0  ;;  %v2961_v7 = vpop.f32.mrb[91].mxu1 }
 0x1b5   : > { %v4649_v9 = vadd.f32 %v2895_v14, %v4548_v28  ;;  %v2898_v6 = vadd.f32 %v2897_v55, %v2896_v58  ;;  %v2962_v1 = vadd.f32 %v2961_v7, %v2960_v36  ;;  %v4652_v31 = vadd.f32 %v2959_v46, %v4544_v56 }
 0x1b7   : > { %v4655_v23 = vadd.f32 %v2898_v6, %v4553_v11  ;;  %v4658_v4 = vadd.f32 %v2962_v1, %v4551_v21 }
 0x1b9   : > { %v2899_v48 = vpop.f32.mrb[92].mxu0  ;;  %v2963_v57 = vpop.f32.mrb[92].mxu1 }
 0x1ba   : > { %v2900_v22 = vpop.f32.mrb[93].mxu0  ;;  %v2964_v19 = vpop.f32.mrb[93].mxu1 }
 0x1bb   : > { %v2901_v34 = vadd.f32 %v2900_v22, %v2899_v48  ;;  %v2902_v50 = vpop.f32.mrb[94].mxu0  ;;  %v2965_v28 = vadd.f32 %v2964_v19, %v2963_v57  ;;  %v2966_v38 = vpop.f32.mrb[94].mxu1 }
 0x1bc   : > { %v2903_v13 = vpop.f32.mrb[95].mxu0  ;;  %v2967_v35 = vpop.f32.mrb[95].mxu1 }
 0x1bd   : > { %v4661_v47 = vadd.f32 %v2901_v34, %v4562_v41  ;;  %v2904_v56 = vadd.f32 %v2903_v13, %v2902_v50  ;;  %v2968_v33 = vadd.f32 %v2967_v35, %v2966_v38  ;;  %v4664_v11 = vadd.f32 %v2965_v28, %v4558_v2 }
 0x1bf   : > { %v4667_v21 = vadd.f32 %v2904_v56, %v4567_v26  ;;  %v4670_v0 = vadd.f32 %v2968_v33, %v4565_v49 }
 0x1c1   : > { %v2905_v24 = vpop.f32.mrb[96].mxu0  ;;  %v2969_v16 = vpop.f32.mrb[96].mxu1 }
 0x1c2   : > { %v2906_v40 = vpop.f32.mrb[97].mxu0  ;;  %v2970_v37 = vpop.f32.mrb[97].mxu1 }
 0x1c3   : > { %v2907_v43 = vadd.f32 %v2906_v40, %v2905_v24  ;;  %v2908_v60 = vpop.f32.mrb[98].mxu0  ;;  %v2971_v41 = vadd.f32 %v2970_v37, %v2969_v16  ;;  %v2972_v51 = vpop.f32.mrb[98].mxu1 }
 0x1c4   : > { %v2909_v14 = vpop.f32.mrb[99].mxu0  ;;  %v2973_v58 = vpop.f32.mrb[99].mxu1 }
 0x1c5   : > { %v4673_v17 = vadd.f32 %v2907_v43, %v4576_v18  ;;  %v2910_v2 = vadd.f32 %v2909_v14, %v2908_v60  ;;  %v2974_v46 = vadd.f32 %v2973_v58, %v2972_v51  ;;  %v4676_v26 = vadd.f32 %v2971_v41, %v4572_v63 }
 0x1c7   : > { %v4679_v49 = vadd.f32 %v2910_v2, %v4581_v39  ;;  %v4682_v36 = vadd.f32 %v2974_v46, %v4579_v53 }
 0x1c9   : > { %v2911_v55 = vpop.f32.mrb[100].mxu0  ;;  %v2975_v6 = vpop.f32.mrb[100].mxu1 }
 0x1ca   : > { %v2912_v7 = vpop.f32.mrb[101].mxu0  ;;  %v2976_v48 = vpop.f32.mrb[101].mxu1 }
 0x1cb   : > { %v2913_v1 = vadd.f32 %v2912_v7, %v2911_v55  ;;  %v2914_v57 = vpop.f32.mrb[102].mxu0  ;;  %v2977_v18 = vadd.f32 %v2976_v48, %v2975_v6  ;;  %v2978_v22 = vpop.f32.mrb[102].mxu1 }
 0x1cc   : > { %v2915_v34 = vpop.f32.mrb[103].mxu0  ;;  %v2979_v50 = vpop.f32.mrb[103].mxu1 }
 0x1cd   : > { %v4685_v19 = vadd.f32 %v2913_v1, %v4590_v20  ;;  %v2916_v63 = vadd.f32 %v2915_v34, %v2914_v57  ;;  %v2980_v28 = vadd.f32 %v2979_v50, %v2978_v22  ;;  %v4688_v39 = vadd.f32 %v2977_v18, %v4586_v30 }
 0x1cf   : > { %v4691_v53 = vadd.f32 %v2916_v63, %v4595_v8  ;;  %v4694_v38 = vadd.f32 %v2980_v28, %v4593_v54 }
 0x1d1   : > { %v2917_v13 = vpop.f32.mrb[104].mxu0  ;;  %v2981_v56 = vpop.f32.mrb[104].mxu1 }
 0x1d2   : > { %v2918_v35 = vpop.f32.mrb[105].mxu0  ;;  %v2982_v24 = vpop.f32.mrb[105].mxu1 }
 0x1d3   : > { %v2919_v33 = vadd.f32 %v2918_v35, %v2917_v13  ;;  %v2920_v16 = vpop.f32.mrb[106].mxu0  ;;  %v2983_v20 = vadd.f32 %v2982_v24, %v2981_v56  ;;  %v2984_v40 = vpop.f32.mrb[106].mxu1 }
 0x1d4   : > { %v2921_v43 = vpop.f32.mrb[107].mxu0  ;;  %v2985_v60 = vpop.f32.mrb[107].mxu1 }
 0x1d5   : > { %v4697_v37 = vadd.f32 %v2919_v33, %v4604_v29  ;;  %v2922_v30 = vadd.f32 %v2921_v43, %v2920_v16  ;;  %v2986_v41 = vadd.f32 %v2985_v60, %v2984_v40  ;;  %v4700_v8 = vadd.f32 %v2983_v20, %v4600_v12 }
 0x1d7   : > { %v4703_v54 = vadd.f32 %v2922_v30, %v4609_v5  ;;  %v4706_v51 = vadd.f32 %v2986_v41, %v4607_v62 }
 0x1d9   : > { %v2923_v14 = vpop.f32.mrb[108].mxu0  ;;  %v2987_v2 = vpop.f32.mrb[108].mxu1 }
 0x1da   : > { %v2924_v58 = vpop.f32.mrb[109].mxu0  ;;  %v2988_v55 = vpop.f32.mrb[109].mxu1 }
 0x1db   : > { %v2925_v46 = vadd.f32 %v2924_v58, %v2923_v14  ;;  %v2926_v29 = vpop.f32.mrb[110].mxu0  ;;  %v2989_v6 = vadd.f32 %v2988_v55, %v2987_v2  ;;  %v2990_v7 = vpop.f32.mrb[110].mxu1 }
 0x1dc   : > { %v2927_v1 = vpop.f32.mrb[111].mxu0  ;;  %v2991_v57 = vpop.f32.mrb[111].mxu1 }
 0x1dd   : > { %v4709_v48 = vadd.f32 %v2925_v46, %v4616_v25  ;;  %v2928_v12 = vadd.f32 %v2927_v1, %v2926_v29  ;;  %v2992_v18 = vadd.f32 %v2991_v57, %v2990_v7  ;;  %v4713_v5 = vadd.f32 %v2989_v6, %v4614_v61 }
 0x1df   : > { %v4716_v62 = vadd.f32 %v2928_v12, %v4622_v52  ;;  %v4719_v22 = vadd.f32 %v2992_v18, %v4619_v3 }
 0x1e1   : > { %v3083_v25 = vpop.f32.mrb[112].mxu0  ;;  %v2993_v34 = vpop.f32.mrb[112].mxu1 }
 0x1e2   : > { %v2164_v63 = vadd.f32 %v3083_v25, %v4640_v42  ;;  %v2155_v61 = vpop.f32.mrb[113].mxu0  ;;  %v2994_v50 = vpop.f32.mrb[113].mxu1 }
 0x1e3   : > { %v2156_v52 = vadd.f32 %v2155_v61, %v4628_v32  ;;  %v3084_v28 = vpop.f32.mrb[114].mxu0  ;;  %v2995_v3 = vadd.f32 %v2994_v50, %v2993_v34  ;;  %v2996_v13 = vpop.f32.mrb[114].mxu1 }
 0x1e4   : > { %2284 = vst [vmem:[%s4724_s25 + $0x10] sm:$0xff] %v2164_v63  ;;  %v2167_v56 = vadd.f32 %v3084_v28, %v4646_v10  ;;  %v2158_v35 = vpop.f32.mrb[115].mxu0  ;;  %v2997_v33 = vpop.f32.mrb[115].mxu1 }
 0x1e5   : > { %2282 = vst [vmem:[%s4724_s25] sm:$0xff] %v2156_v52  ;;  %v2159_v24 = vadd.f32 %v2158_v35, %v4634_v27  ;;  %v2998_v16 = vadd.f32 %v2997_v33, %v2996_v13  ;;  %v4734_v42 = vadd.f32 %v2995_v3, %v4625_v15 }
 0x1e6   : > { %2285 = vst [vmem:[%s4724_s25 + $0x18] sm:$0xff] %v2167_v56 }
 0x1e7   : > { %2283 = vst [vmem:[%s4724_s25 + $0x8] sm:$0xff] %v2159_v24  ;;  %v4738_v32 = vadd.f32 %v2998_v16, %v4631_v45 }
 0x1e9   : > { %v3087_v20 = vpop.f32.mrb[116].mxu0  ;;  %v2999_v40 = vpop.f32.mrb[116].mxu1 }
 0x1ea   : > { %v2180_v10 = vadd.f32 %v3087_v20, %v4664_v11  ;;  %v2171_v43 = vpop.f32.mrb[117].mxu0  ;;  %v3000_v30 = vpop.f32.mrb[117].mxu1 }
 0x1eb   : > { %v2172_v27 = vadd.f32 %v2171_v43, %v4652_v31  ;;  %v3088_v60 = vpop.f32.mrb[118].mxu0  ;;  %v3001_v41 = vadd.f32 %v3000_v30, %v2999_v40  ;;  %v3002_v14 = vpop.f32.mrb[118].mxu1 }
 0x1ec   : > { %2288 = vst [vmem:[%s4724_s25 + $0x30] sm:$0xff] %v2180_v10  ;;  %v2183_v15 = vadd.f32 %v3088_v60, %v4670_v0  ;;  %v2174_v2 = vpop.f32.mrb[119].mxu0  ;;  %v3003_v45 = vpop.f32.mrb[119].mxu1 }
 0x1ed   : > { %2286 = vst [vmem:[%s4724_s25 + $0x20] sm:$0xff] %v2172_v27  ;;  %v2175_v58 = vadd.f32 %v2174_v2, %v4658_v4  ;;  %v3004_v46 = vadd.f32 %v3003_v45, %v3002_v14  ;;  %v2067_v11 = vadd.f32 %v3001_v41, %v4637_v59 }
 0x1ee   : > { %2289 = vst [vmem:[%s4724_s25 + $0x38] sm:$0xff] %v2183_v15 }
 0x1ef   : > { %2287 = vst [vmem:[%s4724_s25 + $0x28] sm:$0xff] %v2175_v58  ;;  %v2070_v31 = vadd.f32 %v3004_v46, %v4643_v44 }
 0x1f1   : > { %v3091_v55 = vpop.f32.mrb[120].mxu0  ;;  %v3005_v29 = vpop.f32.mrb[120].mxu1 }
 0x1f2   : > { %v2196_v6 = vadd.f32 %v3091_v55, %v4688_v39  ;;  %v2187_v0 = vpop.f32.mrb[121].mxu0  ;;  %v3006_v7 = vpop.f32.mrb[121].mxu1 }
 0x1f3   : > { %v2188_v1 = vadd.f32 %v2187_v0, %v4676_v26  ;;  %v3092_v12 = vpop.f32.mrb[122].mxu0  ;;  %v3007_v4 = vadd.f32 %v3006_v7, %v3005_v29  ;;  %v3008_v57 = vpop.f32.mrb[122].mxu1 }
 0x1f4   : > { %2292 = vst [vmem:[%s4724_s25 + $0x50] sm:$0xff] %v2196_v6  ;;  %v2199_v18 = vadd.f32 %v3092_v12, %v4694_v38  ;;  %v2190_v59 = vpop.f32.mrb[123].mxu0  ;;  %v3009_v44 = vpop.f32.mrb[123].mxu1 }
 0x1f5   : > { %2290 = vst [vmem:[%s4724_s25 + $0x40] sm:$0xff] %v2188_v1  ;;  %v2191_v25 = vadd.f32 %v2190_v59, %v4682_v36  ;;  %v3010_v34 = vadd.f32 %v3009_v44, %v3008_v57  ;;  %v2075_v39 = vadd.f32 %v3007_v4, %v4649_v9 }
 0x1f6   : > { %2293 = vst [vmem:[%s4724_s25 + $0x58] sm:$0xff] %v2199_v18 }
 0x1f7   : > { %2291 = vst [vmem:[%s4724_s25 + $0x48] sm:$0xff] %v2191_v25  ;;  %v2078_v26 = vadd.f32 %v3010_v34, %v4655_v23 }
 0x1f9   : > { %v3095_v63 = vpop.f32.mrb[124].mxu0  ;;  %v3011_v61 = vpop.f32.mrb[124].mxu1 }
 0x1fa   : > { %v2212_v50 = vadd.f32 %v3095_v63, %v4713_v5  ;;  %v2203_v38 = vpop.f32.mrb[125].mxu0  ;;  %v3012_v52 = vpop.f32.mrb[125].mxu1 }
 0x1fb   : > { %v2204_v28 = vadd.f32 %v2203_v38, %v4700_v8  ;;  %v3096_v3 = vpop.f32.mrb[126].mxu0  ;;  %v3013_v36 = vadd.f32 %v3012_v52, %v3011_v61  ;;  %v3014_v13 = vpop.f32.mrb[126].mxu1 }
 0x1fc   : > { %2296 = vst [vmem:[%s4724_s25 + $0x70] sm:$0xff] %v2212_v50  ;;  %v2215_v56 = vadd.f32 %v3096_v3, %v4719_v22  ;;  %v2206_v9 = vpop.f32.mrb[127].mxu0  ;;  %v3015_v23 = vpop.f32.mrb[127].mxu1 }
 0x1fd   : > { %2294 = vst [vmem:[%s4724_s25 + $0x60] sm:$0xff] %v2204_v28  ;;  %v2207_v35 = vadd.f32 %v2206_v9, %v4706_v51  ;;  %v3016_v33 = vadd.f32 %v3015_v23, %v3014_v13  ;;  %v2083_v5 = vadd.f32 %v3013_v36, %v4661_v47 }
 0x1fe   : > { %2297 = vst [vmem:[%s4724_s25 + $0x78] sm:$0xff] %v2215_v56 }
 0x1ff   : > { %2295 = vst [vmem:[%s4724_s25 + $0x68] sm:$0xff] %v2207_v35  ;;  %v2086_v8 = vadd.f32 %v3016_v33, %v4667_v21 }
 0x201   : > { %v3099_v24 = vpop.f32.mrb[128].mxu0  ;;  %v3017_v16 = vpop.f32.mrb[128].mxu1 }
 0x202   : > { %v2228_v20 = vadd.f32 %v3099_v24, %v2067_v11  ;;  %v2219_v22 = vpop.f32.mrb[129].mxu0  ;;  %v3018_v40 = vpop.f32.mrb[129].mxu1 }
 0x203   : > { %v2220_v10 = vadd.f32 %v2219_v22, %v4734_v42  ;;  %v3100_v43 = vpop.f32.mrb[130].mxu0  ;;  %v3019_v51 = vadd.f32 %v3018_v40, %v3017_v16  ;;  %v3020_v30 = vpop.f32.mrb[130].mxu1 }
 0x204   : > { %2300 = vst [vmem:[%s4724_s25 + $0x90] sm:$0xff] %v2228_v20  ;;  %v2231_v27 = vadd.f32 %v3100_v43, %v2070_v31  ;;  %v2222_v60 = vpop.f32.mrb[131].mxu0  ;;  %v3021_v47 = vpop.f32.mrb[131].mxu1 }
 0x205   : > { %2298 = vst [vmem:[%s4724_s25 + $0x80] sm:$0xff] %v2220_v10  ;;  %v2223_v21 = vadd.f32 %v2222_v60, %v4738_v32  ;;  %v3022_v41 = vadd.f32 %v3021_v47, %v3020_v30  ;;  %v2091_v14 = vadd.f32 %v3019_v51, %v4673_v17 }
 0x206   : > { %2301 = vst [vmem:[%s4724_s25 + $0x98] sm:$0xff] %v2231_v27 }
 0x207   : > { %2299 = vst [vmem:[%s4724_s25 + $0x88] sm:$0xff] %v2223_v21  ;;  %v2094_v15 = vadd.f32 %v3022_v41, %v4679_v49 }
 0x209   : > { %v3103_v42 = vpop.f32.mrb[132].mxu0  ;;  %v3023_v2 = vpop.f32.mrb[132].mxu1 }
 0x20a   : > { %v2244_v45 = vadd.f32 %v3103_v42, %v2083_v5  ;;  %v2235_v58 = vpop.f32.mrb[133].mxu0  ;;  %v3024_v46 = vpop.f32.mrb[133].mxu1 }
 0x20b   : > { %v2236_v11 = vadd.f32 %v2235_v58, %v2075_v39  ;;  %v3104_v31 = vpop.f32.mrb[134].mxu0  ;;  %v3025_v55 = vadd.f32 %v3024_v46, %v3023_v2  ;;  %v3026_v32 = vpop.f32.mrb[134].mxu1 }
 0x20c   : > { %2304 = vst [vmem:[%s4724_s25 + $0xb0] sm:$0xff] %v2244_v45  ;;  %v2247_v29 = vadd.f32 %v3104_v31, %v2086_v8  ;;  %v2238_v6 = vpop.f32.mrb[135].mxu0  ;;  %v3027_v17 = vpop.f32.mrb[135].mxu1 }
 0x20d   : > { %2302 = vst [vmem:[%s4724_s25 + $0xa0] sm:$0xff] %v2236_v11  ;;  %v2239_v0 = vadd.f32 %v2238_v6, %v2078_v26  ;;  %v3028_v49 = vadd.f32 %v3027_v17, %v3026_v32  ;;  %v2099_v7 = vadd.f32 %v3025_v55, %v4685_v19 }
 0x20e   : > { %2305 = vst [vmem:[%s4724_s25 + $0xb8] sm:$0xff] %v2247_v29 }
 0x20f   : > { %2303 = vst [vmem:[%s4724_s25 + $0xa8] sm:$0xff] %v2239_v0  ;;  %v2102_v1 = vadd.f32 %v3028_v49, %v4691_v53 }
 0x211   : > { %v3107_v12 = vpop.f32.mrb[136].mxu0  ;;  %v3029_v4 = vpop.f32.mrb[136].mxu1 }
 0x212   : > { %v2260_v57 = vadd.f32 %v3107_v12, %v2099_v7  ;;  %v2251_v18 = vpop.f32.mrb[137].mxu0  ;;  %v3030_v59 = vpop.f32.mrb[137].mxu1 }
 0x213   : > { %v2252_v44 = vadd.f32 %v2251_v18, %v2091_v14  ;;  %v3108_v25 = vpop.f32.mrb[138].mxu0  ;;  %v3031_v34 = vadd.f32 %v3030_v59, %v3029_v4  ;;  %v3032_v39 = vpop.f32.mrb[138].mxu1 }
 0x214   : > { %2308 = vst [vmem:[%s4724_s25 + $0xd0] sm:$0xff] %v2260_v57  ;;  %v2263_v26 = vadd.f32 %v3108_v25, %v2102_v1  ;;  %v2254_v63 = vpop.f32.mrb[139].mxu0  ;;  %v3033_v61 = vpop.f32.mrb[139].mxu1 }
 0x215   : > { %2306 = vst [vmem:[%s4724_s25 + $0xc0] sm:$0xff] %v2252_v44  ;;  %v2255_v19 = vadd.f32 %v2254_v63, %v2094_v15  ;;  %v3034_v53 = vadd.f32 %v3033_v61, %v3032_v39  ;;  %v2107_v50 = vadd.f32 %v3031_v34, %v4697_v37 }
 0x216   : > { %2309 = vst [vmem:[%s4724_s25 + $0xd8] sm:$0xff] %v2263_v26 }
 0x217   : > { %2307 = vst [vmem:[%s4724_s25 + $0xc8] sm:$0xff] %v2255_v19  ;;  %v2110_v38 = vadd.f32 %v3034_v53, %v4703_v54 }
 0x219   : > { %v3111_v52 = vpop.f32.mrb[140].mxu0  ;;  %v3035_v28 = vpop.f32.mrb[140].mxu1 }
 0x21a   : > { %v2267_v3 = vpop.f32.mrb[141].mxu0  ;;  %v3036_v36 = vpop.f32.mrb[141].mxu1 }
 0x21b   : > { %v2268_v13 = vadd.f32 %v2267_v3, %v2107_v50  ;;  %v3112_v56 = vpop.f32.mrb[142].mxu0  ;;  %v3037_v9 = vadd.f32 %v3036_v36, %v3035_v28  ;;  %v3038_v23 = vpop.f32.mrb[142].mxu1 }
 0x21c   : > { %v2270_v35 = vpop.f32.mrb[143].mxu0  ;;  %v3039_v33 = vpop.f32.mrb[143].mxu1 }
 0x21d   : > { %2310 = vst [vmem:[%s4724_s25 + $0xe0] sm:$0xff] %v2268_v13  ;;  %v2271_v5 = vadd.f32 %v2270_v35, %v2110_v38  ;;  %v2115_v37 = vadd.f32 %v3037_v9, %v4709_v48  ;;  %v3040_v8 = vadd.f32 %v3039_v33, %v3038_v23 }
 0x21f   : > { %2311 = vst [vmem:[%s4724_s25 + $0xe8] sm:$0xff] %v2271_v5  ;;  %v2276_v24 = vadd.f32 %v3111_v52, %v2115_v37  ;;  %v2118_v54 = vadd.f32 %v3040_v8, %v4716_v62 }
 0x221   : > { %2312 = vst [vmem:[%s4724_s25 + $0xf0] sm:$0xff] %v2276_v24  ;;  %v2279_v16 = vadd.f32 %v3112_v56, %v2118_v54 }
 0x223   : > { %2313 = vst [vmem:[%s4724_s25 + $0xf8] sm:$0xff] %v2279_v16 }
 0x224 PF: > { %s15_s18 = sadd.s32 1, %s3221_s18  }
 0x225   : > { %p12_p4 = scmp.ge.s32.totalorder %s15_s18, 4  }
 0x227   :  { %14 = sbr.rel (!%p12_p4) target bundleno = 1 (0x1), region = 70 }

// kernel: wide_basic_forward.3
= control target key start
LH: loop header
LB: loop body
LE: loop exit
PB: predicated region body
PF: predicated region fallthrough
CT: control target
= control target key end

     0   :  { %s3491_s21 = smov 0   ;;  %s4892_s0 = inlined_call_operand.vmem [shape: f32[2,18,18,128], index: 0, kind: input, shape index: {}]   ;;  %s4893_s1 = inlined_call_operand.vmem [shape: f32[1,128], index: 1, kind: input, shape index: {}]   ;;  %s4894_s2 = inlined_call_operand.vmem [shape: f32[1,128], index: 2, kind: input, shape index: {}]   ;;  %s4895_s3 = inlined_call_operand.vmem [shape: bf16[1280,128], index: 3, kind: input, shape index: {}]   ;;  %s4896_s4 = inlined_call_operand.vmem [shape: f32[1,128], index: 4, kind: input, shape index: {}]   ;;  %s4897_s5 = inlined_call_operand.vmem [shape: f32[2,16,16,128], index: 5, kind: input, shape index: {}]   ;;  %s4898_s6 = inlined_call_operand.vmem [shape: f32[2,16,16,128], index: 6, kind: output, shape index: {}]  }
   0x1 LB: > { %s2540_s22 = sadd.s32 4294967295, %s3451_s21   ;;  %p2544_p0 = scmp.ge.s32.totalorder %s3451_s21, 1  ;;  %s3451_s21 = sphi %s3491_s21, %s16_s21  }
   0x2   : > { %p222_p1 = scmp.lt.s32.totalorder %s3451_s21, 3 }
   0x4   : > { %p223_p2 = pnand %p2544_p0, %p222_p1 }
   0x6   : > { %226 = sbr.rel (%p223_p2) target bundleno = 582 (0x246), region = 44 }
   0xd   : > { %v3363_v0 = vld [vmem:[%s4895_s3 + $0x40] sm:$0xff]   ;;  %v4900_v2 = vmov 0.0   ;;  %v3365_v4 = vld [vmem:[%s4895_s3 + $0x48] sm:$0xff]   ;;  %p257_p3 = scmp.lt.s32.totalorder %s2540_s22, 1  ;;  %v3367_v7 = vld [vmem:[%s4895_s3 + $0x50] sm:$0xff]   ;;  %v329_v9 = vlaneseq  ;;  %vm643_vm2 = vcmask 1046528  }
   0xe   : > { %v3364_v1 = vld [vmem:[%s4895_s3] sm:$0xff]   ;;  %v644_v3 = vrot.slane %v4900_v2, 1  ;;  %2775 = vmatprep.subr.bf16.mxu0 %v3363_v0  ;;  %3335 = vmatprep.subr.bf16.mxu1 %v3363_v0  ;;  %v3366_v5 = vld [vmem:[%s4895_s3 + $0x8] sm:$0xff]   ;;  %v3368_v8 = vld [vmem:[%s4895_s3 + $0x10] sm:$0xff]   ;;  %vm3454_vm3 = vmmov 1   ;;  %vm772_vm5 = vcmask 1045504  }
   0xf   : > { %2776 = vmatpush3.bf16.msra.mxu0 %v3364_v1  ;;  %3343 = vmatpush3.bf16.msra.mxu1 %v3364_v1  ;;  %s5001_s22 = smov (!%p257_p3, %s2540_s22), 1  ;;  %v3369_v10 = vld [vmem:[%s4895_s3 + $0x58] sm:$0xff]   ;;  %v3530_v12 = vshrl.u32 %v329_v9, 7  ;;  %v3371_v13 = vld [vmem:[%s4895_s3 + $0x60] sm:$0xff]   ;;  %v3373_v15 = vld [vmem:[%s4895_s3 + $0x68] sm:$0xff]  }
  0x10   : > { %v3512_v6 = vpack.c.bf16 %v644_v3, %v644_v3  ;;  %2777 = vmatprep.subr.bf16.mxu0 %v3365_v4  ;;  %3336 = vmatprep.subr.bf16.mxu1 %v3365_v4  ;;  %s3351_s13 = smul.u32 432, %s5001_s22  ;;  %v3370_v11 = vld [vmem:[%s4895_s3 + $0x18] sm:$0xff]   ;;  %v3372_v14 = vld [vmem:[%s4895_s3 + $0x20] sm:$0xff]   ;;  %v3374_v25 = vld [vmem:[%s4895_s3 + $0x28] sm:$0xff]  }
  0x11   : > { %v3547_v16 = vadd.s32 16, %v3530_v12  ;;  %v3555_v20 = vld [vmem:[%s4893_s1] ss:$0 sm:$0xff]  ;;  %vm333_vm0 = vcmp.ge.s32.totalorder %v3530_v12, 1  ;;  %v3375_v26 = vld [vmem:[%s4895_s3 + $0x70] sm:$0xff]   ;;  %v3377_v43 = vld [vmem:[%s4895_s3 + $0x78] sm:$0xff]  }
  0x12   : > { %4943 = vst [vmem:[#allocation2_spill] sm:$0xff] %v3512_v6  ;;  %1668 = vmatprep.mubr.bf16.mxu0 %v3512_v6  ;;  %s3538_s20 = scalar_lea.vmem %s4892_s0, %s3351_s13  ;;  %v3560_v21 = vld [vmem:[%s4894_s2] ss:$0 sm:$0xff]  ;;  %v3376_v30 = vld [vmem:[%s4895_s3 + $0x30] sm:$0xff]   ;;  %v3378_v52 = vld [vmem:[%s4895_s3 + $0x38] sm:$0xff]  }
  0x13   : > { %2778 = vmatpush3.bf16.msra.mxu0 %v3366_v5  ;;  %3344 = vmatpush3.bf16.msra.mxu1 %v3366_v5  ;;  %v297_v17 = vld [vmem:[%s3538_s20 + $0xc0] sm:$0xff]  ;;  %v298_v18 = vld [vmem:[%s3538_s20 + $0xc8] sm:$0xff]  ;;  %v299_v19 = vld [vmem:[%s3538_s20 + $0xd0] sm:$0x3]  ;;  %vm344_vm1 = vcmp.le.s32.totalorder %v3547_v16, 16 }
  0x14   : > { %2779 = vmatprep.subr.bf16.mxu0 %v3367_v7  ;;  %3337 = vmatprep.subr.bf16.mxu1 %v3367_v7  ;;  %v381_v22 = vmul.f32 %v3555_v20, %v297_v17  ;;  %v382_v23 = vmul.f32 %v3555_v20, %v298_v18  ;;  %v383_v24 = vmul.f32 %v3555_v20, %v299_v19  ;;  %v276_v34 = vld [vmem:[%s3538_s20 + $0x18] sm:$0xff]  ;;  %v277_v35 = vld [vmem:[%s3538_s20 + $0x20] sm:$0xff]  ;;  %v278_v37 = vld [vmem:[%s3538_s20 + $0x28] sm:$0x3] }
  0x15   : > { %v300_v36 = vld [vmem:[%s3538_s20 + $0xd8] sm:$0xff]  ;;  %v360_v38 = vmul.f32 %v3555_v20, %v276_v34  ;;  %v361_v39 = vmul.f32 %v3555_v20, %v277_v35  ;;  %v301_v40 = vld [vmem:[%s3538_s20 + $0xe0] sm:$0xff]  ;;  %v302_v41 = vld [vmem:[%s3538_s20 + $0xe8] sm:$0x3]  ;;  %v362_v50 = vmul.f32 %v3555_v20, %v278_v37 }
  0x16   : > { %v441_v27 = vadd.f32 %v3560_v21, %v381_v22  ;;  %v442_v28 = vadd.f32 %v3560_v21, %v382_v23  ;;  %v443_v29 = vadd.f32 %v3560_v21, %v383_v24  ;;  %v384_v42 = vmul.f32 %v3555_v20, %v300_v36  ;;  %v3379_v59 = vld [vmem:[%s4895_s3 + $0xc0] sm:$0xff]   ;;  %v279_v4 = vld [vmem:[%s3538_s20 + $0x30] sm:$0xff]  ;;  %vm3646_vm4 = vmpackc.low %vm3454_vm3, %vm333_vm0 }
  0x17   : > { %2780 = vmatpush3.bf16.msra.mxu0 %v3368_v8  ;;  %3345 = vmatpush3.bf16.msra.mxu1 %v3368_v8  ;;  %v420_v51 = vadd.f32 %v3560_v21, %v360_v38  ;;  %v421_v53 = vadd.f32 %v3560_v21, %v361_v39  ;;  %v385_v54 = vmul.f32 %v3555_v20, %v301_v40  ;;  %v3381_v63 = vld [vmem:[%s4895_s3 + $0x140] sm:$0xff]   ;;  %v303_v34 = vld [vmem:[%s3538_s20 + $0xf0] sm:$0xff]  ;;  %v3384_v39 = vld [vmem:[%s4895_s3 + $0x88] sm:$0xff]  }
  0x18   : > { %2781 = vmatprep.subr.bf16.mxu0 %v3369_v10  ;;  %3338 = vmatprep.subr.bf16.mxu1 %v3369_v10  ;;  %v495_v31 = vmax.f32 %v441_v27, 0.0  ;;  %v3579_v32 = vmax.f32 %v442_v28, 0.0  ;;  %v497_v33 = vmax.f32 %v443_v29, 0.0  ;;  %v386_v55 = vmul.f32 %v3555_v20, %v302_v41  ;;  %v3380_v5 = vld [vmem:[%s4895_s3 + $0x80] sm:$0xff]   ;;  %v3385_v27 = vld [vmem:[%s4895_s3 + $0x148] sm:$0xff]  }
  0x19   : > { %v444_v56 = vadd.f32 %v3560_v21, %v384_v42  ;;  %v422_v60 = vadd.f32 %v3560_v21, %v362_v50  ;;  %v474_v61 = vmax.f32 %v420_v51, 0.0  ;;  %v3627_v0 = vmax.f32 %v421_v53, 0.0  ;;  %v3382_v7 = vld [vmem:[%s4895_s3 + $0x100] sm:$0xff]   ;;  %v3386_v53 = vld [vmem:[%s4895_s3 + $0x108] sm:$0xff]  }
  0x1a   : > { %4944 = vst [vmem:[#allocation3_spill] sm:$0xff] %v3579_v32  ;;  %v3595_v44 = vsel %vm333_vm0, %v495_v31, 0.0  ;;  %v3599_v45 = vsel %vm344_vm1, %v497_v33, 0.0  ;;  %v685_v46 = vrot.slane %v3579_v32, 1  ;;  %v3603_v47 = vpack.c.bf16 %v3579_v32, %v495_v31  ;;  %v281_v22 = vld [vmem:[%s3538_s20 + $0x40] sm:$0x3] }
  0x1b   : > { %2782 = vmatpush3.bf16.msra.mxu0 %v3370_v11  ;;  %3346 = vmatpush3.bf16.msra.mxu1 %v3370_v11  ;;  %4945 = vst [vmem:[#allocation4_spill] sm:$0xff] %v3595_v44  ;;  %4946 = vst [vmem:[#allocation5_spill] sm:$0xff] %v3599_v45  ;;  %v684_v48 = vrot.slane %v3595_v44, 1  ;;  %v687_v49 = vrot.slane %v3599_v45, 1  ;;  %v445_v1 = vadd.f32 %v3560_v21, %v385_v54  ;;  %v476_v8 = vmax.f32 %v422_v60, 0.0  ;;  %v280_v11 = vld [vmem:[%s3538_s20 + $0x38] sm:$0xff] }
  0x1c   : > { %2783 = vmatprep.subr.bf16.mxu0 %v3371_v13  ;;  %3339 = vmatprep.subr.bf16.mxu1 %v3371_v13  ;;  %4947 = vst [vmem:[#allocation6_spill] sm:$0xff] %v3603_v47  ;;  %v446_v3 = vadd.f32 %v3560_v21, %v386_v55  ;;  %v3640_v9 = vsel %vm333_vm0, %v474_v61, 0.0  ;;  %v498_v10 = vmax.f32 %v444_v56, 0.0  ;;  %v363_v13 = vmul.f32 %v3555_v20, %v279_v4  ;;  %v305_v35 = vld [vmem:[%s3538_s20 + $0x100] sm:$0x3]  ;;  %v3389_v60 = vld [vmem:[%s4895_s3 + $0x150] sm:$0xff]  }
  0x1d   : > { %v686_v57 = vsel %vm643_vm2, %v684_v48, %v685_v46  ;;  %v688_v58 = vsel %vm643_vm2, %v685_v46, %v687_v49  ;;  %v650_v17 = vrot.slane %v3627_v0, 1  ;;  %v3653_v18 = vmax.f32 %v445_v1, 0.0  ;;  %v304_v48 = vld [vmem:[%s3538_s20 + $0xf8] sm:$0xff]  ;;  %v283_v4 = vld [vmem:[%s3538_s20 + $0x50] sm:$0xff]  ;;  %v314_v49 = vld [vmem:[%s3538_s20 + $0x148] sm:$0x3] }
  0x1e   : > { %v3622_v62 = vpack.c.bf16 %v688_v58, %v686_v57  ;;  %v500_v19 = vmax.f32 %v446_v3, 0.0  ;;  %v3658_v23 = vsel %vm344_vm1, %v476_v8, 0.0  ;;  %v3662_v24 = vsel %vm333_vm0, %v498_v10, 0.0  ;;  %v313_v6 = vld [vmem:[%s3538_s20 + $0x140] sm:$0xff]  ;;  %v296_v44 = vld [vmem:[%s3538_s20 + $0xb8] sm:$0x3] }
  0x1f   : > { %2784 = vmatpush3.bf16.msra.mxu0 %v3372_v14  ;;  %3347 = vmatpush3.bf16.msra.mxu1 %v3372_v14  ;;  %4951 = vst [vmem:[#allocation8_spill] sm:$0xff] %v3653_v18  ;;  %4952 = vst [vmem:[#allocation9_spill] sm:$0xff] %v3662_v24  ;;  %v364_v28 = vmul.f32 %v3555_v20, %v280_v11  ;;  %v689_v33 = vrot.slane %v3662_v24, 1  ;;  %v690_v36 = vrot.slane %v3653_v18, 1  ;;  %v4899_v41 = vmov 0.0|0.0  }
  0x20   : > { %2785 = vmatprep.subr.bf16.mxu0 %v3373_v15  ;;  %3340 = vmatprep.subr.bf16.mxu1 %v3373_v15  ;;  %4948 = vst [vmem:[#allocation7_spill] sm:$0xff] %v3622_v62  ;;  %v649_v15 = vrot.slane %v3640_v9, 1  ;;  %v3678_v31 = vsel %vm344_vm1, %v500_v19, 0.0  ;;  %v3686_v38 = vpack.c.bf16 %v3653_v18, %v498_v10  ;;  %v365_v40 = vmul.f32 %v3555_v20, %v281_v22 }
  0x21   : > { %1732 = vmatprep.mubr.bf16.mxu1 %v3622_v62  ;;  %4953 = vst [vmem:[#allocation10_spill] sm:$0xff] %v3678_v31  ;;  %v692_v37 = vrot.slane %v3678_v31, 1  ;;  %v424_v46 = vadd.f32 %v3560_v21, %v364_v28  ;;  %v691_v51 = vsel %vm643_vm2, %v689_v33, %v690_v36  ;;  %v388_v1 = vmul.f32 %v3555_v20, %v304_v48  ;;  %v3391_v28 = vld [vmem:[%s4895_s3 + $0xd8] sm:$0xff]  }
  0x22   : > { %v651_v29 = vsel %vm643_vm2, %v649_v15, %v650_v17  ;;  %4954 = vst [vmem:[#allocation11_spill] sm:$0xff] %v3686_v38  ;;  %v425_v56 = vadd.f32 %v3560_v21, %v365_v40  ;;  %v389_v3 = vmul.f32 %v3555_v20, %v305_v35  ;;  %v3388_v15 = vld [vmem:[%s4895_s3 + $0x90] sm:$0xff]   ;;  %v306_v35 = vld [vmem:[%s3538_s20 + $0x108] sm:$0xff] }
  0x23   : > { %2786 = vmatpush3.bf16.msra.mxu0 %v3374_v25  ;;  %3348 = vmatpush3.bf16.msra.mxu1 %v3374_v25  ;;  %v3665_v25 = vpack.c.bf16 %v3627_v0, %v474_v61  ;;  %v3712_v58 = vmax.f32 %v424_v46, 0.0  ;;  %v282_v61 = vld [vmem:[%s3538_s20 + $0x48] sm:$0xff] }
  0x24   : > { %2787 = vmatprep.subr.bf16.mxu0 %v3375_v26  ;;  %3341 = vmatprep.subr.bf16.mxu1 %v3375_v26  ;;  %v3383_v26 = vld [vmem:[%s4895_s3 + $0xc8] sm:$0xff]   ;;  %v479_v8 = vmax.f32 %v425_v56, 0.0 }
  0x25   : > { %v655_v11 = vrot.slane %v3712_v58, 1 }
  0x27   : > { %2788 = vmatpush3.bf16.msra.mxu0 %v3376_v30  ;;  %3349 = vmatpush3.bf16.msra.mxu1 %v3376_v30  ;;  %v652_v30 = vrot.slane %v3658_v23, 1 }
  0x28   : > { %2789 = vmatprep.subr.bf16.mxu0 %v3377_v43  ;;  %3342 = vmatprep.subr.bf16.mxu1 %v3377_v43  ;;  %v423_v43 = vadd.f32 %v3560_v21, %v363_v13 }
  0x29   : > { %v653_v42 = vsel %vm643_vm2, %v650_v17, %v652_v30  ;;  %v3390_v17 = vld [vmem:[%s4895_s3 + $0x110] sm:$0xff]   ;;  %v367_v30 = vmul.f32 %v3555_v20, %v283_v4 }
  0x2a   : > { %v3701_v50 = vpack.c.bf16 %v653_v42, %v651_v29  ;;  %v477_v57 = vmax.f32 %v423_v43, 0.0  ;;  %v3752_v29 = vsel %vm344_vm1, %v479_v8, 0.0  ;;  %v307_v43 = vld [vmem:[%s3538_s20 + $0x110] sm:$0xff] }
  0x2b   : > { %2790 = vmatpush3.bf16.msra.mxu0 %v3378_v52  ;;  %3350 = vmatpush3.bf16.msra.mxu1 %v3378_v52  ;;  %v693_v52 = vsel %vm643_vm2, %v690_v36, %v692_v37  ;;  %v3393_v36 = vld [vmem:[%s4895_s3 + $0x158] sm:$0xff]   ;;  %v427_v48 = vadd.f32 %v3560_v21, %v367_v30  ;;  %v391_v30 = vmul.f32 %v3555_v20, %v307_v43 }
  0x2c   : > { %2887 = vmatprep.subr.bf16.mxu1 %v3379_v59  ;;  %2999 = vmatprep.subr.bf16.mxu0 %v3381_v63  ;;  %v3709_v55 = vpack.c.bf16 %v693_v52, %v691_v51  ;;  %v3387_v59 = vld [vmem:[%s4895_s3 + $0xd0] sm:$0xff]   ;;  %v387_v63 = vmul.f32 %v3555_v20, %v303_v34  ;;  %v3731_v10 = vsel %vm333_vm0, %v477_v57, 0.0  ;;  %v3735_v13 = vpack.c.bf16 %v3712_v58, %v477_v57 }
  0x2d   : > { %v654_v19 = vrot.slane %v3731_v10, 1  ;;  %v3796_v4 = vmax.f32 %v427_v48, 0.0  ;;  %v3396_v48 = vld [vmem:[%s4895_s3 + $0xa0] sm:$0xff]  }
  0x2e   : > { %1669 = vmatmul.mubr.bf16.vlgmr.msra.gmra.mrb[0].mxu0 %v4899_v41  ;;  %2656 = vmatmul.mubr.msk.bf16.vlgmr.msra.gmra.mrb[0].mxu1 %vm3646_vm4, %v3603_v47  ;;  %4955 = vst [vmem:[#allocation12_spill] sm:$0xff] %v3709_v55  ;;  %v447_v22 = vadd.f32 %v3560_v21, %v387_v63  ;;  %v3401_v41 = vld [vmem:[%s4895_s3 + $0x168] sm:$0xff]  }
  0x2f   : > { %2888 = vmatpush3.bf16.msra.mxu1 %v3380_v5  ;;  %3000 = vmatpush3.bf16.msra.mxu0 %v3382_v7  ;;  %v284_v5 = vld [vmem:[%s3538_s20 + $0x58] sm:$0x3]  ;;  %v366_v7 = vmul.f32 %v3555_v20, %v282_v61  ;;  %v656_v37 = vsel %vm643_vm2, %v654_v19, %v655_v11  ;;  %v286_v19 = vld [vmem:[%s3538_s20 + $0x68] sm:$0xff] }
  0x30   : > { %2889 = vmatprep.subr.bf16.mxu1 %v3383_v26  ;;  %3001 = vmatprep.subr.bf16.mxu0 %v3385_v27  ;;  %v448_v26 = vadd.f32 %v3560_v21, %v388_v1  ;;  %v449_v27 = vadd.f32 %v3560_v21, %v389_v3  ;;  %v368_v33 = vmul.f32 %v3555_v20, %v284_v5  ;;  %v501_v40 = vmax.f32 %v447_v22, 0.0  ;;  %v3394_v61 = vld [vmem:[%s4895_s3 + $0x118] sm:$0xff]   ;;  %v287_v22 = vld [vmem:[%s3538_s20 + $0x70] sm:$0x3] }
  0x31   : > { %1676 = vmatprep.mubr.bf16.mxu0 %v3701_v50  ;;  %1740 = vmatprep.mubr.bf16.mxu1 %v3709_v55  ;;  %v426_v34 = vadd.f32 %v3560_v21, %v366_v7  ;;  %v308_v5 = vld [vmem:[%s3538_s20 + $0x118] sm:$0x3]  ;;  %v285_v7 = vld [vmem:[%s3538_s20 + $0x60] sm:$0xff]  ;;  %v397_v55 = vmul.f32 %v3555_v20, %v313_v6 }
  0x32   : > { %v3763_v42 = vmax.f32 %v448_v26, 0.0  ;;  %v503_v46 = vmax.f32 %v449_v27, 0.0  ;;  %v428_v51 = vadd.f32 %v3560_v21, %v368_v33  ;;  %v3777_v56 = vsel %vm333_vm0, %v501_v40, 0.0 }
  0x33   : > { %2890 = vmatpush3.bf16.msra.mxu1 %v3384_v39  ;;  %3002 = vmatpush3.bf16.msra.mxu0 %v3386_v53  ;;  %v657_v39 = vrot.slane %v3752_v29, 1  ;;  %v480_v52 = vmax.f32 %v426_v34, 0.0  ;;  %v694_v3 = vrot.slane %v3777_v56, 1  ;;  %v457_v6 = vadd.f32 %v3560_v21, %v397_v55  ;;  %v3408_v55 = vld [vmem:[%s4895_s3 + $0xb8] sm:$0xff]  }
  0x34   : > { %2891 = vmatprep.subr.bf16.mxu1 %v3387_v59  ;;  %3003 = vmatprep.subr.bf16.mxu0 %v3389_v60  ;;  %v695_v57 = vrot.slane %v3763_v42, 1  ;;  %v3781_v59 = vpack.c.bf16 %v3763_v42, %v501_v40  ;;  %v3392_v60 = vld [vmem:[%s4895_s3 + $0x98] sm:$0xff]   ;;  %v3793_v1 = vsel %vm344_vm1, %v503_v46, 0.0  ;;  %v451_v46 = vadd.f32 %v3560_v21, %v391_v30 }
  0x35   : > { %v658_v53 = vsel %vm643_vm2, %v655_v11, %v657_v39  ;;  %v697_v8 = vrot.slane %v3793_v1, 1  ;;  %v482_v11 = vmax.f32 %v428_v51, 0.0 }
  0x36   : > { %2635 = vmatmul.mubr.msk.bf16.gmra.mrb[4].mxu0 %vm3646_vm4, %v3665_v25  ;;  %2659 = vmatmul.mubr.msk.bf16.gmra.mrb[4].mxu1 %vm3646_vm4, %v3686_v38  ;;  %4956 = vst [vmem:[#allocation13_spill] sm:$0xff] %v3781_v59  ;;  %v3789_v63 = vpack.c.bf16 %v658_v53, %v656_v37  ;;  %v696_v26 = vsel %vm643_vm2, %v694_v3, %v695_v57  ;;  %v3395_v37 = vld [vmem:[%s4895_s3 + $0xe0] sm:$0xff]  }
  0x37   : > { %2892 = vmatpush3.bf16.msra.mxu1 %v3388_v15  ;;  %3004 = vmatpush3.bf16.msra.mxu0 %v3390_v17  ;;  %v3803_v15 = vsel %vm333_vm0, %v480_v52, 0.0  ;;  %v390_v17 = vmul.f32 %v3555_v20, %v306_v35  ;;  %v698_v33 = vsel %vm643_vm2, %v695_v57, %v697_v8  ;;  %v3816_v34 = vsel %vm344_vm1, %v482_v11, 0.0  ;;  %v309_v8 = vld [vmem:[%s3538_s20 + $0x120] sm:$0xff] }
  0x38   : > { %2893 = vmatprep.subr.bf16.mxu1 %v3391_v28  ;;  %3005 = vmatprep.subr.bf16.mxu0 %v3393_v36  ;;  %v659_v27 = vrot.slane %v3803_v15, 1  ;;  %v660_v28 = vrot.slane %v3796_v4, 1  ;;  %v392_v35 = vmul.f32 %v3555_v20, %v308_v5  ;;  %v3823_v39 = vpack.c.bf16 %v698_v33, %v696_v26  ;;  %v3398_v11 = vld [vmem:[%s4895_s3 + $0x120] sm:$0xff]  }
  0x39   : > { %1684 = vmatprep.mubr.bf16.mxu0 %v3789_v63  ;;  %v450_v36 = vadd.f32 %v3560_v21, %v390_v17  ;;  %v662_v43 = vrot.slane %v3816_v34, 1  ;;  %v3833_v57 = vpack.c.bf16 %v3796_v4, %v480_v52  ;;  %v3844_v5 = vmax.f32 %v451_v46, 0.0 }
  0x3a   : > { %4957 = vst [vmem:[#allocation14_spill] sm:$0xff] %v3823_v39  ;;  %v661_v40 = vsel %vm643_vm2, %v659_v27, %v660_v28  ;;  %v452_v51 = vadd.f32 %v3560_v21, %v392_v35  ;;  %1748 = vmatprep.mubr.bf16.mxu1 %v3823_v39  ;;  %v370_v52 = vmul.f32 %v3555_v20, %v286_v19 }
  0x3b   : > { %2894 = vmatpush3.bf16.msra.mxu1 %v3392_v60  ;;  %3006 = vmatpush3.bf16.msra.mxu0 %v3394_v61  ;;  %v504_v53 = vmax.f32 %v450_v36, 0.0  ;;  %v369_v60 = vmul.f32 %v3555_v20, %v285_v7  ;;  %v3397_v61 = vld [vmem:[%s4895_s3 + $0x160] sm:$0xff]   ;;  %v663_v3 = vsel %vm643_vm2, %v660_v28, %v662_v43  ;;  %v371_v7 = vmul.f32 %v3555_v20, %v287_v22  ;;  %v310_v28 = vld [vmem:[%s3538_s20 + $0x128] sm:$0xff]  ;;  %v311_v36 = vld [vmem:[%s3538_s20 + $0x130] sm:$0x3] }
  0x3c   : > { %2895 = vmatprep.subr.bf16.mxu1 %v3395_v37  ;;  %v3855_v17 = vpack.c.bf16 %v663_v3, %v661_v40  ;;  %v506_v26 = vmax.f32 %v452_v51, 0.0  ;;  %3007 = vmatprep.subr.bf16.mxu0 %v3397_v61  ;;  %v700_v30 = vrot.slane %v3844_v5, 1  ;;  %v430_v35 = vadd.f32 %v3560_v21, %v370_v52  ;;  %v3399_v51 = vld [vmem:[%s4895_s3 + $0xe8] sm:$0xff]   ;;  %v288_v52 = vld [vmem:[%s3538_s20 + $0x78] sm:$0xff] }
  0x3d   : > { %v3859_v27 = vsel %vm333_vm0, %v504_v53, 0.0  ;;  %v429_v19 = vadd.f32 %v3560_v21, %v369_v60  ;;  %v3866_v33 = vpack.c.bf16 %v3844_v5, %v504_v53  ;;  %v431_v40 = vadd.f32 %v3560_v21, %v371_v7  ;;  %v289_v7 = vld [vmem:[%s3538_s20 + $0x80] sm:$0xff] }
  0x3e   : > { %2638 = vmatmul.mubr.msk.bf16.gmra.mrb[8].mxu0 %vm3646_vm4, %v3735_v13  ;;  %2662 = vmatmul.mubr.msk.bf16.gmra.mrb[8].mxu1 %vm3646_vm4, %v3781_v59  ;;  %v699_v22 = vrot.slane %v3859_v27, 1  ;;  %v3873_v37 = vsel %vm344_vm1, %v506_v26, 0.0  ;;  %v393_v46 = vmul.f32 %v3555_v20, %v309_v8  ;;  %v3885_v61 = vmax.f32 %v430_v35, 0.0 }
  0x3f   : > { %4958 = vst [vmem:[#allocation15_spill] sm:$0xff] %v3866_v33  ;;  %2896 = vmatpush3.bf16.msra.mxu1 %v3396_v48  ;;  %3008 = vmatpush3.bf16.msra.mxu0 %v3398_v11  ;;  %v483_v43 = vmax.f32 %v429_v19, 0.0  ;;  %v3400_v48 = vld [vmem:[%s4895_s3 + $0xa8] sm:$0xff]   ;;  %v702_v60 = vrot.slane %v3873_v37, 1  ;;  %v394_v3 = vmul.f32 %v3555_v20, %v310_v28  ;;  %v485_v11 = vmax.f32 %v431_v40, 0.0 }
  0x40   : > { %1692 = vmatprep.mubr.bf16.mxu0 %v3855_v17  ;;  %v701_v53 = vsel %vm643_vm2, %v699_v22, %v700_v30  ;;  %v395_v26 = vmul.f32 %v3555_v20, %v311_v36  ;;  %v453_v19 = vadd.f32 %v3560_v21, %v393_v46  ;;  %2897 = vmatprep.subr.bf16.mxu1 %v3399_v51  ;;  %v665_v28 = vrot.slane %v3885_v61, 1  ;;  %v3402_v36 = vld [vmem:[%s4895_s3 + $0x128] sm:$0xff]  }
  0x41   : > { %v3892_v8 = vsel %vm333_vm0, %v483_v43, 0.0  ;;  %v703_v22 = vsel %vm643_vm2, %v700_v30, %v702_v60  ;;  %v454_v40 = vadd.f32 %v3560_v21, %v394_v3  ;;  %v3910_v30 = vsel %vm344_vm1, %v485_v11, 0.0  ;;  %v290_v3 = vld [vmem:[%s3538_s20 + $0x88] sm:$0x3]  ;;  %v312_v11 = vld [vmem:[%s3538_s20 + $0x138] sm:$0xff]  ;;  %3009 = vmatprep.subr.bf16.mxu0 %v3401_v41 }
  0x42   : > { %v664_v35 = vrot.slane %v3892_v8, 1  ;;  %v3906_v46 = vpack.c.bf16 %v703_v22, %v701_v53  ;;  %v455_v51 = vadd.f32 %v3560_v21, %v395_v26  ;;  %v507_v60 = vmax.f32 %v453_v19, 0.0 }
  0x43   : > { %2898 = vmatpush3.bf16.msra.mxu1 %v3400_v48  ;;  %v667_v2 = vrot.slane %v3910_v30, 1  ;;  %v3919_v53 = vmax.f32 %v454_v40, 0.0  ;;  %v3922_v22 = vpack.c.bf16 %v3885_v61, %v483_v43  ;;  %v372_v54 = vmul.f32 %v3555_v20, %v288_v52  ;;  %3010 = vmatpush3.bf16.msra.mxu0 %v3402_v36  ;;  %v291_v40 = vld [vmem:[%s3538_s20 + $0x90] sm:$0xff] }
  0x44   : > { %4959 = vst [vmem:[#allocation16_spill] sm:$0xff] %v3906_v46  ;;  %v666_v48 = vsel %vm643_vm2, %v664_v35, %v665_v28  ;;  %1756 = vmatprep.mubr.bf16.mxu1 %v3906_v46  ;;  %v509_v26 = vmax.f32 %v455_v51, 0.0  ;;  %v3929_v19 = vsel %vm333_vm0, %v507_v60, 0.0  ;;  %v373_v35 = vmul.f32 %v3555_v20, %v289_v7  ;;  %v3403_v52 = vld [vmem:[%s4895_s3 + $0xf0] sm:$0xff]  }
  0x45   : > { %v668_v41 = vsel %vm643_vm2, %v665_v28, %v667_v2  ;;  %v704_v43 = vrot.slane %v3929_v19, 1  ;;  %v705_v51 = vrot.slane %v3919_v53, 1  ;;  %v3942_v46 = vpack.c.bf16 %v3919_v53, %v507_v60  ;;  %v3404_v7 = vld [vmem:[%s4895_s3 + $0xb0] sm:$0xff]   ;;  %2899 = vmatprep.subr.bf16.mxu1 %v3403_v52  ;;  %v292_v52 = vld [vmem:[%s3538_s20 + $0x98] sm:$0xff] }
  0x46   : > { %2641 = vmatmul.mubr.msk.bf16.gmra.mrb[12].mxu0 %vm3646_vm4, %v3833_v57  ;;  %2665 = vmatmul.mubr.msk.bf16.gmra.mrb[12].mxu1 %vm3646_vm4, %v3866_v33  ;;  %v3950_v36 = vpack.c.bf16 %v668_v41, %v666_v48  ;;  %v3954_v2 = vsel %vm344_vm1, %v509_v26, 0.0  ;;  %v374_v28 = vmul.f32 %v3555_v20, %v290_v3  ;;  %v432_v33 = vadd.f32 %v3560_v21, %v372_v54  ;;  %v3405_v60 = vld [vmem:[%s4895_s3 + $0x170] sm:$0xff]  }
  0x47   : > { %4960 = vst [vmem:[#allocation17_spill] sm:$0xff] %v3942_v46  ;;  %v706_v39 = vsel %vm643_vm2, %v704_v43, %v705_v51  ;;  %v707_v59 = vrot.slane %v3954_v2, 1  ;;  %v433_v48 = vadd.f32 %v3560_v21, %v373_v35  ;;  %v396_v41 = vmul.f32 %v3555_v20, %v312_v11  ;;  %v3406_v3 = vld [vmem:[%s4895_s3 + $0x130] sm:$0xff]   ;;  %2900 = vmatpush3.bf16.msra.mxu1 %v3404_v7 }
  0x48   : > { %4961 = vst [vmem:[#allocation18_spill] sm:$0xff] %v3950_v36  ;;  %1700 = vmatprep.mubr.bf16.mxu0 %v3950_v36  ;;  %v434_v54 = vadd.f32 %v3560_v21, %v374_v28  ;;  %v486_v26 = vmax.f32 %v432_v33, 0.0  ;;  %v398_v43 = vmul.f32 %v3555_v20, %v314_v49  ;;  %v375_v62 = vmul.f32 %v3555_v20, %v291_v40  ;;  %v293_v49 = vld [vmem:[%s3538_s20 + $0xa0] sm:$0x3] }
  0x49   : > { %v708_v35 = vsel %vm643_vm2, %v705_v51, %v707_v59  ;;  %v3973_v38 = vmax.f32 %v433_v48, 0.0  ;;  %v456_v11 = vadd.f32 %v3560_v21, %v396_v41  ;;  %3011 = vmatprep.subr.bf16.mxu0 %v3405_v60  ;;  %v3407_v59 = vld [vmem:[%s4895_s3 + $0xf8] sm:$0xff]   ;;  %v4003_v60 = vmax.f32 %v457_v6, 0.0  ;;  %v294_v6 = vld [vmem:[%s3538_s20 + $0xa8] sm:$0xff] }
  0x4a   : > { %v3978_v47 = vpack.c.bf16 %v708_v35, %v706_v39  ;;  %v488_v31 = vmax.f32 %v434_v54, 0.0  ;;  %v3982_v33 = vsel %vm333_vm0, %v486_v26, 0.0  ;;  %3012 = vmatpush3.bf16.msra.mxu0 %v3406_v3  ;;  %v458_v51 = vadd.f32 %v3560_v21, %v398_v43  ;;  %v315_v3 = vld [vmem:[%s3538_s20 + $0x150] sm:$0xff]  ;;  %v316_v54 = vld [vmem:[%s3538_s20 + $0x158] sm:$0xff]  ;;  %2901 = vmatprep.subr.bf16.mxu1 %v3407_v59 }
  0x4b   : > { %v669_v39 = vrot.slane %v3982_v33, 1  ;;  %v670_v40 = vrot.slane %v3973_v38, 1  ;;  %v510_v7 = vmax.f32 %v456_v11, 0.0  ;;  %v4006_v48 = vpack.c.bf16 %v3973_v38, %v486_v26  ;;  %v317_v26 = vld [vmem:[%s3538_s20 + $0x160] sm:$0x3]  ;;  %2902 = vmatpush3.bf16.msra.mxu1 %v3408_v55 }
  0x4c   : > { %4962 = vst [vmem:[#allocation19_spill] sm:$0xff] %v3978_v47  ;;  %1764 = vmatprep.mubr.bf16.mxu1 %v3978_v47  ;;  %v4001_v28 = vsel %vm344_vm1, %v488_v31, 0.0  ;;  %v376_v41 = vmul.f32 %v3555_v20, %v292_v52  ;;  %v512_v31 = vmax.f32 %v458_v51, 0.0  ;;  %v3409_v52 = vld [vmem:[%s4895_s3 + $0x178] sm:$0xff]   ;;  %v710_v47 = vrot.slane %v4003_v60, 1 }
  0x4d   : > { %4963 = vst [vmem:[#allocation20_spill] sm:$0xff] %v4006_v48  ;;  %v671_v43 = vsel %vm643_vm2, %v669_v39, %v670_v40  ;;  %v672_v35 = vrot.slane %v4001_v28, 1  ;;  %v4018_v11 = vsel %vm333_vm0, %v510_v7, 0.0  ;;  %v377_v39 = vmul.f32 %v3555_v20, %v293_v49  ;;  %3013 = vmatprep.subr.bf16.mxu0 %v3409_v52 }
  0x4e   : > { %2644 = vmatmul.mubr.msk.bf16.gmra.mrb[16].mxu0 %vm3646_vm4, %v3922_v22  ;;  %2668 = vmatmul.mubr.msk.bf16.gmra.mrb[16].mxu1 %vm3646_vm4, %v3942_v46  ;;  %v709_v59 = vrot.slane %v4018_v11, 1  ;;  %v4028_v46 = vpack.c.bf16 %v4003_v60, %v510_v7  ;;  %v4034_v18 = vsel %vm344_vm1, %v512_v31, 0.0  ;;  %v435_v24 = vadd.f32 %v3560_v21, %v375_v62  ;;  %v3410_v7 = vld [vmem:[%s4895_s3 + $0x138] sm:$0xff]   ;;  %v3411_v62 = vld [vmem:[%s4895_s3 + $0x1c0] sm:$0xff]  }
  0x4f   : > { %v673_v51 = vsel %vm643_vm2, %v670_v40, %v672_v35  ;;  %v436_v45 = vadd.f32 %v3560_v21, %v376_v41  ;;  %v712_v40 = vrot.slane %v4034_v18, 1  ;;  %v437_v55 = vadd.f32 %v3560_v21, %v377_v39  ;;  %3014 = vmatpush3.bf16.msra.mxu0 %v3410_v7  ;;  %3111 = vmatprep.subr.bf16.mxu1 %v3411_v62 }
  0x50   : > { %4964 = vst [vmem:[#allocation21_spill] sm:$0xff] %v4028_v46  ;;  %v4041_v32 = vpack.c.bf16 %v673_v51, %v671_v43  ;;  %v711_v49 = vsel %vm643_vm2, %v709_v59, %v710_v47  ;;  %v489_v35 = vmax.f32 %v435_v24, 0.0  ;;  %v399_v31 = vmul.f32 %v3555_v20, %v315_v3  ;;  %v295_v51 = vld [vmem:[%s3538_s20 + $0xb0] sm:$0xff] }
  0x51   : > { %v4049_v41 = vmax.f32 %v436_v45, 0.0  ;;  %v400_v52 = vmul.f32 %v3555_v20, %v316_v54  ;;  %v713_v43 = vsel %vm643_vm2, %v710_v47, %v712_v40  ;;  %v491_v59 = vmax.f32 %v437_v55, 0.0  ;;  %v3413_v54 = vld [vmem:[%s4895_s3 + $0x240] sm:$0xff]  }
  0x52   : > { %4965 = vst [vmem:[#allocation22_spill] sm:$0xff] %v4041_v32  ;;  %1708 = vmatprep.mubr.bf16.mxu0 %v4041_v32  ;;  %v401_v39 = vmul.f32 %v3555_v20, %v317_v26  ;;  %v378_v36 = vmul.f32 %v3555_v20, %v294_v6  ;;  %v4059_v24 = vpack.c.bf16 %v713_v43, %v711_v49  ;;  %v4066_v45 = vsel %vm333_vm0, %v489_v35, 0.0  ;;  %v318_v43 = vld [vmem:[%s3538_s20 + $0x168] sm:$0xff]  ;;  %v320_v32 = vld [vmem:[%s3538_s20 + $0x178] sm:$0x3] }
  0x53   : > { %v675_v47 = vrot.slane %v4049_v41, 1  ;;  %v459_v3 = vadd.f32 %v3560_v21, %v399_v31  ;;  %v4075_v26 = vsel %vm344_vm1, %v491_v59, 0.0  ;;  %v674_v6 = vrot.slane %v4066_v45, 1  ;;  %3223 = vmatprep.subr.bf16.mxu0 %v3413_v54 }
  0x54   : > { %4966 = vst [vmem:[#allocation23_spill] sm:$0xff] %v4059_v24  ;;  %4967 = vst [vmem:[#allocation24_spill] sm:$0xff] %v4075_v26  ;;  %v460_v7 = vadd.f32 %v3560_v21, %v400_v52  ;;  %v461_v49 = vadd.f32 %v3560_v21, %v401_v39  ;;  %1772 = vmatprep.mubr.bf16.mxu1 %v4059_v24  ;;  %v677_v40 = vrot.slane %v4075_v26, 1 }
  0x55   : > { %v513_v55 = vmax.f32 %v459_v3, 0.0  ;;  %v4083_v62 = vpack.c.bf16 %v4049_v41, %v489_v35  ;;  %v379_v31 = vmul.f32 %v3555_v20, %v295_v51  ;;  %v676_v52 = vsel %vm643_vm2, %v674_v6, %v675_v47 }
  0x56   : > { %2647 = vmatmul.mubr.msk.bf16.gmra.mrb[20].mxu0 %vm3646_vm4, %v4006_v48  ;;  %2671 = vmatmul.mubr.msk.bf16.gmra.mrb[20].mxu1 %vm3646_vm4, %v4028_v46  ;;  %v4091_v59 = vmax.f32 %v460_v7, 0.0  ;;  %v515_v39 = vmax.f32 %v461_v49, 0.0  ;;  %v380_v24 = vmul.f32 %v3555_v20, %v296_v44  ;;  %v678_v3 = vsel %vm643_vm2, %v675_v47, %v677_v40  ;;  %v319_v48 = vld [vmem:[%s3538_s20 + $0x170] sm:$0xff] }
  0x57   : > { %v4098_v35 = vsel %vm333_vm0, %v513_v55, 0.0  ;;  %v438_v51 = vadd.f32 %v3560_v21, %v378_v36  ;;  %v439_v54 = vadd.f32 %v3560_v21, %v379_v31  ;;  %v4103_v46 = vpack.c.bf16 %v678_v3, %v676_v52 }
  0x58   : > { %v4107_v6 = vsel %vm344_vm1, %v515_v39, 0.0  ;;  %v714_v44 = vrot.slane %v4098_v35, 1  ;;  %v715_v7 = vrot.slane %v4091_v59, 1  ;;  %v4113_v49 = vpack.c.bf16 %v4091_v59, %v513_v55 }
  0x59   : > { %v717_v47 = vrot.slane %v4107_v6, 1  ;;  %v440_v36 = vadd.f32 %v3560_v21, %v380_v24  ;;  %v492_v40 = vmax.f32 %v438_v51, 0.0  ;;  %1716 = vmatprep.mubr.bf16.mxu0 %v4103_v46  ;;  %v4118_v52 = vmax.f32 %v439_v54, 0.0 }
  0x5a   : > { %4968 = vst [vmem:[#allocation25_spill] sm:$0xff] %v4113_v49  ;;  %v716_v31 = vsel %vm643_vm2, %v714_v44, %v715_v7  ;;  %v402_v39 = vmul.f32 %v3555_v20, %v318_v43  ;;  %v403_v3 = vmul.f32 %v3555_v20, %v319_v48  ;;  %v404_v51 = vmul.f32 %v3555_v20, %v320_v32 }
  0x5b   : > { %v718_v26 = vsel %vm643_vm2, %v715_v7, %v717_v47  ;;  %v494_v55 = vmax.f32 %v440_v36, 0.0  ;;  %v4128_v24 = vsel %vm333_vm0, %v492_v40, 0.0  ;;  %v680_v43 = vrot.slane %v4118_v52, 1 }
  0x5c   : > { %v4131_v44 = vpack.c.bf16 %v718_v26, %v716_v31  ;;  %v679_v54 = vrot.slane %v4128_v24, 1  ;;  %v462_v48 = vadd.f32 %v3560_v21, %v402_v39  ;;  %v463_v47 = vadd.f32 %v3560_v21, %v403_v3 }
  0x5d   : > { %v4138_v7 = vsel %vm344_vm1, %v494_v55, 0.0  ;;  %v464_v36 = vadd.f32 %v3560_v21, %v404_v51  ;;  %v4146_v31 = vpack.c.bf16 %v4118_v52, %v492_v40  ;;  %v4970_v3 = vrot.slane %v3627_v0, 2 }
  0x5e   : > { %2650 = vmatmul.mubr.msk.bf16.gmra.mrb[24].mxu0 %vm3646_vm4, %v4083_v62  ;;  %4969 = vst [vmem:[#allocation26_spill] sm:$0xff] %v4131_v44  ;;  %1780 = vmatprep.mubr.bf16.mxu1 %v4131_v44  ;;  %v681_v20 = vsel %vm643_vm2, %v679_v54, %v680_v43  ;;  %v682_v32 = vrot.slane %v4138_v7, 1  ;;  %v516_v26 = vmax.f32 %v462_v48, 0.0  ;;  %v4151_v39 = vmax.f32 %v463_v47, 0.0 }
  0x5f   : > { %2674 = vmatmul.mubr.msk.bf16.gmra.mrb[24].mxu1 %vm3646_vm4, %v4113_v49  ;;  %v518_v55 = vmax.f32 %v464_v36, 0.0  ;;  %v4971_v21 = vrot.slane %v3640_v9, 2  ;;  %v781_v54 = vrot.slane %v3658_v23, 2  ;;  %v783_v44 = vrot.slane %v3731_v10, 2 }
  0x60   : > { %v683_v48 = vsel %vm643_vm2, %v680_v43, %v682_v32  ;;  %v4162_v40 = vsel %vm333_vm0, %v516_v26, 0.0  ;;  %v784_v47 = vrot.slane %v3712_v58, 2  ;;  %v720_v23 = vrot.slane %v4151_v39, 1 }
  0x61   : > { %v780_v51 = vsel %vm772_vm5, %v4971_v21, %v4970_v3  ;;  %v4166_v49 = vpack.c.bf16 %v683_v48, %v681_v20  ;;  %v4170_v36 = vsel %vm344_vm1, %v518_v55, 0.0  ;;  %v719_v9 = vrot.slane %v4162_v40, 1 }
  0x62   : > { %v722_v43 = vrot.slane %v4170_v36, 1  ;;  %v4972_v32 = vmov %v4970_v3  ;;  %v786_v10 = vrot.slane %v3752_v29, 2  ;;  %v4188_v21 = vpack.c.bf16 %v4151_v39, %v516_v26 }
  0x63   : > { %v782_v3 = vsel %vm772_vm5, %v4972_v32, %v781_v54  ;;  %1724 = vmatprep.mubr.bf16.mxu0 %v4166_v49  ;;  %v721_v58 = vsel %vm643_vm2, %v719_v9, %v720_v23  ;;  %v785_v29 = vsel %vm772_vm5, %v783_v44, %v784_v47  ;;  %v4973_v48 = vmov 0.0   ;;  %v3414_v44 = vld [vmem:[%s4895_s3 + $0x200] sm:$0xff]  }
  0x64   : > { %v4181_v20 = vpack.c.bf16 %v782_v3, %v780_v51  ;;  %v723_v55 = vsel %vm643_vm2, %v720_v23, %v722_v43  ;;  %v787_v54 = vsel %vm772_vm5, %v784_v47, %v786_v10  ;;  %v773_v51 = vrot.slane %v4973_v48, 2  ;;  %v3415_v10 = vld [vmem:[%s4895_s3 + $0x1c8] sm:$0xff]  }
  0x65   : > { %v4190_v0 = vpack.c.bf16 %v723_v55, %v721_v58  ;;  %v788_v9 = vrot.slane %v3803_v15, 2  ;;  %v789_v26 = vrot.slane %v3796_v4, 2  ;;  %v791_v23 = vrot.slane %v3816_v34, 2  ;;  %v3417_v15 = vld [vmem:[%s4895_s3 + $0x248] sm:$0xff]   ;;  %v3412_v4 = vld [vmem:[%s4895_s3 + $0x180] sm:$0xff]  }
  0x66   : > { %2653 = vmatmul.mubr.msk.bf16.gmra.mrb[28].mxu0 %vm3646_vm4, %v4146_v31  ;;  %v4209_v47 = vpack.c.bf16 %v787_v54, %v785_v29  ;;  %v4214_v43 = vpack.c.bf16 %v773_v51, %v773_v51  ;;  %v793_v32 = vrot.slane %v3892_v8, 2  ;;  %v794_v3 = vrot.slane %v3885_v61, 2  ;;  %v3416_v61 = vld [vmem:[%s4895_s3 + $0x188] sm:$0xff]   ;;  %v3421_v54 = vld [vmem:[%s4895_s3 + $0x250] sm:$0xff]  }
  0x67   : > { %1990 = vmatprep.mubr.bf16.mxu0 %v4181_v20  ;;  %1788 = vmatprep.mubr.bf16.mxu1 %v4190_v0  ;;  %v792_v34 = vsel %vm772_vm5, %v789_v26, %v791_v23  ;;  %v796_v58 = vrot.slane %v3910_v30, 2  ;;  %v823_v55 = vrot.slane %v3777_v56, 2  ;;  %v824_v8 = vrot.slane %v3763_v42, 2 }
  0x68   : > { %2677 = vmatmul.mubr.msk.bf16.gmra.mrb[28].mxu1 %vm3646_vm4, %v4188_v21  ;;  %v826_v48 = vrot.slane %v3793_v1, 2  ;;  %v828_v51 = vrot.slane %v3859_v27, 2  ;;  %v829_v30 = vrot.slane %v3844_v5, 2  ;;  %v795_v42 = vsel %vm772_vm5, %v793_v32, %v794_v3 }
  0x69   : > { %2680 = vmatprep.mubr.msk.bf16.mxu1 %vm3646_vm4, %v3665_v25  ;;  %v790_v25 = vsel %vm772_vm5, %v788_v9, %v789_v26  ;;  %v825_v56 = vsel %vm772_vm5, %v823_v55, %v824_v8  ;;  %v831_v9 = vrot.slane %v3873_v37, 2  ;;  %v833_v26 = vrot.slane %v3929_v19, 2  ;;  %v3419_v37 = vld [vmem:[%s4895_s3 + $0x1d0] sm:$0xff]  }
  0x6a   : > { %v4234_v29 = vpack.c.bf16 %v792_v34, %v790_v25  ;;  %v827_v1 = vsel %vm772_vm5, %v824_v8, %v826_v48  ;;  %v830_v27 = vsel %vm772_vm5, %v828_v51, %v829_v30  ;;  %v834_v5 = vrot.slane %v3919_v53, 2  ;;  %v3422_v19 = vld [vmem:[%s4895_s3 + $0x210] sm:$0xff]   ;;  %v3425_v25 = vld [vmem:[%s4895_s3 + $0x258] sm:$0xff]  }
  0x6b   : > { %v836_v23 = vrot.slane %v3954_v2, 2  ;;  %v839_v53 = vrot.slane %v4003_v60, 2  ;;  %v3420_v2 = vld [vmem:[%s4895_s3 + $0x190] sm:$0xff]   ;;  %v843_v55 = vrot.slane %v4098_v35, 2  ;;  %v844_v8 = vrot.slane %v4091_v59, 2  ;;  %v3426_v59 = vld [vmem:[%s4895_s3 + $0x218] sm:$0xff]  }
  0x6c   : > { %v835_v32 = vsel %vm772_vm5, %v833_v26, %v834_v5  ;;  %v848_v51 = vrot.slane %v4162_v40, 2  ;;  %v3424_v26 = vld [vmem:[%s4895_s3 + $0x198] sm:$0xff]  }
  0x6e   : > { %1991 = vmatmul.mubr.bf16.vlgmr.msra.gmra.mrb[32].mxu0 %v3701_v50  ;;  %v3418_v50 = vld [vmem:[%s4895_s3 + $0x208] sm:$0xff]  }
  0x6f   : > { %3224 = vmatpush3.bf16.msra.mxu0 %v3414_v44  ;;  %1998 = vmatprep.mubr.bf16.mxu0 %v4209_v47  ;;  %v4263_v44 = vpack.c.bf16 %v827_v1, %v825_v56  ;;  %v797_v56 = vsel %vm772_vm5, %v794_v3, %v796_v58 }
  0x70   : > { %3225 = vmatprep.subr.bf16.mxu0 %v3417_v15  ;;  %1830 = vmatmul.mubr.bf16.vlgmr.msra.gmra.mrb[32].mxu1 %v4214_v43  ;;  %v832_v15 = vsel %vm772_vm5, %v829_v30, %v831_v9  ;;  %v849_v30 = vrot.slane %v4151_v39, 2  ;;  %v851_v9 = vrot.slane %v4170_v36, 2  ;;  %v4313_v36 = vpack.c.bf16 %v797_v56, %v795_v42  ;;  %v3427_v42 = vld [vmem:[%s4895_s3 + $0x1e0] sm:$0xff]  }
  0x71   : > { %3112 = vmatpush3.bf16.msra.mxu1 %v3412_v4  ;;  %2683 = vmatprep.mubr.msk.bf16.mxu1 %vm3646_vm4, %v3735_v13  ;;  %v838_v4 = vrot.slane %v4018_v11, 2  ;;  %v4274_v34 = vpack.c.bf16 %v832_v15, %v830_v27  ;;  %v798_v27 = vrot.slane %v3982_v33, 2  ;;  %v3434_v15 = vld [vmem:[%s4895_s3 + $0x228] sm:$0xff]  }
  0x72   : > { %3113 = vmatprep.subr.bf16.mxu1 %v3415_v10  ;;  %v837_v10 = vsel %vm772_vm5, %v834_v5, %v836_v23  ;;  %v850_v40 = vsel %vm772_vm5, %v848_v51, %v849_v30  ;;  %v852_v58 = vsel %vm772_vm5, %v849_v30, %v851_v9  ;;  %v801_v5 = vrot.slane %v4001_v28, 2  ;;  %v3430_v23 = vld [vmem:[%s4895_s3 + $0x220] sm:$0xff]   ;;  %v3442_v51 = vld [vmem:[%s4895_s3 + $0x238] sm:$0xff]   ;;  %v4976_v30 = vld [vmem:[#allocation20_spill] sm:$0xff] }
  0x73   : > { %3226 = vmatpush3.bf16.msra.mxu0 %v3418_v50  ;;  %v841_v50 = vrot.slane %v4034_v18, 2  ;;  %v4280_v60 = vpack.c.bf16 %v837_v10, %v835_v32  ;;  %v840_v11 = vsel %vm772_vm5, %v838_v4, %v839_v53  ;;  %v846_v18 = vrot.slane %v4107_v6, 2  ;;  %v3429_v6 = vld [vmem:[%s4895_s3 + $0x260] sm:$0xff]   ;;  %v3437_v4 = vld [vmem:[%s4895_s3 + $0x270] sm:$0xff]  }
  0x74   : > { %3227 = vmatprep.subr.bf16.mxu0 %v3421_v54  ;;  %v3423_v54 = vld [vmem:[%s4895_s3 + $0x1d8] sm:$0xff]   ;;  %v4318_v1 = vpack.c.bf16 %v852_v58, %v850_v40  ;;  %v804_v32 = vrot.slane %v4049_v41, 2  ;;  %v4974_v10 = vld [vmem:[#allocation24_spill] sm:$0xff]  ;;  %v809_v9 = vrot.slane %v4118_v52, 2 }
  0x75   : > { %3114 = vmatpush3.bf16.msra.mxu1 %v3416_v61  ;;  %v842_v48 = vsel %vm772_vm5, %v839_v53, %v841_v50  ;;  %v845_v61 = vsel %vm772_vm5, %v843_v55, %v844_v8  ;;  %v847_v39 = vsel %vm772_vm5, %v844_v8, %v846_v18  ;;  %v806_v50 = vrot.slane %v4974_v10, 2  ;;  %v3438_v55 = vld [vmem:[%s4895_s3 + $0x230] sm:$0xff]   ;;  %v3441_v8 = vld [vmem:[%s4895_s3 + $0x278] sm:$0xff]  }
  0x76   : > { %1999 = vmatmul.mubr.bf16.gmra.mrb[36].mxu0 %v3789_v63  ;;  %3115 = vmatprep.subr.bf16.mxu1 %v3419_v37  ;;  %v4297_v35 = vpack.c.bf16 %v842_v48, %v840_v11  ;;  %v4307_v3 = vpack.c.bf16 %v847_v39, %v845_v61  ;;  %v3433_v37 = vld [vmem:[%s4895_s3 + $0x268] sm:$0xff]   ;;  %v3435_v11 = vld [vmem:[%s4895_s3 + $0x1f0] sm:$0xff]   ;;  %v3439_v18 = vld [vmem:[%s4895_s3 + $0x1f8] sm:$0xff]   ;;  %v808_v61 = vrot.slane %v4128_v24, 2 }
  0x77   : > { %2006 = vmatprep.mubr.bf16.mxu0 %v4234_v29  ;;  %3228 = vmatpush3.bf16.msra.mxu0 %v3422_v19  ;;  %v3431_v19 = vld [vmem:[%s4895_s3 + $0x1e8] sm:$0xff]   ;;  %v3436_v41 = vld [vmem:[%s4895_s3 + $0x1b0] sm:$0xff]   ;;  %v807_v48 = vsel %vm772_vm5, %v804_v32, %v806_v50  ;;  %v4977_v39 = vld [vmem:[#allocation22_spill] sm:$0xff] }
  0x78   : > { %3229 = vmatprep.subr.bf16.mxu0 %v3425_v25  ;;  %1838 = vmatmul.mubr.bf16.gmra.mrb[36].mxu1 %v4181_v20  ;;  %v799_v20 = vrot.slane %v3973_v38, 2  ;;  %v3428_v38 = vld [vmem:[%s4895_s3 + $0x1a0] sm:$0xff]   ;;  %v803_v25 = vrot.slane %v4066_v45, 2  ;;  %v810_v40 = vsel %vm772_vm5, %v808_v61, %v809_v9  ;;  %v4978_v24 = vld [vmem:[#allocation4_spill] sm:$0xff]  ;;  %v4985_v50 = vld [vmem:[#allocation7_spill] sm:$0xff] }
  0x79   : > { %2686 = vmatprep.mubr.msk.bf16.mxu1 %vm3646_vm4, %v3833_v57  ;;  %3116 = vmatpush3.bf16.msra.mxu1 %v3420_v2  ;;  %v3432_v2 = vld [vmem:[%s4895_s3 + $0x1a8] sm:$0xff]   ;;  %v4975_v45 = vld [vmem:[#allocation18_spill] sm:$0xff] }
  0x7a   : > { %3117 = vmatprep.subr.bf16.mxu1 %v3423_v54  ;;  %v800_v33 = vsel %vm772_vm5, %v798_v27, %v799_v20  ;;  %v802_v28 = vsel %vm772_vm5, %v799_v20, %v801_v5  ;;  %v805_v54 = vsel %vm772_vm5, %v803_v25, %v804_v32  ;;  %v4980_v20 = vld [vmem:[#allocation5_spill] sm:$0xff]  ;;  %v4984_v32 = vld [vmem:[#allocation6_spill] sm:$0xff]  ;;  %v322_v61 = vld [vmem:[%s3538_s20 + $0x188] sm:$0xff] }
  0x7b   : > { %3230 = vmatpush3.bf16.msra.mxu0 %v3426_v59  ;;  %v4352_v53 = vpack.c.bf16 %v802_v28, %v800_v33  ;;  %v4386_v56 = vpack.c.bf16 %v807_v48, %v805_v54  ;;  %v3440_v59 = vld [vmem:[%s4895_s3 + $0x1b8] sm:$0xff]   ;;  %v816_v5 = vrot.slane %v4980_v20, 2  ;;  %v4982_v28 = vld [vmem:[#allocation8_spill] sm:$0xff]  ;;  %v4990_v54 = vld [vmem:[#allocation15_spill] sm:$0xff] }
  0x7c   : > { %3231 = vmatprep.subr.bf16.mxu0 %v3429_v6  ;;  %v811_v6 = vrot.slane %v4138_v7, 2  ;;  %v813_v7 = vrot.slane %v4978_v24, 2  ;;  %v4991_v48 = vld [vmem:[#allocation16_spill] sm:$0xff]  ;;  %v4994_v20 = vld [vmem:[#allocation21_spill] sm:$0xff] }
  0x7d   : > { %3118 = vmatpush3.bf16.msra.mxu1 %v3424_v26  ;;  %v4979_v26 = vld [vmem:[#allocation3_spill] sm:$0xff] }
  0x7e   : > { %2007 = vmatmul.mubr.bf16.gmra.mrb[40].mxu0 %v3855_v17  ;;  %3119 = vmatprep.subr.bf16.mxu1 %v3427_v42  ;;  %v812_v58 = vsel %vm772_vm5, %v809_v9, %v811_v6  ;;  %v814_v27 = vrot.slane %v4979_v26, 2  ;;  %v3443_v9 = vld [vmem:[%s4893_s1] ss:$0 sm:$0xff] }
  0x7f   : > { %2014 = vmatprep.mubr.bf16.mxu0 %v4313_v36  ;;  %3232 = vmatpush3.bf16.msra.mxu0 %v3430_v23  ;;  %v4402_v52 = vpack.c.bf16 %v812_v58, %v810_v40  ;;  %v4993_v58 = vld [vmem:[#allocation19_spill] sm:$0xff]  ;;  %v406_v24 = vmul.f32 %v3443_v9, %v322_v61 }
  0x80   : > { %3233 = vmatprep.subr.bf16.mxu0 %v3433_v37  ;;  %1846 = vmatmul.mubr.bf16.gmra.mrb[40].mxu1 %v4209_v47  ;;  %v815_v42 = vsel %vm772_vm5, %v813_v7, %v814_v27  ;;  %v817_v23 = vsel %vm772_vm5, %v814_v27, %v816_v5  ;;  %v3444_v7 = vld [vmem:[%s4894_s2] ss:$0 sm:$0xff] }
  0x81   : > { %2689 = vmatprep.mubr.msk.bf16.mxu1 %vm3646_vm4, %v3922_v22  ;;  %3120 = vmatpush3.bf16.msra.mxu1 %v3428_v38  ;;  %v4415_v37 = vpack.c.bf16 %v817_v23, %v815_v42  ;;  %v4981_v38 = vld [vmem:[#allocation9_spill] sm:$0xff]  ;;  %v466_v5 = vadd.f32 %v3444_v7, %v406_v24 }
  0x82   : > { %3121 = vmatprep.subr.bf16.mxu1 %v3431_v19  ;;  %v818_v33 = vrot.slane %v4981_v38, 2  ;;  %v819_v19 = vrot.slane %v4982_v28, 2  ;;  %v4995_v38 = vld [vmem:[#allocation23_spill] sm:$0xff] }
  0x83   : > { %3234 = vmatpush3.bf16.msra.mxu0 %v3434_v15  ;;  %v4983_v15 = vld [vmem:[#allocation10_spill] sm:$0xff] }
  0x84   : > { %3235 = vmatprep.subr.bf16.mxu0 %v3437_v4  ;;  %v821_v4 = vrot.slane %v4983_v15, 2  ;;  %v4996_v15 = vld [vmem:[#allocation25_spill] sm:$0xff] }
  0x85   : > { %3122 = vmatpush3.bf16.msra.mxu1 %v3432_v2  ;;  %v820_v2 = vsel %vm772_vm5, %v818_v33, %v819_v19  ;;  %v520_v33 = vmax.f32 %v466_v5, 0.0 }
  0x86   : > { %2015 = vmatmul.mubr.bf16.gmra.mrb[44].mxu0 %v4975_v45  ;;  %3123 = vmatprep.subr.bf16.mxu1 %v3435_v11  ;;  %v822_v25 = vsel %vm772_vm5, %v819_v19, %v821_v4  ;;  %v4986_v11 = vld [vmem:[#allocation11_spill] sm:$0xff] }
  0x87   : > { %2022 = vmatprep.mubr.bf16.mxu0 %v4352_v53  ;;  %3236 = vmatpush3.bf16.msra.mxu0 %v3438_v55  ;;  %v4428_v10 = vpack.c.bf16 %v822_v25, %v820_v2  ;;  %v4987_v55 = vld [vmem:[#allocation12_spill] sm:$0xff]  ;;  %v914_v2 = vrot.slane %v520_v33, 2 }
  0x88   : > { %3237 = vmatprep.subr.bf16.mxu0 %v3441_v8  ;;  %1854 = vmatmul.mubr.bf16.gmra.mrb[44].mxu1 %v4234_v29  ;;  %v4988_v8 = vld [vmem:[#allocation13_spill] sm:$0xff] }
  0x89   : > { %2692 = vmatprep.mubr.msk.bf16.mxu1 %vm3646_vm4, %v4976_v30  ;;  %3124 = vmatpush3.bf16.msra.mxu1 %v3436_v41  ;;  %v4989_v41 = vld [vmem:[#allocation14_spill] sm:$0xff] }
  0x8a   : > { %3125 = vmatprep.subr.bf16.mxu1 %v3439_v18  ;;  %v321_v18 = vld [vmem:[%s3538_s20 + $0x180] sm:$0xff] }
  0x8b   : > { %3238 = vmatpush3.bf16.msra.mxu0 %v3442_v51  ;;  %v323_v51 = vld [vmem:[%s3538_s20 + $0x190] sm:$0x3]  ;;  %v405_v6 = vmul.f32 %v3443_v9, %v321_v18  ;;  %v4997_v18 = vld [vmem:[#allocation26_spill] sm:$0xff]  ;;  %s2773_s20 = sshll.u32 %s5001_s22, 8 }
  0x8c   : > { %v407_v40 = vmul.f32 %v3443_v9, %v323_v51  ;;  %v906_v9 = vrot.slane %v520_v33, 1  ;;  %s4495_s28 = scalar_lea.vmem %s4897_s5, %s2773_s20  ;;  %s4824_s9 = scalar_lea.vmem %s4898_s6, %s2773_s20 }
  0x8d   : > { %3126 = vmatpush3.bf16.msra.mxu1 %v3440_v59  ;;  %v4992_v59 = vld [vmem:[#allocation17_spill] sm:$0xff]  ;;  %v465_v26 = vadd.f32 %v3444_v7, %v405_v6 }
  0x8e   : > { %2023 = vmatmul.mubr.bf16.gmra.mrb[48].mxu0 %v4977_v39  ;;  %v467_v27 = vadd.f32 %v3444_v7, %v407_v40 }
  0x8f   : > { %2030 = vmatprep.mubr.bf16.mxu0 %v4386_v56  ;;  %v519_v42 = vmax.f32 %v465_v26, 0.0  ;;  %v941_v26 = vld [vmem:[%s4495_s28] sm:$0xff] }
  0x90   : > { %1862 = vmatmul.mubr.bf16.gmra.mrb[48].mxu1 %v4313_v36  ;;  %v521_v23 = vmax.f32 %v467_v27, 0.0  ;;  %v942_v27 = vld [vmem:[%s4495_s28 + $0x8] sm:$0xff] }
  0x91   : > { %2695 = vmatprep.mubr.msk.bf16.mxu1 %vm3646_vm4, %v4083_v62  ;;  %v573_v28 = vsel %vm333_vm0, %v519_v42, 0.0  ;;  %v4498_v40 = vpack.c.bf16 %v520_v33, %v519_v42  ;;  %v973_v42 = vpack.c.bf16 %v942_v27, %v941_v26  ;;  %v944_v33 = vld [vmem:[%s4495_s28 + $0x18] sm:$0xff] }
  0x92   : > { %v575_v19 = vsel %vm344_vm1, %v521_v23, 0.0  ;;  %v913_v4 = vrot.slane %v573_v28, 2  ;;  %v905_v61 = vrot.slane %v573_v28, 1  ;;  %v943_v23 = vld [vmem:[%s4495_s28 + $0x10] sm:$0xff] }
  0x93   : > { %v916_v25 = vrot.slane %v575_v19, 2  ;;  %v908_v6 = vrot.slane %v575_v19, 1  ;;  %v974_v28 = vpack.c.bf16 %v944_v33, %v943_v23  ;;  %v945_v19 = vld [vmem:[%s4495_s28 + $0x20] sm:$0xff] }
  0x94   : > { %v915_v12 = vsel %vm772_vm5, %v913_v4, %v914_v2  ;;  %v907_v24 = vsel %vm643_vm2, %v905_v61, %v906_v9  ;;  %v946_v4 = vld [vmem:[%s4495_s28 + $0x28] sm:$0xff] }
  0x95   : > { %v917_v51 = vsel %vm772_vm5, %v914_v2, %v916_v25  ;;  %v909_v7 = vsel %vm643_vm2, %v906_v9, %v908_v6  ;;  %v975_v2 = vpack.c.bf16 %v946_v4, %v945_v19  ;;  %v947_v25 = vld [vmem:[%s4495_s28 + $0x30] sm:$0xff]  ;;  %v952_v4 = vld [vmem:[%s4495_s28 + $0x58] sm:$0xff] }
  0x96   : > { %2031 = vmatmul.mubr.bf16.gmra.mrb[52].mxu0 %v4103_v46  ;;  %v4488_v16 = vpack.c.bf16 %v917_v51, %v915_v12  ;;  %v4506_v5 = vpack.c.bf16 %v909_v7, %v907_v24  ;;  %v949_v51 = vld [vmem:[%s4495_s28 + $0x40] sm:$0xff]  ;;  %v951_v19 = vld [vmem:[%s4495_s28 + $0x50] sm:$0xff] }
  0x97   : > { %2038 = vmatprep.mubr.bf16.mxu0 %v4402_v52 }
  0x98   : > { %1870 = vmatmul.mubr.bf16.gmra.mrb[52].mxu1 %v4352_v53 }
  0x99   : > { %2698 = vmatprep.mubr.msk.bf16.mxu1 %vm3646_vm4, %v4146_v31 }
  0x9e   : > { %2039 = vmatmul.mubr.bf16.gmra.mrb[56].mxu0 %v4166_v49 }
  0x9f   : > { %2046 = vmatprep.mubr.bf16.mxu0 %v4415_v37 }
  0xa0   : > { %1878 = vmatmul.mubr.bf16.gmra.mrb[56].mxu1 %v4386_v56 }
  0xa1   : > { %2701 = vmatprep.mubr.msk.bf16.mxu1 %vm3646_vm4, %v4984_v32 }
  0xa6   : > { %2047 = vmatmul.mubr.bf16.gmra.mrb[60].mxu0 %v4985_v50 }
  0xa7   : > { %2054 = vmatprep.mubr.bf16.mxu0 %v4428_v10 }
  0xa8   : > { %1886 = vmatmul.mubr.bf16.gmra.mrb[60].mxu1 %v4402_v52 }
  0xa9   : > { %2704 = vmatprep.mubr.msk.bf16.mxu1 %vm3646_vm4, %v4986_v11 }
  0xae   : > { %2055 = vmatmul.mubr.bf16.gmra.mrb[64].mxu0 %v4987_v55 }
  0xaf   : > { %2062 = vmatprep.mubr.bf16.mxu0 %v4263_v44 }
  0xb0   : > { %1894 = vmatmul.mubr.bf16.gmra.mrb[64].mxu1 %v4415_v37 }
  0xb1   : > { %2707 = vmatprep.mubr.msk.bf16.mxu1 %vm3646_vm4, %v4988_v8 }
  0xb6   : > { %2063 = vmatmul.mubr.bf16.gmra.mrb[68].mxu0 %v4989_v41 }
  0xb7   : > { %2070 = vmatprep.mubr.bf16.mxu0 %v4274_v34 }
  0xb8   : > { %1902 = vmatmul.mubr.bf16.gmra.mrb[68].mxu1 %v4428_v10 }
  0xb9   : > { %2710 = vmatprep.mubr.msk.bf16.mxu1 %vm3646_vm4, %v4990_v54 }
  0xbe   : > { %2071 = vmatmul.mubr.bf16.gmra.mrb[72].mxu0 %v4991_v48 }
  0xbf   : > { %2078 = vmatprep.mubr.bf16.mxu0 %v4280_v60 }
  0xc0   : > { %1910 = vmatmul.mubr.bf16.gmra.mrb[72].mxu1 %v4263_v44 }
  0xc1   : > { %2713 = vmatprep.mubr.msk.bf16.mxu1 %vm3646_vm4, %v4992_v59 }
  0xc6   : > { %2079 = vmatmul.mubr.bf16.gmra.mrb[76].mxu0 %v4993_v58 }
  0xc7   : > { %2086 = vmatprep.mubr.bf16.mxu0 %v4297_v35 }
  0xc8   : > { %1918 = vmatmul.mubr.bf16.gmra.mrb[76].mxu1 %v4274_v34 }
  0xc9   : > { %2716 = vmatprep.mubr.msk.bf16.mxu1 %vm3646_vm4, %v4994_v20 }
  0xce   : > { %2087 = vmatmul.mubr.bf16.gmra.mrb[80].mxu0 %v4995_v38 }
  0xcf   : > { %2094 = vmatprep.mubr.bf16.mxu0 %v4307_v3 }
  0xd0   : > { %1926 = vmatmul.mubr.bf16.gmra.mrb[80].mxu1 %v4280_v60 }
  0xd1   : > { %2719 = vmatprep.mubr.msk.bf16.mxu1 %vm3646_vm4, %v4996_v15 }
  0xd6   : > { %2095 = vmatmul.mubr.bf16.gmra.mrb[84].mxu0 %v4997_v18 }
  0xd7   : > { %2102 = vmatprep.mubr.bf16.mxu0 %v4318_v1 }
  0xd8   : > { %1934 = vmatmul.mubr.bf16.gmra.mrb[84].mxu1 %v4297_v35 }
  0xd9   : > { %2722 = vmatprep.mubr.msk.bf16.mxu1 %vm3646_vm4, %v4188_v21 }
  0xde   : > { %2103 = vmatmul.mubr.bf16.gmra.mrb[88].mxu0 %v4190_v0 }
  0xdf   : > { %2110 = vmatprep.mubr.bf16.mxu0 %v4488_v16 }
  0xe0   : > { %1942 = vmatmul.mubr.bf16.gmra.mrb[88].mxu1 %v4307_v3 }
  0xe1   : > { %2725 = vmatprep.mubr.msk.bf16.mxu1 %vm3646_vm4, %v4498_v40 }
  0xe6   : > { %2111 = vmatmul.mubr.bf16.gmra.mrb[92].mxu0 %v4506_v5 }
  0xe7   : > { %2312 = vmatprep.mubr.bf16.mxu0 %v973_v42 }
  0xe8   : > { %1950 = vmatmul.mubr.bf16.gmra.mrb[92].mxu1 %v4318_v1 }
  0xe9   : > { %2151 = vmatprep.mubr.bf16.mxu1 %v3789_v63  ;;  %v948_v63 = vld [vmem:[%s4495_s28 + $0x38] sm:$0xff] }
  0xee   : > { %2313 = vmatmul.mubr.bf16.vlgmr.msra.gmra.mrb[96].mxu0 %v4209_v47  ;;  %v976_v47 = vpack.c.bf16 %v948_v63, %v947_v25 }
  0xef   : > { %2320 = vmatprep.mubr.bf16.mxu0 %v974_v28 }
  0xf0   : > { %2728 = vmatmul.mubr.msk.bf16.vlgmr.msra.gmra.mrb[96].mxu1 %vm3646_vm4, %v3735_v13 }
  0xf1   : > { %2159 = vmatprep.mubr.bf16.mxu1 %v3855_v17  ;;  %v950_v17 = vld [vmem:[%s4495_s28 + $0x48] sm:$0xff] }
  0xf2   : > { %v977_v26 = vpack.c.bf16 %v950_v17, %v949_v51  ;;  %v978_v51 = vpack.c.bf16 %v952_v4, %v951_v19 }
  0xf6   : > { %2321 = vmatmul.mubr.bf16.gmra.mrb[100].mxu0 %v4234_v29  ;;  %v4536_v29 = vld [vmem:[%s4896_s4] ss:$0 sm:$0xff] }
  0xf7   : > { %2328 = vmatprep.mubr.bf16.mxu0 %v975_v2 }
  0xf8   : > { %2731 = vmatmul.mubr.msk.bf16.gmra.mrb[100].mxu1 %vm3646_vm4, %v3833_v57 }
  0xf9   : > { %2167 = vmatprep.mubr.bf16.mxu1 %v4975_v45 }
  0xfe   : > { %2329 = vmatmul.mubr.bf16.gmra.mrb[104].mxu0 %v4313_v36 }
  0xff   : > { %2336 = vmatprep.mubr.bf16.mxu0 %v976_v47 }
 0x100   : > { %2734 = vmatmul.mubr.msk.bf16.gmra.mrb[104].mxu1 %vm3646_vm4, %v3922_v22 }
 0x101   : > { %v2791_v12 = vpop.f32.mrb[0].mxu0  ;;  %v2839_v13 = vpop.f32.mrb[0].mxu1  ;;  %2175 = vmatprep.mubr.bf16.mxu1 %v4977_v39 }
 0x102   : > { %v2792_v61 = vpop.f32.mrb[1].mxu0  ;;  %v2840_v9 = vpop.f32.mrb[1].mxu1 }
 0x103   : > { %v4541_v57 = vadd.f32 %v2792_v61, %v2791_v12  ;;  %v2841_v36 = vadd.f32 %v2840_v9, %v2839_v13  ;;  %v2794_v45 = vpop.f32.mrb[2].mxu0  ;;  %v2842_v6 = vpop.f32.mrb[2].mxu1 }
 0x104   : > { %v2795_v24 = vpop.f32.mrb[3].mxu0  ;;  %v2843_v7 = vpop.f32.mrb[3].mxu1 }
 0x105   : > { %v4545_v27 = vadd.f32 %v2841_v36, %v4536_v29  ;;  %v4547_v42 = vadd.f32 %v2795_v24, %v2794_v45  ;;  %v2844_v23 = vadd.f32 %v2843_v7, %v2842_v6  ;;  %v953_v45 = vld [vmem:[%s4495_s28 + $0x60] sm:$0xff]  ;;  %v954_v6 = vld [vmem:[%s4495_s28 + $0x68] sm:$0xff] }
 0x106   : > { %2337 = vmatmul.mubr.bf16.gmra.mrb[108].mxu0 %v4352_v53 }
 0x107   : > { %v4550_v22 = vadd.f32 %v2844_v23, %v4536_v29  ;;  %2344 = vmatprep.mubr.bf16.mxu0 %v977_v26 }
 0x108   : > { %2737 = vmatmul.mubr.msk.bf16.gmra.mrb[108].mxu1 %vm3646_vm4, %v4976_v30 }
 0x109   : > { %v2797_v33 = vpop.f32.mrb[4].mxu0  ;;  %v2845_v28 = vpop.f32.mrb[4].mxu1  ;;  %2183 = vmatprep.mubr.bf16.mxu1 %v4103_v46 }
 0x10a   : > { %v2798_v2 = vpop.f32.mrb[5].mxu0  ;;  %v2846_v25 = vpop.f32.mrb[5].mxu1 }
 0x10b   : > { %v4558_v39 = vadd.f32 %v2798_v2, %v2797_v33  ;;  %v2847_v63 = vadd.f32 %v2846_v25, %v2845_v28  ;;  %v2800_v47 = vpop.f32.mrb[6].mxu0  ;;  %v2848_v12 = vpop.f32.mrb[6].mxu1 }
 0x10c   : > { %v2801_v13 = vpop.f32.mrb[7].mxu0  ;;  %v2849_v53 = vpop.f32.mrb[7].mxu1 }
 0x10d   : > { %v4562_v17 = vadd.f32 %v2847_v63, %v4536_v29  ;;  %v4564_v61 = vadd.f32 %v2801_v13, %v2800_v47  ;;  %v2850_v9 = vadd.f32 %v2849_v53, %v2848_v12  ;;  %v955_v12 = vld [vmem:[%s4495_s28 + $0x70] sm:$0xff]  ;;  %v956_v13 = vld [vmem:[%s4495_s28 + $0x78] sm:$0xff] }
 0x10e   : > { %2345 = vmatmul.mubr.bf16.gmra.mrb[112].mxu0 %v4386_v56  ;;  %v979_v56 = vpack.c.bf16 %v954_v6, %v953_v45  ;;  %v980_v45 = vpack.c.bf16 %v956_v13, %v955_v12 }
 0x10f   : > { %v4567_v30 = vadd.f32 %v2850_v9, %v4536_v29  ;;  %2352 = vmatprep.mubr.bf16.mxu0 %v978_v51 }
 0x110   : > { %2740 = vmatmul.mubr.msk.bf16.gmra.mrb[112].mxu1 %vm3646_vm4, %v4083_v62 }
 0x111   : > { %v2803_v36 = vpop.f32.mrb[8].mxu0  ;;  %v2851_v24 = vpop.f32.mrb[8].mxu1  ;;  %2191 = vmatprep.mubr.bf16.mxu1 %v4166_v49 }
 0x112   : > { %v2804_v7 = vpop.f32.mrb[9].mxu0  ;;  %v2852_v26 = vpop.f32.mrb[9].mxu1 }
 0x113   : > { %v4575_v46 = vadd.f32 %v2804_v7, %v2803_v36  ;;  %v2806_v23 = vpop.f32.mrb[10].mxu0  ;;  %v2853_v33 = vadd.f32 %v2852_v26, %v2851_v24  ;;  %v2854_v28 = vpop.f32.mrb[10].mxu1 }
 0x114   : > { %v2807_v19 = vpop.f32.mrb[11].mxu0  ;;  %v2855_v2 = vpop.f32.mrb[11].mxu1 }
 0x115   : > { %v4578_v4 = vadd.f32 %v2807_v19, %v2806_v23  ;;  %v4581_v25 = vadd.f32 %v2853_v33, %v4536_v29  ;;  %v2856_v63 = vadd.f32 %v2855_v2, %v2854_v28  ;;  %v957_v19 = vld [vmem:[%s4495_s28 + $0x80] sm:$0xff] }
 0x116   : > { %2353 = vmatmul.mubr.bf16.gmra.mrb[116].mxu0 %v4402_v52 }
 0x117   : > { %v4585_v62 = vadd.f32 %v2856_v63, %v4536_v29  ;;  %2360 = vmatprep.mubr.bf16.mxu0 %v979_v56  ;;  %v958_v56 = vld [vmem:[%s4495_s28 + $0x88] sm:$0xff] }
 0x118   : > { %2743 = vmatmul.mubr.msk.bf16.gmra.mrb[116].mxu1 %vm3646_vm4, %v4146_v31  ;;  %v981_v13 = vpack.c.bf16 %v958_v56, %v957_v19 }
 0x119   : > { %v2809_v47 = vpop.f32.mrb[12].mxu0  ;;  %v2857_v49 = vpop.f32.mrb[12].mxu1  ;;  %2199 = vmatprep.mubr.bf16.mxu1 %v4985_v50 }
 0x11a   : > { %v2810_v53 = vpop.f32.mrb[13].mxu0  ;;  %v2858_v36 = vpop.f32.mrb[13].mxu1 }
 0x11b   : > { %v4592_v51 = vadd.f32 %v2810_v53, %v2809_v47  ;;  %v2812_v9 = vpop.f32.mrb[14].mxu0  ;;  %v2859_v6 = vadd.f32 %v2858_v36, %v2857_v49  ;;  %v2860_v24 = vpop.f32.mrb[14].mxu1 }
 0x11c   : > { %v2813_v52 = vpop.f32.mrb[15].mxu0  ;;  %v2861_v26 = vpop.f32.mrb[15].mxu1 }
 0x11d   : > { %v4595_v7 = vadd.f32 %v2813_v52, %v2812_v9  ;;  %v4598_v23 = vadd.f32 %v2859_v6, %v4536_v29  ;;  %v2862_v31 = vadd.f32 %v2861_v26, %v2860_v24  ;;  %v959_v24 = vld [vmem:[%s4495_s28 + $0x90] sm:$0xff]  ;;  %v960_v26 = vld [vmem:[%s4495_s28 + $0x98] sm:$0xff] }
 0x11e   : > { %2361 = vmatmul.mubr.bf16.gmra.mrb[120].mxu0 %v4415_v37 }
 0x11f   : > { %2368 = vmatprep.mubr.bf16.mxu0 %v980_v45  ;;  %v4602_v33 = vadd.f32 %v2862_v31, %v4536_v29 }
 0x120   : > { %2746 = vmatmul.mubr.msk.bf16.gmra.mrb[120].mxu1 %vm3646_vm4, %v4984_v32 }
 0x121   : > { %v2815_v28 = vpop.f32.mrb[16].mxu0  ;;  %v2863_v2 = vpop.f32.mrb[16].mxu1  ;;  %2207 = vmatprep.mubr.bf16.mxu1 %v4987_v55 }
 0x122   : > { %v2816_v50 = vpop.f32.mrb[17].mxu0  ;;  %v2864_v12 = vpop.f32.mrb[17].mxu1 }
 0x123   : > { %v4609_v63 = vadd.f32 %v2816_v50, %v2815_v28  ;;  %v2818_v47 = vpop.f32.mrb[18].mxu0  ;;  %v2865_v53 = vadd.f32 %v2864_v12, %v2863_v2  ;;  %v2866_v49 = vpop.f32.mrb[18].mxu1 }
 0x124   : > { %v2819_v37 = vpop.f32.mrb[19].mxu0  ;;  %v2867_v36 = vpop.f32.mrb[19].mxu1 }
 0x125   : > { %v4612_v9 = vadd.f32 %v2819_v37, %v2818_v47  ;;  %v4615_v52 = vadd.f32 %v2865_v53, %v4536_v29  ;;  %v2868_v32 = vadd.f32 %v2867_v36, %v2866_v49  ;;  %v961_v49 = vld [vmem:[%s4495_s28 + $0xa0] sm:$0xff]  ;;  %v962_v36 = vld [vmem:[%s4495_s28 + $0xa8] sm:$0xff]  ;;  %v1703_v14 = vadd.f32 %v4609_v63, %v4536_v29 }
 0x126   : > { %2369 = vmatmul.mubr.bf16.gmra.mrb[124].mxu0 %v4428_v10  ;;  %v982_v10 = vpack.c.bf16 %v960_v26, %v959_v24  ;;  %v983_v26 = vpack.c.bf16 %v962_v36, %v961_v49 }
 0x127   : > { %2376 = vmatprep.mubr.bf16.mxu0 %v981_v13  ;;  %v4619_v45 = vadd.f32 %v2868_v32, %v4536_v29 }
 0x128   : > { %2749 = vmatmul.mubr.msk.bf16.gmra.mrb[124].mxu1 %vm3646_vm4, %v4986_v11 }
 0x129   : > { %v2821_v6 = vpop.f32.mrb[20].mxu0  ;;  %v2869_v19 = vpop.f32.mrb[20].mxu1  ;;  %2215 = vmatprep.mubr.bf16.mxu1 %v4989_v41 }
 0x12a   : > { %v2822_v55 = vpop.f32.mrb[21].mxu0  ;;  %v2870_v50 = vpop.f32.mrb[21].mxu1 }
 0x12b   : > { %v4626_v31 = vadd.f32 %v2822_v55, %v2821_v6  ;;  %v2824_v28 = vpop.f32.mrb[22].mxu0  ;;  %v2871_v47 = vadd.f32 %v2870_v50, %v2869_v19  ;;  %v2872_v12 = vpop.f32.mrb[22].mxu1 }
 0x12c   : > { %v2825_v56 = vpop.f32.mrb[23].mxu0  ;;  %v2873_v37 = vpop.f32.mrb[23].mxu1 }
 0x12d   : > { %v4629_v2 = vadd.f32 %v2825_v56, %v2824_v28  ;;  %v4633_v11 = vadd.f32 %v2871_v47, %v4536_v29  ;;  %v2874_v13 = vadd.f32 %v2873_v37, %v2872_v12  ;;  %v963_v12 = vld [vmem:[%s4495_s28 + $0xb0] sm:$0xff]  ;;  %v964_v37 = vld [vmem:[%s4495_s28 + $0xb8] sm:$0xff] }
 0x12e   : > { %2377 = vmatmul.mubr.bf16.gmra.mrb[128].mxu0 %v4263_v44  ;;  %v984_v36 = vpack.c.bf16 %v964_v37, %v963_v12 }
 0x12f   : > { %2384 = vmatprep.mubr.bf16.mxu0 %v982_v10  ;;  %v4638_v32 = vadd.f32 %v2874_v13, %v4536_v29 }
 0x130   : > { %2752 = vmatmul.mubr.msk.bf16.gmra.mrb[128].mxu1 %vm3646_vm4, %v4988_v8 }
 0x131   : > { %v2827_v53 = vpop.f32.mrb[24].mxu0  ;;  %2223 = vmatprep.mubr.bf16.mxu1 %v4991_v48 }
 0x132   : > { %v2828_v41 = vpop.f32.mrb[25].mxu0  ;;  %v2875_v55 = vpop.f32.mrb[24].mxu1 }
 0x133   : > { %v4643_v6 = vadd.f32 %v2828_v41, %v2827_v53  ;;  %v2830_v44 = vpop.f32.mrb[26].mxu0  ;;  %v2876_v19 = vpop.f32.mrb[25].mxu1 }
 0x134   : > { %v2831_v24 = vpop.f32.mrb[27].mxu0  ;;  %v2877_v56 = vadd.f32 %v2876_v19, %v2875_v55  ;;  %v2878_v10 = vpop.f32.mrb[26].mxu1 }
 0x135   : > { %v4646_v28 = vadd.f32 %v2831_v24, %v2830_v44  ;;  %v2879_v50 = vpop.f32.mrb[27].mxu1 }
 0x136   : > { %2385 = vmatmul.mubr.bf16.gmra.mrb[132].mxu0 %v4274_v34  ;;  %v4650_v8 = vadd.f32 %v2877_v56, %v4536_v29  ;;  %v2880_v47 = vadd.f32 %v2879_v50, %v2878_v10  ;;  %v966_v10 = vld [vmem:[%s4495_s28 + $0xc8] sm:$0xff] }
 0x137   : > { %2392 = vmatprep.mubr.bf16.mxu0 %v983_v26 }
 0x138   : > { %v4655_v48 = vadd.f32 %v2880_v47, %v4536_v29  ;;  %2755 = vmatmul.mubr.msk.bf16.gmra.mrb[132].mxu1 %vm3646_vm4, %v4990_v54  ;;  %v965_v54 = vld [vmem:[%s4495_s28 + $0xc0] sm:$0xff] }
 0x139   : > { %v2833_v13 = vpop.f32.mrb[28].mxu0  ;;  %2231 = vmatprep.mubr.bf16.mxu1 %v4993_v58 }
 0x13a   : > { %v2834_v53 = vpop.f32.mrb[29].mxu0 }
 0x13b   : > { %v4660_v34 = vadd.f32 %v2834_v53, %v2833_v13  ;;  %v2836_v49 = vpop.f32.mrb[30].mxu0  ;;  %v2881_v44 = vpop.f32.mrb[28].mxu1  ;;  %v985_v53 = vpack.c.bf16 %v966_v10, %v965_v54 }
 0x13c   : > { %v2837_v41 = vpop.f32.mrb[31].mxu0  ;;  %v2882_v26 = vpop.f32.mrb[29].mxu1 }
 0x13d   : > { %v4663_v24 = vadd.f32 %v2837_v41, %v2836_v49  ;;  %v2883_v55 = vadd.f32 %v2882_v26, %v2881_v44  ;;  %v2884_v19 = vpop.f32.mrb[30].mxu1 }
 0x13e   : > { %2393 = vmatmul.mubr.bf16.gmra.mrb[136].mxu0 %v4280_v60  ;;  %v2885_v56 = vpop.f32.mrb[31].mxu1 }
 0x13f   : > { %2400 = vmatprep.mubr.bf16.mxu0 %v984_v36  ;;  %v4669_v50 = vadd.f32 %v2883_v55, %v4536_v29  ;;  %v2886_v47 = vadd.f32 %v2885_v56, %v2884_v19  ;;  %v967_v56 = vld [vmem:[%s4495_s28 + $0xd0] sm:$0xff] }
 0x140   : > { %2758 = vmatmul.mubr.msk.bf16.gmra.mrb[136].mxu1 %vm3646_vm4, %v4992_v59  ;;  %v1671_v59 = vadd.f32 %v4541_v57, %v4536_v29 }
 0x141   : > { %v3015_v13 = vpop.f32.mrb[32].mxu0  ;;  %v4675_v12 = vadd.f32 %v2886_v47, %v4536_v29  ;;  %2239 = vmatprep.mubr.bf16.mxu1 %v4995_v38  ;;  %v968_v47 = vld [vmem:[%s4495_s28 + $0xd8] sm:$0xff] }
 0x142   : > { %v3016_v58 = vpop.f32.mrb[33].mxu0 }
 0x143   : > { %v3017_v60 = vadd.f32 %v3016_v58, %v3015_v13  ;;  %v3018_v37 = vpop.f32.mrb[34].mxu0  ;;  %v2903_v36 = vpop.f32.mrb[32].mxu1  ;;  %v1674_v13 = vadd.f32 %v4547_v42, %v4536_v29 }
 0x144   : > { %v3019_v49 = vpop.f32.mrb[35].mxu0  ;;  %v2904_v44 = vpop.f32.mrb[33].mxu1 }
 0x145   : > { %v3020_v41 = vadd.f32 %v3019_v49, %v3018_v37  ;;  %v2905_v26 = vadd.f32 %v2904_v44, %v2903_v36  ;;  %v2906_v55 = vpop.f32.mrb[34].mxu1  ;;  %v986_v49 = vpack.c.bf16 %v968_v47, %v967_v56 }
 0x146   : > { %2401 = vmatmul.mubr.bf16.gmra.mrb[140].mxu0 %v4297_v35  ;;  %v2907_v19 = vpop.f32.mrb[35].mxu1 }
 0x147   : > { %2408 = vmatprep.mubr.bf16.mxu0 %v985_v53  ;;  %v1832_v38 = vadd.f32 %v2905_v26, %v1671_v59  ;;  %v2908_v54 = vadd.f32 %v2907_v19, %v2906_v55 }
 0x148   : > { %2761 = vmatmul.mubr.msk.bf16.gmra.mrb[140].mxu1 %vm3646_vm4, %v4994_v20  ;;  %v1679_v20 = vadd.f32 %v4558_v39, %v4536_v29 }
 0x149   : > { %v3021_v10 = vpop.f32.mrb[36].mxu0  ;;  %v4688_v58 = vadd.f32 %v3017_v60, %v1832_v38  ;;  %v1835_v57 = vadd.f32 %v2908_v54, %v1674_v13  ;;  %2247 = vmatprep.mubr.bf16.mxu1 %v4997_v18  ;;  %v969_v13 = vld [vmem:[%s4495_s28 + $0xe0] sm:$0xff]  ;;  %v970_v38 = vld [vmem:[%s4495_s28 + $0xe8] sm:$0xff]  ;;  %v1682_v18 = vadd.f32 %v4564_v61, %v4536_v29 }
 0x14a   : > { %v3022_v35 = vpop.f32.mrb[37].mxu0 }
 0x14b   : > { %v3023_v37 = vadd.f32 %v3022_v35, %v3021_v10  ;;  %v3024_v53 = vpop.f32.mrb[38].mxu0  ;;  %v4691_v42 = vadd.f32 %v3020_v41, %v1835_v57  ;;  %v2909_v44 = vpop.f32.mrb[36].mxu1  ;;  %v987_v57 = vpack.c.bf16 %v970_v38, %v969_v13 }
 0x14c   : > { %v3025_v36 = vpop.f32.mrb[39].mxu0  ;;  %v2910_v26 = vpop.f32.mrb[37].mxu1 }
 0x14d   : > { %v3026_v59 = vadd.f32 %v3025_v36, %v3024_v53  ;;  %v2911_v60 = vadd.f32 %v2910_v26, %v2909_v44  ;;  %v2912_v55 = vpop.f32.mrb[38].mxu1 }
 0x14e   : > { %2409 = vmatmul.mubr.bf16.gmra.mrb[144].mxu0 %v4307_v3  ;;  %v2913_v19 = vpop.f32.mrb[39].mxu1 }
 0x14f   : > { %2416 = vmatprep.mubr.bf16.mxu0 %v986_v49  ;;  %v1840_v56 = vadd.f32 %v2911_v60, %v1679_v20  ;;  %v2914_v41 = vadd.f32 %v2913_v19, %v2912_v55  ;;  %v971_v60 = vld [vmem:[%s4495_s28 + $0xf0] sm:$0xff]  ;;  %v972_v55 = vld [vmem:[%s4495_s28 + $0xf8] sm:$0xff] }
 0x150   : > { %2764 = vmatmul.mubr.msk.bf16.gmra.mrb[144].mxu1 %vm3646_vm4, %v4996_v15  ;;  %v1687_v15 = vadd.f32 %v4575_v46, %v4536_v29 }
 0x151   : > { %v3027_v47 = vpop.f32.mrb[40].mxu0  ;;  %v4703_v54 = vadd.f32 %v3023_v37, %v1840_v56  ;;  %v1843_v39 = vadd.f32 %v2914_v41, %v1682_v18  ;;  %2255 = vmatprep.mubr.bf16.mxu1 %v4190_v0  ;;  %v1690_v0 = vadd.f32 %v4578_v4, %v4536_v29  ;;  %v988_v41 = vpack.c.bf16 %v972_v55, %v971_v60 }
 0x152   : > { %v3028_v3 = vpop.f32.mrb[41].mxu0 }
 0x153   : > { %v3029_v10 = vadd.f32 %v3028_v3, %v3027_v47  ;;  %v3030_v35 = vpop.f32.mrb[42].mxu0  ;;  %v4706_v61 = vadd.f32 %v3026_v59, %v1843_v39  ;;  %v2915_v49 = vpop.f32.mrb[40].mxu1 }
 0x154   : > { %v3031_v53 = vpop.f32.mrb[43].mxu0  ;;  %v2916_v44 = vpop.f32.mrb[41].mxu1 }
 0x155   : > { %v3032_v36 = vadd.f32 %v3031_v53, %v3030_v35  ;;  %v2917_v37 = vadd.f32 %v2916_v44, %v2915_v49  ;;  %v2918_v26 = vpop.f32.mrb[42].mxu1  ;;  %v1698_v49 = vadd.f32 %v4595_v7, %v4536_v29 }
 0x156   : > { %2417 = vmatmul.mubr.bf16.gmra.mrb[148].mxu0 %v4318_v1  ;;  %v2919_v20 = vpop.f32.mrb[43].mxu1 }
 0x157   : > { %2424 = vmatprep.mubr.bf16.mxu0 %v987_v57  ;;  %v1848_v19 = vadd.f32 %v2917_v37, %v1687_v15  ;;  %v2920_v59 = vadd.f32 %v2919_v20, %v2918_v26  ;;  %v4998_v20 = vld [vmem:[#allocation2_spill] sm:$0xff] }
 0x158   : > { %2767 = vmatmul.mubr.msk.bf16.gmra.mrb[148].mxu1 %vm3646_vm4, %v4188_v21  ;;  %v1695_v21 = vadd.f32 %v4592_v51, %v4536_v29 }
 0x159   : > { %v3033_v13 = vpop.f32.mrb[44].mxu0  ;;  %v4718_v38 = vadd.f32 %v3029_v10, %v1848_v19  ;;  %v1851_v46 = vadd.f32 %v2920_v59, %v1690_v0  ;;  %2263 = vmatprep.mubr.bf16.mxu1 %v4506_v5 }
 0x15a   : > { %v3034_v1 = vpop.f32.mrb[45].mxu0 }
 0x15b   : > { %v3035_v18 = vadd.f32 %v3034_v1, %v3033_v13  ;;  %v3036_v56 = vpop.f32.mrb[46].mxu0  ;;  %v4721_v3 = vadd.f32 %v3032_v36, %v1851_v46  ;;  %v2921_v4 = vpop.f32.mrb[44].mxu1  ;;  %v1706_v1 = vadd.f32 %v4612_v9, %v4536_v29  ;;  %v1711_v9 = vadd.f32 %v4626_v31, %v4536_v29 }
 0x15c   : > { %v3037_v47 = vpop.f32.mrb[47].mxu0  ;;  %v2922_v35 = vpop.f32.mrb[45].mxu1 }
 0x15d   : > { %v3038_v39 = vadd.f32 %v3037_v47, %v3036_v56  ;;  %v2923_v57 = vadd.f32 %v2922_v35, %v2921_v4  ;;  %v2924_v10 = vpop.f32.mrb[46].mxu1 }
 0x15e   : > { %2425 = vmatmul.mubr.bf16.gmra.mrb[152].mxu0 %v4488_v16  ;;  %v2925_v53 = vpop.f32.mrb[47].mxu1 }
 0x15f   : > { %2432 = vmatprep.mubr.bf16.mxu0 %v988_v41  ;;  %v1856_v5 = vadd.f32 %v2923_v57, %v1695_v21  ;;  %v2926_v44 = vadd.f32 %v2925_v53, %v2924_v10  ;;  %v4999_v41 = vmov 0.0|0.0  }
 0x160   : > { %2770 = vmatmul.mubr.msk.bf16.gmra.mrb[152].mxu1 %vm3646_vm4, %v4498_v40 }
 0x161   : > { %v3039_v15 = vpop.f32.mrb[48].mxu0  ;;  %v4731_v37 = vadd.f32 %v3035_v18, %v1856_v5  ;;  %v1859_v16 = vadd.f32 %v2926_v44, %v1698_v49  ;;  %2271 = vmatprep.mubr.bf16.mxu1 %v4998_v20 }
 0x162   : > { %v3040_v36 = vpop.f32.mrb[49].mxu0 }
 0x163   : > { %v3041_v26 = vadd.f32 %v3040_v36, %v3039_v15  ;;  %v3042_v51 = vpop.f32.mrb[50].mxu0  ;;  %v4734_v55 = vadd.f32 %v3038_v39, %v1859_v16  ;;  %v2927_v0 = vpop.f32.mrb[48].mxu1  ;;  %v1714_v15 = vadd.f32 %v4629_v2, %v4536_v29 }
 0x164   : > { %v3043_v60 = vpop.f32.mrb[51].mxu0  ;;  %v2928_v19 = vpop.f32.mrb[49].mxu1 }
 0x165   : > { %v3044_v7 = vadd.f32 %v3043_v60, %v3042_v51  ;;  %v2929_v40 = vadd.f32 %v2928_v19, %v2927_v0  ;;  %v2930_v59 = vpop.f32.mrb[50].mxu1 }
 0x166   : > { %2433 = vmatmul.mubr.bf16.gmra.mrb[156].mxu0 %v4214_v43  ;;  %v2931_v13 = vpop.f32.mrb[51].mxu1 }
 0x167   : > { %v1864_v46 = vadd.f32 %v2929_v40, %v1703_v14  ;;  %v2932_v18 = vadd.f32 %v2931_v13, %v2930_v59  ;;  %v1719_v13 = vadd.f32 %v4643_v6, %v4536_v29 }
 0x168   : > { %2272 = vmatmul.mubr.bf16.gmra.mrb[156].mxu1 %v4999_v41 }
 0x169   : > { %v3045_v56 = vpop.f32.mrb[52].mxu0  ;;  %v4742_v4 = vadd.f32 %v3041_v26, %v1864_v46  ;;  %v1867_v39 = vadd.f32 %v2932_v18, %v1706_v1  ;;  %v1722_v18 = vadd.f32 %v4646_v28, %v4536_v29 }
 0x16a   : > { %v3046_v47 = vpop.f32.mrb[53].mxu0 }
 0x16b   : > { %v3047_v35 = vadd.f32 %v3046_v47, %v3045_v56  ;;  %v3048_v43 = vpop.f32.mrb[54].mxu0  ;;  %v4744_v57 = vadd.f32 %v3044_v7, %v1867_v39  ;;  %v2933_v63 = vpop.f32.mrb[52].mxu1 }
 0x16c   : > { %v3049_v21 = vpop.f32.mrb[55].mxu0  ;;  %v2934_v53 = vpop.f32.mrb[53].mxu1 }
 0x16d   : > { %v3050_v10 = vadd.f32 %v3049_v21, %v3048_v43  ;;  %v2935_v49 = vadd.f32 %v2934_v53, %v2933_v63  ;;  %v2936_v5 = vpop.f32.mrb[54].mxu1 }
 0x16e   : > { %v2937_v44 = vpop.f32.mrb[55].mxu1 }
 0x16f   : > { %v1872_v36 = vadd.f32 %v2935_v49, %v1711_v9  ;;  %v2938_v16 = vadd.f32 %v2937_v44, %v2936_v5  ;;  %v1727_v5 = vadd.f32 %v4660_v34, %v4536_v29 }
 0x171   : > { %v3051_v26 = vpop.f32.mrb[56].mxu0  ;;  %v4750_v20 = vadd.f32 %v3047_v35, %v1872_v36  ;;  %v1875_v60 = vadd.f32 %v2938_v16, %v1714_v15  ;;  %v1730_v36 = vadd.f32 %v4663_v24, %v4536_v29 }
 0x172   : > { %v3052_v51 = vpop.f32.mrb[57].mxu0 }
 0x173   : > { %v3053_v0 = vadd.f32 %v3052_v51, %v3051_v26  ;;  %v3054_v7 = vpop.f32.mrb[58].mxu0  ;;  %v4752_v14 = vadd.f32 %v3050_v10, %v1875_v60  ;;  %v2939_v40 = vpop.f32.mrb[56].mxu1 }
 0x174   : > { %v3055_v19 = vpop.f32.mrb[59].mxu0  ;;  %v2940_v59 = vpop.f32.mrb[57].mxu1 }
 0x175   : > { %v3056_v31 = vadd.f32 %v3055_v19, %v3054_v7  ;;  %v2941_v1 = vadd.f32 %v2940_v59, %v2939_v40  ;;  %v2942_v2 = vpop.f32.mrb[58].mxu1 }
 0x176   : > { %v2943_v46 = vpop.f32.mrb[59].mxu1 }
 0x177   : > { %v1880_v56 = vadd.f32 %v2941_v1, %v1719_v13  ;;  %v2944_v41 = vadd.f32 %v2943_v46, %v2942_v2 }
 0x179   : > { %v3057_v47 = vpop.f32.mrb[60].mxu0  ;;  %v4758_v35 = vadd.f32 %v3053_v0, %v1880_v56  ;;  %v1883_v43 = vadd.f32 %v2944_v41, %v1722_v18 }
 0x17a   : > { %v3058_v39 = vpop.f32.mrb[61].mxu0 }
 0x17b   : > { %v3059_v21 = vadd.f32 %v3058_v39, %v3057_v47  ;;  %v3060_v63 = vpop.f32.mrb[62].mxu0  ;;  %v4760_v53 = vadd.f32 %v3056_v31, %v1883_v43  ;;  %v2945_v9 = vpop.f32.mrb[60].mxu1 }
 0x17c   : > { %v3061_v10 = vpop.f32.mrb[63].mxu0  ;;  %v2946_v49 = vpop.f32.mrb[61].mxu1 }
 0x17d   : > { %v3062_v6 = vadd.f32 %v3061_v10, %v3060_v63  ;;  %v2947_v44 = vadd.f32 %v2946_v49, %v2945_v9  ;;  %v2948_v28 = vpop.f32.mrb[62].mxu1 }
 0x17e   : > { %v2949_v15 = vpop.f32.mrb[63].mxu1 }
 0x17f   : > { %v1888_v16 = vadd.f32 %v2947_v44, %v1727_v5  ;;  %v2950_v26 = vadd.f32 %v2949_v15, %v2948_v28 }
 0x181   : > { %v3063_v51 = vpop.f32.mrb[64].mxu0  ;;  %v4766_v0 = vadd.f32 %v3059_v21, %v1888_v16  ;;  %v1891_v7 = vadd.f32 %v2950_v26, %v1730_v36 }
 0x182   : > { %v3064_v60 = vpop.f32.mrb[65].mxu0 }
 0x183   : > { %v3065_v19 = vadd.f32 %v3064_v60, %v3063_v51  ;;  %v3066_v40 = vpop.f32.mrb[66].mxu0  ;;  %v4768_v59 = vadd.f32 %v3062_v6, %v1891_v7  ;;  %v2951_v13 = vpop.f32.mrb[64].mxu1 }
 0x184   : > { %v3067_v31 = vpop.f32.mrb[67].mxu0  ;;  %v2952_v1 = vpop.f32.mrb[65].mxu1 }
 0x185   : > { %v3068_v34 = vadd.f32 %v3067_v31, %v3066_v40  ;;  %v2953_v2 = vadd.f32 %v2952_v1, %v2951_v13  ;;  %v2954_v46 = vpop.f32.mrb[66].mxu1 }
 0x186   : > { %v2955_v18 = vpop.f32.mrb[67].mxu1 }
 0x187   : > { %v1896_v29 = vadd.f32 %v2953_v2, %v4545_v27  ;;  %v2956_v24 = vadd.f32 %v2955_v18, %v2954_v46 }
 0x189   : > { %v3069_v56 = vpop.f32.mrb[68].mxu0  ;;  %v4771_v47 = vadd.f32 %v3065_v19, %v1896_v29  ;;  %v1899_v39 = vadd.f32 %v2956_v24, %v4550_v22 }
 0x18a   : > { %v3070_v41 = vpop.f32.mrb[69].mxu0 }
 0x18b   : > { %v3071_v43 = vadd.f32 %v3070_v41, %v3069_v56  ;;  %v3072_v21 = vpop.f32.mrb[70].mxu0  ;;  %v4774_v10 = vadd.f32 %v3068_v34, %v1899_v39  ;;  %v2957_v9 = vpop.f32.mrb[68].mxu1 }
 0x18c   : > { %v3073_v63 = vpop.f32.mrb[71].mxu0  ;;  %v2958_v49 = vpop.f32.mrb[69].mxu1 }
 0x18d   : > { %v3074_v6 = vadd.f32 %v3073_v63, %v3072_v21  ;;  %v2959_v5 = vadd.f32 %v2958_v49, %v2957_v9  ;;  %v2960_v44 = vpop.f32.mrb[70].mxu1 }
 0x18e   : > { %v2961_v28 = vpop.f32.mrb[71].mxu1 }
 0x18f   : > { %v1904_v27 = vadd.f32 %v2959_v5, %v4562_v17  ;;  %v2962_v15 = vadd.f32 %v2961_v28, %v2960_v44 }
 0x191   : > { %v3075_v36 = vpop.f32.mrb[72].mxu0  ;;  %v4777_v26 = vadd.f32 %v3071_v43, %v1904_v27  ;;  %v1907_v22 = vadd.f32 %v2962_v15, %v4567_v30 }
 0x192   : > { %v3076_v16 = vpop.f32.mrb[73].mxu0 }
 0x193   : > { %v3077_v51 = vadd.f32 %v3076_v16, %v3075_v36  ;;  %v3078_v60 = vpop.f32.mrb[74].mxu0  ;;  %v4780_v19 = vadd.f32 %v3074_v6, %v1907_v22  ;;  %v2963_v40 = vpop.f32.mrb[72].mxu1 }
 0x194   : > { %v3079_v7 = vpop.f32.mrb[75].mxu0  ;;  %v2964_v13 = vpop.f32.mrb[73].mxu1 }
 0x195   : > { %v3080_v31 = vadd.f32 %v3079_v7, %v3078_v60  ;;  %v2965_v34 = vadd.f32 %v2964_v13, %v2963_v40  ;;  %v2966_v1 = vpop.f32.mrb[74].mxu1 }
 0x196   : > { %v2967_v2 = vpop.f32.mrb[75].mxu1 }
 0x197   : > { %v1912_v17 = vadd.f32 %v2965_v34, %v4581_v25  ;;  %v2968_v46 = vadd.f32 %v2967_v2, %v2966_v1 }
 0x199   : > { %v3081_v18 = vpop.f32.mrb[76].mxu0  ;;  %v4783_v24 = vadd.f32 %v3077_v51, %v1912_v17  ;;  %v1915_v30 = vadd.f32 %v2968_v46, %v4585_v62 }
 0x19a   : > { %v3082_v29 = vpop.f32.mrb[77].mxu0 }
 0x19b   : > { %v3083_v56 = vadd.f32 %v3082_v29, %v3081_v18  ;;  %v3084_v41 = vpop.f32.mrb[78].mxu0  ;;  %v4786_v43 = vadd.f32 %v3080_v31, %v1915_v30  ;;  %v2969_v21 = vpop.f32.mrb[76].mxu1 }
 0x19c   : > { %v3085_v39 = vpop.f32.mrb[79].mxu0  ;;  %v2970_v9 = vpop.f32.mrb[77].mxu1 }
 0x19d   : > { %v3086_v63 = vadd.f32 %v3085_v39, %v3084_v41  ;;  %v2971_v6 = vadd.f32 %v2970_v9, %v2969_v21  ;;  %v2972_v49 = vpop.f32.mrb[78].mxu1 }
 0x19e   : > { %v2973_v5 = vpop.f32.mrb[79].mxu1 }
 0x19f   : > { %v1920_v25 = vadd.f32 %v2971_v6, %v4598_v23  ;;  %v2974_v44 = vadd.f32 %v2973_v5, %v2972_v49 }
 0x1a1   : > { %v3087_v28 = vpop.f32.mrb[80].mxu0  ;;  %v4789_v15 = vadd.f32 %v3083_v56, %v1920_v25  ;;  %v1923_v62 = vadd.f32 %v2974_v44, %v4602_v33 }
 0x1a2   : > { %v3088_v27 = vpop.f32.mrb[81].mxu0 }
 0x1a3   : > { %v3089_v36 = vadd.f32 %v3088_v27, %v3087_v28  ;;  %v3090_v16 = vpop.f32.mrb[82].mxu0  ;;  %v4792_v51 = vadd.f32 %v3086_v63, %v1923_v62  ;;  %v2975_v60 = vpop.f32.mrb[80].mxu1 }
 0x1a4   : > { %v3091_v22 = vpop.f32.mrb[83].mxu0  ;;  %v2976_v40 = vpop.f32.mrb[81].mxu1 }
 0x1a5   : > { %v3092_v7 = vadd.f32 %v3091_v22, %v3090_v16  ;;  %v2977_v31 = vadd.f32 %v2976_v40, %v2975_v60  ;;  %v2978_v13 = vpop.f32.mrb[82].mxu1 }
 0x1a6   : > { %v2979_v34 = vpop.f32.mrb[83].mxu1 }
 0x1a7   : > { %v1928_v23 = vadd.f32 %v2977_v31, %v4615_v52  ;;  %v2980_v1 = vadd.f32 %v2979_v34, %v2978_v13 }
 0x1a9   : > { %v3093_v2 = vpop.f32.mrb[84].mxu0  ;;  %v4795_v46 = vadd.f32 %v3089_v36, %v1928_v23  ;;  %v1931_v33 = vadd.f32 %v2980_v1, %v4619_v45 }
 0x1aa   : > { %v3094_v17 = vpop.f32.mrb[85].mxu0 }
 0x1ab   : > { %v3095_v18 = vadd.f32 %v3094_v17, %v3093_v2  ;;  %v3096_v29 = vpop.f32.mrb[86].mxu0  ;;  %v4798_v56 = vadd.f32 %v3092_v7, %v1931_v33  ;;  %v2981_v41 = vpop.f32.mrb[84].mxu1 }
 0x1ac   : > { %v3097_v30 = vpop.f32.mrb[87].mxu0  ;;  %v2982_v21 = vpop.f32.mrb[85].mxu1 }
 0x1ad   : > { %v3098_v39 = vadd.f32 %v3097_v30, %v3096_v29  ;;  %v2983_v63 = vadd.f32 %v2982_v21, %v2981_v41  ;;  %v2984_v9 = vpop.f32.mrb[86].mxu1 }
 0x1ae   : > { %v2985_v6 = vpop.f32.mrb[87].mxu1 }
 0x1af   : > { %v1936_v52 = vadd.f32 %v2983_v63, %v4633_v11  ;;  %v2986_v49 = vadd.f32 %v2985_v6, %v2984_v9 }
 0x1b1   : > { %v3099_v5 = vpop.f32.mrb[88].mxu0  ;;  %v4801_v44 = vadd.f32 %v3095_v18, %v1936_v52  ;;  %v1939_v45 = vadd.f32 %v2986_v49, %v4638_v32 }
 0x1b2   : > { %v3100_v25 = vpop.f32.mrb[89].mxu0 }
 0x1b3   : > { %v3101_v28 = vadd.f32 %v3100_v25, %v3099_v5  ;;  %v3102_v27 = vpop.f32.mrb[90].mxu0  ;;  %v4804_v36 = vadd.f32 %v3098_v39, %v1939_v45  ;;  %v2987_v16 = vpop.f32.mrb[88].mxu1 }
 0x1b4   : > { %v3103_v62 = vpop.f32.mrb[91].mxu0  ;;  %v2988_v60 = vpop.f32.mrb[89].mxu1 }
 0x1b5   : > { %v3104_v22 = vadd.f32 %v3103_v62, %v3102_v27  ;;  %v2989_v7 = vadd.f32 %v2988_v60, %v2987_v16  ;;  %v2990_v40 = vpop.f32.mrb[90].mxu1 }
 0x1b6   : > { %v2991_v31 = vpop.f32.mrb[91].mxu1 }
 0x1b7   : > { %v1944_v11 = vadd.f32 %v2989_v7, %v4650_v8  ;;  %v2992_v13 = vadd.f32 %v2991_v31, %v2990_v40 }
 0x1b9   : > { %v3105_v34 = vpop.f32.mrb[92].mxu0  ;;  %v4807_v1 = vadd.f32 %v3101_v28, %v1944_v11  ;;  %v1947_v32 = vadd.f32 %v2992_v13, %v4655_v48 }
 0x1ba   : > { %v3106_v23 = vpop.f32.mrb[93].mxu0 }
 0x1bb   : > { %v3107_v2 = vadd.f32 %v3106_v23, %v3105_v34  ;;  %v3108_v17 = vpop.f32.mrb[94].mxu0  ;;  %v4810_v18 = vadd.f32 %v3104_v22, %v1947_v32  ;;  %v2993_v29 = vpop.f32.mrb[92].mxu1 }
 0x1bc   : > { %v3109_v33 = vpop.f32.mrb[95].mxu0  ;;  %v2994_v41 = vpop.f32.mrb[93].mxu1 }
 0x1bd   : > { %v3110_v30 = vadd.f32 %v3109_v33, %v3108_v17  ;;  %v2995_v39 = vadd.f32 %v2994_v41, %v2993_v29  ;;  %v2996_v21 = vpop.f32.mrb[94].mxu1 }
 0x1be   : > { %v2997_v63 = vpop.f32.mrb[95].mxu1 }
 0x1bf   : > { %v1952_v8 = vadd.f32 %v2995_v39, %v4669_v50  ;;  %v2998_v9 = vadd.f32 %v2997_v63, %v2996_v21 }
 0x1c1   : > { %v3239_v6 = vpop.f32.mrb[96].mxu0  ;;  %v4813_v49 = vadd.f32 %v3107_v2, %v1952_v8  ;;  %v1955_v48 = vadd.f32 %v2998_v9, %v4675_v12 }
 0x1c2   : > { %v3240_v52 = vpop.f32.mrb[97].mxu0 }
 0x1c3   : > { %v3241_v5 = vadd.f32 %v3240_v52, %v3239_v6  ;;  %v3242_v25 = vpop.f32.mrb[98].mxu0  ;;  %v4816_v28 = vadd.f32 %v3110_v30, %v1955_v48  ;;  %v3127_v27 = vpop.f32.mrb[96].mxu1 }
 0x1c4   : > { %v3243_v45 = vpop.f32.mrb[99].mxu0  ;;  %v3128_v16 = vpop.f32.mrb[97].mxu1 }
 0x1c5   : > { %v3244_v62 = vadd.f32 %v3243_v45, %v3242_v25  ;;  %v3129_v22 = vadd.f32 %v3128_v16, %v3127_v27  ;;  %v3130_v60 = vpop.f32.mrb[98].mxu1 }
 0x1c6   : > { %v3131_v7 = vpop.f32.mrb[99].mxu1 }
 0x1c7   : > { %v2154_v50 = vadd.f32 %v3129_v22, %v4688_v58  ;;  %v3132_v40 = vadd.f32 %v3131_v7, %v3130_v60 }
 0x1c9   : > { %v3245_v31 = vpop.f32.mrb[100].mxu0  ;;  %v2315_v11 = vadd.f32 %v3241_v5, %v2154_v50  ;;  %v2157_v13 = vadd.f32 %v3132_v40, %v4691_v42 }
 0x1ca   : > { %v3246_v12 = vpop.f32.mrb[101].mxu0 }
 0x1cb   : > { %v3247_v34 = vadd.f32 %v3246_v12, %v3245_v31  ;;  %v3248_v23 = vpop.f32.mrb[102].mxu0  ;;  %2441 = vst [vmem:[%s4824_s9] sm:$0xff] %v2315_v11  ;;  %v2318_v2 = vadd.f32 %v3244_v62, %v2157_v13  ;;  %v3133_v58 = vpop.f32.mrb[100].mxu1 }
 0x1cc   : > { %v3249_v32 = vpop.f32.mrb[103].mxu0  ;;  %v3134_v33 = vpop.f32.mrb[101].mxu1 }
 0x1cd   : > { %v3250_v17 = vadd.f32 %v3249_v32, %v3248_v23  ;;  %2442 = vst [vmem:[%s4824_s9 + $0x8] sm:$0xff] %v2318_v2  ;;  %v3135_v29 = vadd.f32 %v3134_v33, %v3133_v58  ;;  %v3136_v30 = vpop.f32.mrb[102].mxu1 }
 0x1ce   : > { %v3137_v41 = vpop.f32.mrb[103].mxu1 }
 0x1cf   : > { %v2162_v39 = vadd.f32 %v3135_v29, %v4703_v54  ;;  %v3138_v21 = vadd.f32 %v3137_v41, %v3136_v30 }
 0x1d1   : > { %v3251_v63 = vpop.f32.mrb[104].mxu0  ;;  %v2323_v42 = vadd.f32 %v3247_v34, %v2162_v39  ;;  %v2165_v9 = vadd.f32 %v3138_v21, %v4706_v61 }
 0x1d2   : > { %v3252_v8 = vpop.f32.mrb[105].mxu0 }
 0x1d3   : > { %v3253_v6 = vadd.f32 %v3252_v8, %v3251_v63  ;;  %v3254_v52 = vpop.f32.mrb[106].mxu0  ;;  %2443 = vst [vmem:[%s4824_s9 + $0x10] sm:$0xff] %v2323_v42  ;;  %v2326_v5 = vadd.f32 %v3250_v17, %v2165_v9  ;;  %v3139_v25 = vpop.f32.mrb[104].mxu1 }
 0x1d4   : > { %v3255_v48 = vpop.f32.mrb[107].mxu0  ;;  %v3140_v27 = vpop.f32.mrb[105].mxu1 }
 0x1d5   : > { %v3256_v45 = vadd.f32 %v3255_v48, %v3254_v52  ;;  %2444 = vst [vmem:[%s4824_s9 + $0x18] sm:$0xff] %v2326_v5  ;;  %v3141_v62 = vadd.f32 %v3140_v27, %v3139_v25  ;;  %v3142_v16 = vpop.f32.mrb[106].mxu1 }
 0x1d6   : > { %v3143_v54 = vpop.f32.mrb[107].mxu1 }
 0x1d7   : > { %v2170_v22 = vadd.f32 %v3141_v62, %v4718_v38  ;;  %v3144_v60 = vadd.f32 %v3143_v54, %v3142_v16 }
 0x1d9   : > { %v3257_v7 = vpop.f32.mrb[108].mxu0  ;;  %v2331_v61 = vadd.f32 %v3253_v6, %v2170_v22  ;;  %v2173_v40 = vadd.f32 %v3144_v60, %v4721_v3 }
 0x1da   : > { %v3258_v50 = vpop.f32.mrb[109].mxu0 }
 0x1db   : > { %v3259_v31 = vadd.f32 %v3258_v50, %v3257_v7  ;;  %v3260_v12 = vpop.f32.mrb[110].mxu0  ;;  %2445 = vst [vmem:[%s4824_s9 + $0x20] sm:$0xff] %v2331_v61  ;;  %v2334_v13 = vadd.f32 %v3256_v45, %v2173_v40  ;;  %v3145_v34 = vpop.f32.mrb[108].mxu1 }
 0x1dc   : > { %v3261_v11 = vpop.f32.mrb[111].mxu0  ;;  %v3146_v32 = vpop.f32.mrb[109].mxu1 }
 0x1dd   : > { %v3262_v23 = vadd.f32 %v3261_v11, %v3260_v12  ;;  %2446 = vst [vmem:[%s4824_s9 + $0x28] sm:$0xff] %v2334_v13  ;;  %v3147_v2 = vadd.f32 %v3146_v32, %v3145_v34  ;;  %v3148_v58 = vpop.f32.mrb[110].mxu1 }
 0x1de   : > { %v3149_v38 = vpop.f32.mrb[111].mxu1 }
 0x1df   : > { %v2178_v17 = vadd.f32 %v3147_v2, %v4731_v37  ;;  %v3150_v33 = vadd.f32 %v3149_v38, %v3148_v58 }
 0x1e1   : > { %v3263_v29 = vpop.f32.mrb[112].mxu0  ;;  %v2339_v3 = vadd.f32 %v3259_v31, %v2178_v17  ;;  %v2181_v41 = vadd.f32 %v3150_v33, %v4734_v55 }
 0x1e2   : > { %v3264_v30 = vpop.f32.mrb[113].mxu0 }
 0x1e3   : > { %v3265_v39 = vadd.f32 %v3264_v30, %v3263_v29  ;;  %v3266_v21 = vpop.f32.mrb[114].mxu0  ;;  %2447 = vst [vmem:[%s4824_s9 + $0x30] sm:$0xff] %v2339_v3  ;;  %v2342_v8 = vadd.f32 %v3262_v23, %v2181_v41  ;;  %v3151_v42 = vpop.f32.mrb[112].mxu1 }
 0x1e4   : > { %v3267_v63 = vpop.f32.mrb[115].mxu0  ;;  %v3152_v6 = vpop.f32.mrb[113].mxu1 }
 0x1e5   : > { %v3268_v9 = vadd.f32 %v3267_v63, %v3266_v21  ;;  %2448 = vst [vmem:[%s4824_s9 + $0x38] sm:$0xff] %v2342_v8  ;;  %v3153_v52 = vadd.f32 %v3152_v6, %v3151_v42  ;;  %v3154_v48 = vpop.f32.mrb[114].mxu1 }
 0x1e6   : > { %v3155_v37 = vpop.f32.mrb[115].mxu1 }
 0x1e7   : > { %v2186_v5 = vadd.f32 %v3153_v52, %v4742_v4  ;;  %v3156_v25 = vadd.f32 %v3155_v37, %v3154_v48 }
 0x1e9   : > { %v3269_v45 = vpop.f32.mrb[116].mxu0  ;;  %v2347_v55 = vadd.f32 %v3265_v39, %v2186_v5  ;;  %v2189_v62 = vadd.f32 %v3156_v25, %v4744_v57 }
 0x1ea   : > { %v3270_v27 = vpop.f32.mrb[117].mxu0 }
 0x1eb   : > { %v3271_v16 = vadd.f32 %v3270_v27, %v3269_v45  ;;  %v3272_v54 = vpop.f32.mrb[118].mxu0  ;;  %2449 = vst [vmem:[%s4824_s9 + $0x40] sm:$0xff] %v2347_v55  ;;  %v2350_v60 = vadd.f32 %v3268_v9, %v2189_v62  ;;  %v3157_v7 = vpop.f32.mrb[116].mxu1 }
 0x1ec   : > { %v3273_v22 = vpop.f32.mrb[119].mxu0  ;;  %v3158_v61 = vpop.f32.mrb[117].mxu1 }
 0x1ed   : > { %v3274_v50 = vadd.f32 %v3273_v22, %v3272_v54  ;;  %2450 = vst [vmem:[%s4824_s9 + $0x48] sm:$0xff] %v2350_v60  ;;  %v3159_v40 = vadd.f32 %v3158_v61, %v3157_v7  ;;  %v3160_v31 = vpop.f32.mrb[118].mxu1 }
 0x1ee   : > { %v3161_v4 = vpop.f32.mrb[119].mxu1 }
 0x1ef   : > { %v2194_v12 = vadd.f32 %v3159_v40, %v4750_v20  ;;  %v3162_v11 = vadd.f32 %v3161_v4, %v3160_v31 }
 0x1f1   : > { %v3275_v13 = vpop.f32.mrb[120].mxu0  ;;  %v2355_v57 = vadd.f32 %v3271_v16, %v2194_v12  ;;  %v2197_v23 = vadd.f32 %v3162_v11, %v4752_v14 }
 0x1f2   : > { %v3276_v34 = vpop.f32.mrb[121].mxu0 }
 0x1f3   : > { %v3277_v32 = vadd.f32 %v3276_v34, %v3275_v13  ;;  %v3278_v2 = vpop.f32.mrb[122].mxu0  ;;  %2451 = vst [vmem:[%s4824_s9 + $0x50] sm:$0xff] %v2355_v57  ;;  %v2358_v38 = vadd.f32 %v3274_v50, %v2197_v23  ;;  %v3163_v17 = vpop.f32.mrb[120].mxu1 }
 0x1f4   : > { %v3279_v58 = vpop.f32.mrb[123].mxu0  ;;  %v3164_v29 = vpop.f32.mrb[121].mxu1 }
 0x1f5   : > { %v3280_v33 = vadd.f32 %v3279_v58, %v3278_v2  ;;  %2452 = vst [vmem:[%s4824_s9 + $0x58] sm:$0xff] %v2358_v38  ;;  %v3165_v30 = vadd.f32 %v3164_v29, %v3163_v17  ;;  %v3166_v3 = vpop.f32.mrb[122].mxu1 }
 0x1f6   : > { %v3167_v20 = vpop.f32.mrb[123].mxu1 }
 0x1f7   : > { %v2202_v41 = vadd.f32 %v3165_v30, %v4758_v35  ;;  %v3168_v39 = vadd.f32 %v3167_v20, %v3166_v3 }
 0x1f9   : > { %v3281_v21 = vpop.f32.mrb[124].mxu0  ;;  %v2363_v14 = vadd.f32 %v3277_v32, %v2202_v41  ;;  %v2205_v8 = vadd.f32 %v3168_v39, %v4760_v53 }
 0x1fa   : > { %v3282_v63 = vpop.f32.mrb[125].mxu0 }
 0x1fb   : > { %v3283_v42 = vadd.f32 %v3282_v63, %v3281_v21  ;;  %v3284_v9 = vpop.f32.mrb[126].mxu0  ;;  %2453 = vst [vmem:[%s4824_s9 + $0x60] sm:$0xff] %v2363_v14  ;;  %v2366_v52 = vadd.f32 %v3280_v33, %v2205_v8  ;;  %v3169_v48 = vpop.f32.mrb[124].mxu1 }
 0x1fc   : > { %v3285_v6 = vpop.f32.mrb[127].mxu0  ;;  %v3170_v5 = vpop.f32.mrb[125].mxu1 }
 0x1fd   : > { %v3286_v37 = vadd.f32 %v3285_v6, %v3284_v9  ;;  %2454 = vst [vmem:[%s4824_s9 + $0x68] sm:$0xff] %v2366_v52  ;;  %v3171_v25 = vadd.f32 %v3170_v5, %v3169_v48  ;;  %v3172_v45 = vpop.f32.mrb[126].mxu1 }
 0x1fe   : > { %v3173_v35 = vpop.f32.mrb[127].mxu1 }
 0x1ff   : > { %v2210_v27 = vadd.f32 %v3171_v25, %v4766_v0  ;;  %v3174_v55 = vadd.f32 %v3173_v35, %v3172_v45 }
 0x201   : > { %v3287_v62 = vpop.f32.mrb[128].mxu0  ;;  %v2371_v53 = vadd.f32 %v3283_v42, %v2210_v27  ;;  %v2213_v54 = vadd.f32 %v3174_v55, %v4768_v59 }
 0x202   : > { %v3288_v16 = vpop.f32.mrb[129].mxu0 }
 0x203   : > { %v3289_v22 = vadd.f32 %v3288_v16, %v3287_v62  ;;  %v3290_v60 = vpop.f32.mrb[130].mxu0  ;;  %2455 = vst [vmem:[%s4824_s9 + $0x70] sm:$0xff] %v2371_v53  ;;  %v2374_v50 = vadd.f32 %v3286_v37, %v2213_v54  ;;  %v3175_v61 = vpop.f32.mrb[128].mxu1 }
 0x204   : > { %v3291_v7 = vpop.f32.mrb[131].mxu0  ;;  %v3176_v31 = vpop.f32.mrb[129].mxu1 }
 0x205   : > { %v3292_v40 = vadd.f32 %v3291_v7, %v3290_v60  ;;  %2456 = vst [vmem:[%s4824_s9 + $0x78] sm:$0xff] %v2374_v50  ;;  %v3177_v4 = vadd.f32 %v3176_v31, %v3175_v61  ;;  %v3178_v12 = vpop.f32.mrb[130].mxu1 }
 0x206   : > { %v3179_v0 = vpop.f32.mrb[131].mxu1 }
 0x207   : > { %v2218_v11 = vadd.f32 %v3177_v4, %v4771_v47  ;;  %v3180_v13 = vadd.f32 %v3179_v0, %v3178_v12 }
 0x209   : > { %v3293_v34 = vpop.f32.mrb[132].mxu0  ;;  %v2379_v59 = vadd.f32 %v3289_v22, %v2218_v11  ;;  %v2221_v23 = vadd.f32 %v3180_v13, %v4774_v10 }
 0x20a   : > { %v3294_v57 = vpop.f32.mrb[133].mxu0 }
 0x20b   : > { %v3295_v32 = vadd.f32 %v3294_v57, %v3293_v34  ;;  %v3296_v2 = vpop.f32.mrb[134].mxu0  ;;  %2457 = vst [vmem:[%s4824_s9 + $0x80] sm:$0xff] %v2379_v59  ;;  %v2382_v38 = vadd.f32 %v3292_v40, %v2221_v23  ;;  %v3181_v17 = vpop.f32.mrb[132].mxu1 }
 0x20c   : > { %v3297_v58 = vpop.f32.mrb[135].mxu0  ;;  %v3182_v29 = vpop.f32.mrb[133].mxu1 }
 0x20d   : > { %v3298_v33 = vadd.f32 %v3297_v58, %v3296_v2  ;;  %2458 = vst [vmem:[%s4824_s9 + $0x88] sm:$0xff] %v2382_v38  ;;  %v3183_v30 = vadd.f32 %v3182_v29, %v3181_v17  ;;  %v3184_v3 = vpop.f32.mrb[134].mxu1 }
 0x20e   : > { %v3185_v47 = vpop.f32.mrb[135].mxu1 }
 0x20f   : > { %v2226_v20 = vadd.f32 %v3183_v30, %v4777_v26  ;;  %v3186_v41 = vadd.f32 %v3185_v47, %v3184_v3 }
 0x211   : > { %v3299_v39 = vpop.f32.mrb[136].mxu0  ;;  %v2387_v10 = vadd.f32 %v3295_v32, %v2226_v20  ;;  %v2229_v63 = vadd.f32 %v3186_v41, %v4780_v19 }
 0x212   : > { %v3300_v21 = vpop.f32.mrb[137].mxu0 }
 0x213   : > { %v3301_v14 = vadd.f32 %v3300_v21, %v3299_v39  ;;  %v3302_v8 = vpop.f32.mrb[138].mxu0  ;;  %2459 = vst [vmem:[%s4824_s9 + $0x90] sm:$0xff] %v2387_v10  ;;  %v2390_v9 = vadd.f32 %v3298_v33, %v2229_v63  ;;  %v3187_v6 = vpop.f32.mrb[136].mxu1 }
 0x214   : > { %v3303_v42 = vpop.f32.mrb[139].mxu0  ;;  %v3188_v48 = vpop.f32.mrb[137].mxu1 }
 0x215   : > { %v3304_v52 = vadd.f32 %v3303_v42, %v3302_v8  ;;  %2460 = vst [vmem:[%s4824_s9 + $0x98] sm:$0xff] %v2390_v9  ;;  %v3189_v37 = vadd.f32 %v3188_v48, %v3187_v6  ;;  %v3190_v5 = vpop.f32.mrb[138].mxu1 }
 0x216   : > { %v3191_v26 = vpop.f32.mrb[139].mxu1 }
 0x217   : > { %v2234_v25 = vadd.f32 %v3189_v37, %v4783_v24  ;;  %v3192_v45 = vadd.f32 %v3191_v26, %v3190_v5 }
 0x219   : > { %v3305_v35 = vpop.f32.mrb[140].mxu0  ;;  %v2395_v19 = vadd.f32 %v3301_v14, %v2234_v25  ;;  %v2237_v55 = vadd.f32 %v3192_v45, %v4786_v43 }
 0x21a   : > { %v3306_v27 = vpop.f32.mrb[141].mxu0 }
 0x21b   : > { %v3307_v62 = vadd.f32 %v3306_v27, %v3305_v35  ;;  %v3308_v16 = vpop.f32.mrb[142].mxu0  ;;  %2461 = vst [vmem:[%s4824_s9 + $0xa0] sm:$0xff] %v2395_v19  ;;  %v2398_v54 = vadd.f32 %v3304_v52, %v2237_v55  ;;  %v3193_v22 = vpop.f32.mrb[140].mxu1 }
 0x21c   : > { %v3309_v53 = vpop.f32.mrb[143].mxu0  ;;  %v3194_v7 = vpop.f32.mrb[141].mxu1 }
 0x21d   : > { %v3310_v60 = vadd.f32 %v3309_v53, %v3308_v16  ;;  %2462 = vst [vmem:[%s4824_s9 + $0xa8] sm:$0xff] %v2398_v54  ;;  %v3195_v50 = vadd.f32 %v3194_v7, %v3193_v22  ;;  %v3196_v61 = vpop.f32.mrb[142].mxu1 }
 0x21e   : > { %v3197_v24 = vpop.f32.mrb[143].mxu1 }
 0x21f   : > { %v2242_v40 = vadd.f32 %v3195_v50, %v4789_v15  ;;  %v3198_v31 = vadd.f32 %v3197_v24, %v3196_v61 }
 0x221   : > { %v3311_v4 = vpop.f32.mrb[144].mxu0  ;;  %v2403_v43 = vadd.f32 %v3307_v62, %v2242_v40  ;;  %v2245_v0 = vadd.f32 %v3198_v31, %v4792_v51 }
 0x222   : > { %v3312_v12 = vpop.f32.mrb[145].mxu0 }
 0x223   : > { %v3313_v11 = vadd.f32 %v3312_v12, %v3311_v4  ;;  %v3314_v13 = vpop.f32.mrb[146].mxu0  ;;  %2463 = vst [vmem:[%s4824_s9 + $0xb0] sm:$0xff] %v2403_v43  ;;  %v2406_v57 = vadd.f32 %v3310_v60, %v2245_v0  ;;  %v3199_v59 = vpop.f32.mrb[144].mxu1 }
 0x224   : > { %v3315_v34 = vpop.f32.mrb[147].mxu0  ;;  %v3200_v32 = vpop.f32.mrb[145].mxu1 }
 0x225   : > { %v3316_v23 = vadd.f32 %v3315_v34, %v3314_v13  ;;  %2464 = vst [vmem:[%s4824_s9 + $0xb8] sm:$0xff] %v2406_v57  ;;  %v3201_v2 = vadd.f32 %v3200_v32, %v3199_v59  ;;  %v3202_v58 = vpop.f32.mrb[146].mxu1 }
 0x226   : > { %v3203_v15 = vpop.f32.mrb[147].mxu1 }
 0x227   : > { %v2250_v38 = vadd.f32 %v3201_v2, %v4795_v46  ;;  %v3204_v17 = vadd.f32 %v3203_v15, %v3202_v58 }
 0x229   : > { %v3317_v33 = vpop.f32.mrb[148].mxu0  ;;  %v2411_v51 = vadd.f32 %v3313_v11, %v2250_v38  ;;  %v2253_v30 = vadd.f32 %v3204_v17, %v4798_v56 }
 0x22a   : > { %v3318_v29 = vpop.f32.mrb[149].mxu0 }
 0x22b   : > { %v3319_v3 = vadd.f32 %v3318_v29, %v3317_v33  ;;  %v3320_v47 = vpop.f32.mrb[150].mxu0  ;;  %2465 = vst [vmem:[%s4824_s9 + $0xc0] sm:$0xff] %v2411_v51  ;;  %v2414_v41 = vadd.f32 %v3316_v23, %v2253_v30  ;;  %v3205_v39 = vpop.f32.mrb[148].mxu1 }
 0x22c   : > { %v3321_v20 = vpop.f32.mrb[151].mxu0  ;;  %v3206_v10 = vpop.f32.mrb[149].mxu1 }
 0x22d   : > { %v3322_v21 = vadd.f32 %v3321_v20, %v3320_v47  ;;  %2466 = vst [vmem:[%s4824_s9 + $0xc8] sm:$0xff] %v2414_v41  ;;  %v3207_v63 = vadd.f32 %v3206_v10, %v3205_v39  ;;  %v3208_v14 = vpop.f32.mrb[150].mxu1 }
 0x22e   : > { %v3209_v46 = vpop.f32.mrb[151].mxu1 }
 0x22f   : > { %v2258_v8 = vadd.f32 %v3207_v63, %v4801_v44  ;;  %v3210_v42 = vadd.f32 %v3209_v46, %v3208_v14 }
 0x231   : > { %v3323_v9 = vpop.f32.mrb[152].mxu0  ;;  %v2419_v56 = vadd.f32 %v3319_v3, %v2258_v8  ;;  %v2261_v52 = vadd.f32 %v3210_v42, %v4804_v36 }
 0x232   : > { %v3324_v6 = vpop.f32.mrb[153].mxu0 }
 0x233   : > { %v3325_v48 = vadd.f32 %v3324_v6, %v3323_v9  ;;  %v3326_v37 = vpop.f32.mrb[154].mxu0  ;;  %2467 = vst [vmem:[%s4824_s9 + $0xd0] sm:$0xff] %v2419_v56  ;;  %v2422_v26 = vadd.f32 %v3322_v21, %v2261_v52  ;;  %v3211_v25 = vpop.f32.mrb[152].mxu1 }
 0x234   : > { %v3327_v5 = vpop.f32.mrb[155].mxu0  ;;  %v3212_v35 = vpop.f32.mrb[153].mxu1 }
 0x235   : > { %v3328_v45 = vadd.f32 %v3327_v5, %v3326_v37  ;;  %2468 = vst [vmem:[%s4824_s9 + $0xd8] sm:$0xff] %v2422_v26  ;;  %v3213_v27 = vadd.f32 %v3212_v35, %v3211_v25  ;;  %v3214_v19 = vpop.f32.mrb[154].mxu1 }
 0x236   : > { %v3215_v44 = vpop.f32.mrb[155].mxu1 }
 0x237   : > { %v2266_v55 = vadd.f32 %v3213_v27, %v4807_v1  ;;  %v3216_v62 = vadd.f32 %v3215_v44, %v3214_v19 }
 0x239   : > { %v3329_v16 = vpop.f32.mrb[156].mxu0  ;;  %v2427_v36 = vadd.f32 %v3325_v48, %v2266_v55  ;;  %v2269_v54 = vadd.f32 %v3216_v62, %v4810_v18 }
 0x23a   : > { %v3330_v53 = vpop.f32.mrb[157].mxu0 }
 0x23b   : > { %v3331_v22 = vadd.f32 %v3330_v53, %v3329_v16  ;;  %v3332_v60 = vpop.f32.mrb[158].mxu0  ;;  %2469 = vst [vmem:[%s4824_s9 + $0xe0] sm:$0xff] %v2427_v36  ;;  %v2430_v50 = vadd.f32 %v3328_v45, %v2269_v54  ;;  %v3217_v61 = vpop.f32.mrb[156].mxu1 }
 0x23c   : > { %v3333_v7 = vpop.f32.mrb[159].mxu0  ;;  %v3218_v40 = vpop.f32.mrb[157].mxu1 }
 0x23d   : > { %v3334_v24 = vadd.f32 %v3333_v7, %v3332_v60  ;;  %2470 = vst [vmem:[%s4824_s9 + $0xe8] sm:$0xff] %v2430_v50  ;;  %v3219_v31 = vadd.f32 %v3218_v40, %v3217_v61  ;;  %v3220_v4 = vpop.f32.mrb[158].mxu1 }
 0x23e   : > { %v3221_v1 = vpop.f32.mrb[159].mxu1 }
 0x23f   : > { %v2274_v12 = vadd.f32 %v3219_v31, %v4813_v49  ;;  %v3222_v43 = vadd.f32 %v3221_v1, %v3220_v4 }
 0x241   : > { %v2435_v0 = vadd.f32 %v3331_v22, %v2274_v12  ;;  %v2277_v18 = vadd.f32 %v3222_v43, %v4816_v28 }
 0x243   : > { %2471 = vst [vmem:[%s4824_s9 + $0xf0] sm:$0xff] %v2435_v0  ;;  %v2438_v11 = vadd.f32 %v3334_v24, %v2277_v18 }
 0x245   : > { %2472 = vst [vmem:[%s4824_s9 + $0xf8] sm:$0xff] %v2438_v11 }
 0x246 PF: > { %s16_s21 = sadd.s32 1, %s3451_s21  }
 0x247   : > { %p13_p4 = scmp.ge.s32.totalorder %s16_s21, 4  }
 0x249   :  { %15 = sbr.rel (!%p13_p4) target bundleno = 1 (0x1), region = 77 }

</bundles_post_ra>
